<compile_context>
chip_gen: v6e
topology: v6e:2x2x1
jax: 0.10.0
libtpu: 0.0.40
codegen_flags: <defaults>
</compile_context>

<pallas_src>
import functools

import numpy as np
import jax
import jax.numpy as jnp
from jax import lax
from jax.experimental import pallas as pl
from jax.experimental.pallas import tpu as pltpu


def sand_kernel(x_ref, mask_ref, idx_lr_ref, idx_rl_ref,
                prefix_ref, suffix_ref, wq_ref, wkt_ref, wvo_ref,
                out_ref, *, timediff, alpha, beta, inv_z, inv_tm1, t_real):
    f32 = jnp.float32
    bf16 = jnp.bfloat16
    Din, BB, Tp = x_ref.shape
    Dm = wq_ref.shape[1]

    # ---- tiny input projections on the VPU (Din = 1 + Dy, typically 2) ----
    # q[b,t,d]  = sum_c x[c,b,t] * Wq[c,d]        (Wq pre-scaled by 1/sqrt(Dm))
    # k[b,d,s]  = sum_c Wk[c,d]  * x[c,b,s]       (Wk passed transposed)
    # vo[b,s]   = sum_c x[c,b,s] * (Wv @ Wo)[c]   (output proj folded into V)
    # TODO(synk): if Dy grows to ~16+, switch back to a fused MXU QKV matmul.
    wq = wq_ref[...]                                   # (Din, Dm)
    wkt = wkt_ref[...]                                 # (Dm, Din)
    q = jnp.zeros((BB, Tp, Dm), f32)
    k = jnp.zeros((BB, Dm, Tp), f32)
    vo = jnp.zeros((BB, Tp), f32)
    for c in range(Din):                               # static, tiny
        xc = x_ref[c]                                  # (BB, Tp) lane-dense
        q = q + xc[:, :, None] * wq[c:c + 1, :][None, :, :]
        k = k + wkt[:, c:c + 1][None, :, :] * xc[:, None, :]
        vo = vo + xc * wvo_ref[c]                      # scalar from SMEM

    # ---- attention scores + masked softmax (scale already folded into Wq) ----
    s = lax.dot_general(q.astype(bf16), k.astype(bf16),
                        dimension_numbers=(((2,), (1,)), ((0,), (0,))),
                        preferred_element_type=f32)    # (BB, Tp, Tp)
    visible = mask_ref[...] > 0.0                      # (BB, Tp) key mask
    s = jnp.where(visible[:, None, :], s, -1e9)
    s = s - jnp.max(s, axis=-1, keepdims=True)
    p = jnp.exp(s)
    p = p * pl.reciprocal(jnp.sum(p, axis=-1, keepdims=True), approx=True)
    smooth = jnp.sum(p * vo[:, None, :], axis=-1)      # (BB, Tp) smoothed deriv

    # ---- cumulative integrals via resident 0/1 matrices (exact, f32 MXU) ----
    inc_lr = timediff * jnp.dot(smooth, prefix_ref[...],
                                preferred_element_type=f32)   # inclusive prefix
    inc_rl = timediff * jnp.dot(smooth, suffix_ref[...],
                                preferred_element_type=f32)   # inclusive suffix

    # ---- anchor gathers: broadcast-iota lane compare + reduce ----
    idx_lr = idx_lr_ref[...]                           # (BB, Tp) int32
    idx_rl = idx_rl_ref[...]
    org = x_ref[0]                                     # org_detach[:, :, 0]
    lane = lax.broadcasted_iota(jnp.int32, (1, 1, Tp), 2)
    a_lr = (org - inc_lr)[:, None, :]                  # (BB, 1, Tp)
    a_rl = (org + inc_rl)[:, None, :]
    g_lr = jnp.sum(jnp.where(lane == idx_lr[:, :, None], a_lr, 0.0), axis=-1)
    g_rl = jnp.sum(jnp.where(lane == idx_rl[:, :, None], a_rl, 0.0), axis=-1)
    smooth_lr = g_lr + inc_lr                          # (BB, Tp)
    smooth_rl = g_rl - inc_rl

    # ---- analytic distance weights (EUP exp) + blend + output activation ----
    # w(d) = exp(20 * (1 - d/(T-1))) / Z + 2^-32
    t_idx = lax.broadcasted_iota(jnp.int32, (1, Tp), 1)
    d_lr = jnp.clip(t_idx - idx_lr, 0, t_real - 1).astype(f32)
    d_rl = jnp.clip(idx_rl - t_idx, 0, t_real - 1).astype(f32)
    w_lr = jnp.exp(20.0 * (1.0 - d_lr * inv_tm1)) * inv_z + 2.0 ** -32
    w_rl = jnp.exp(20.0 * (1.0 - d_rl * inv_tm1)) * inv_z + 2.0 ** -32
    mix = (smooth_lr * w_lr + smooth_rl * w_rl) * pl.reciprocal(w_lr + w_rl,
                                                                approx=True)
    out_ref[...] = jax.nn.sigmoid(mix) * alpha + beta


def build_anchor_indices(tas, T):
    """Vectorized reproduction of the torch repeat_interleave index construction.

    idx_lr[b, t] = largest anchor (incl. 0)    <= t
    idx_rl[b, t] = smallest anchor (incl. T-1) >= t
    """
    tas = np.asarray(tas, dtype=np.int64)
    B = tas.shape[0]
    t = np.arange(T)
    idx_lr = np.empty((B, T), dtype=np.int32)
    idx_rl = np.empty((B, T), dtype=np.int32)
    for b in range(B):
        a_lr = np.concatenate(([0], tas[b]))
        a_rl = np.concatenate((tas[b], [T - 1]))
        idx_lr[b] = a_lr[np.searchsorted(a_lr, t, side='right') - 1]
        idx_rl[b] = a_rl[np.searchsorted(a_rl, t, side='left')]
    return idx_lr, idx_rl


def _round_up(x, m):
    return ((x + m - 1) // m) * m


def _pick_bb(B, Tp, requested):
    # ~10 live f32 (BB, Tp, Tp) temporaries; keep them within ~24 MiB (v7x-safe).
    cap = max(1, (24 * 2 ** 20) // (10 * Tp * Tp * 4))
    bb = max(1, min(requested, cap))
    if B <= max(bb, 8):
        return B                 # whole batch in one full-dim block (grid = 1)
    # sublane-aligned blocks and >= 2 grid steps (keeps both v7x TCs busy)
    return max(8, (min(bb, B // 2) // 8) * 8)


def sand_forward(org_detach, y_t, d_m, tas_position, params, *, max_X, min_X,
                 block_b=16):
    B, T, C = org_detach.shape
    assert C == 1, "one 'BlockSAND' output block -> single output channel"
    Dy = y_t.shape[1]
    Din = 1 + Dy
    Dm = params['wq'].shape[1]

    timediff = 1.0 / (T - 1)
    inv_tm1 = 1.0 / (T - 1)
    alpha = float(max_X - min_X)
    beta = float(min_X)
    # analytic distance-weight normalizer: Z = sum_d exp(20 * (1 - d/(T-1)))
    wl = 1.0 - np.arange(T) / (T - 1)
    inv_z = float(1.0 / np.exp(20.0 * wl).sum())

    Tp = _round_up(max(T, 128), 128)          # lane-dense time axis
    BB = _pick_bb(B, Tp, block_b)
    B_pad = _round_up(B, BB)

    # channel-major lane-dense input slabs: x_ch[0] = org[:,:,0], x_ch[1+j] = y_t[:,j,:]
    x_ch = jnp.concatenate(
        [org_detach[:, :, 0][None, :, :].astype(jnp.float32),
         jnp.transpose(y_t, (1, 0, 2)).astype(jnp.float32)], axis=0)   # (Din,B,T)
    x_ch = jnp.pad(x_ch, ((0, 0), (0, B_pad - B), (0, Tp - T)))

    maskp = jnp.pad(d_m.reshape(B, T).astype(jnp.float32),
                    ((0, B_pad - B), (0, Tp - T)))                     # pads masked

    idx_lr_np, idx_rl_np = build_anchor_indices(tas_position, T)
    idx_lr = np.zeros((B_pad, Tp), np.int32)
    idx_lr[:B, :T] = idx_lr_np
    idx_rl = np.full((B_pad, Tp), T - 1, np.int32)
    idx_rl[:B, :T] = idx_rl_np

    # hoisted 0/1 integration matrices (resident in VMEM for the whole grid)
    sidx = np.arange(Tp)
    prefix = (sidx[:, None] <= sidx[None, :]).astype(np.float32)               # s <= t
    suffix = ((sidx[:, None] >= sidx[None, :]) & (sidx[:, None] < T)).astype(np.float32)

    # weights: score scale folded into Wq, output projection folded into Wv
    wq_scaled = (params['wq'] / np.sqrt(Dm)).astype(jnp.float32)       # (Din, Dm)
    wk_t = jnp.transpose(params['wk'].astype(jnp.float32))             # (Dm, Din)
    wvo = (params['wv'].astype(jnp.float32)
           @ params['wo'].astype(jnp.float32)).reshape(Din)            # (Din,)

    big = BB * Tp * Tp * 4
    vmem_bytes = int(min(96 * 2 ** 20,
                         max(32 * 2 ** 20,
                             10 * big + 3 * Tp * Tp * 4
                             + 4 * (Din + 6) * BB * Tp * 4)))

    kernel = functools.partial(
        sand_kernel, timediff=timediff, alpha=alpha, beta=beta,
        inv_z=inv_z, inv_tm1=inv_tm1, t_real=T)

    out = pl.pallas_call(
        kernel,
        out_shape=jax.ShapeDtypeStruct((B_pad, Tp), jnp.float32),
        grid_spec=pltpu.PrefetchScalarGridSpec(
            num_scalar_prefetch=0,
            grid=(B_pad // BB,),
            in_specs=[
                pl.BlockSpec((Din, BB, Tp), lambda b: (0, b, 0)),   # x channels
                pl.BlockSpec((BB, Tp), lambda b: (b, 0)),           # key mask
                pl.BlockSpec((BB, Tp), lambda b: (b, 0)),           # idx_lr
                pl.BlockSpec((BB, Tp), lambda b: (b, 0)),           # idx_rl
                pl.BlockSpec((Tp, Tp), lambda b: (0, 0)),           # prefix (resident)
                pl.BlockSpec((Tp, Tp), lambda b: (0, 0)),           # suffix (resident)
                pl.BlockSpec((Din, Dm), lambda b: (0, 0)),          # Wq / sqrt(Dm)
                pl.BlockSpec((Dm, Din), lambda b: (0, 0)),          # Wk^T
                pl.BlockSpec(memory_space=pltpu.MemorySpace.SMEM),  # Wv @ Wo scalars
            ],
            out_specs=pl.BlockSpec((BB, Tp), lambda b: (b, 0)),     # lane-dense out
        ),
        compiler_params=pltpu.CompilerParams(
            dimension_semantics=("parallel",),
            vmem_limit_bytes=vmem_bytes),
    )(x_ch, maskp, jnp.asarray(idx_lr), jnp.asarray(idx_rl),
      jnp.asarray(prefix), jnp.asarray(suffix), wq_scaled, wk_t, wvo)

    return out[:B, :T, None]                                          # (B, T, C=1)


if __name__ == "__main__":
    B, T, C, Dy, Dm = 2, 8, 1, 1, 32
    max_X, min_X = 2.0, -1.0

    key = jax.random.PRNGKey(0)
    k1, k2, k3, k4, k5, k6 = jax.random.split(key, 6)

    org_detach = jax.random.normal(k1, (B, T, C), jnp.float32)
    y_t = jnp.broadcast_to(
        jnp.linspace(0.0, 1.0, T, dtype=jnp.float32)[None, None, :], (B, Dy, T))
    d_m = (jax.random.uniform(k2, (B, T)) > 0.2).astype(jnp.float32)
    d_m = d_m.at[:, 0].set(1.0)   # keep at least one visible key per subject

    Din = 1 + Dy
    params = {
        'wq': 0.1 * jax.random.normal(k3, (Din, Dm), jnp.float32),
        'wk': 0.1 * jax.random.normal(k4, (Din, Dm), jnp.float32),
        'wv': 0.1 * jax.random.normal(k5, (Din, Dm), jnp.float32),
        'wo': 0.1 * jax.random.normal(k6, (Dm, 1), jnp.float32),
    }

    # deterministic time anchors (2 per subject, in [1, T-2], sorted)
    rng = np.random.default_rng(0)
    tas = np.sort(np.stack([rng.choice(np.arange(1, T - 1), size=2, replace=False)
                            for _ in range(B)]), axis=1)

    out = sand_forward(org_detach, y_t, d_m, tas, params,
                       max_X=max_X, min_X=min_X)
    out = jax.block_until_ready(out)
    assert out.shape == (B, T, C)
    assert bool(jnp.all(jnp.isfinite(out)))
    assert bool(jnp.all(out >= min_X)) and bool(jnp.all(out <= max_X))
    print("KERNEL_OK")
</pallas_src>

<mosaic_0001>
module attributes {stable_mosaic.version = 11 : i64} {
  func.func @sand_kernel(%arg0: i32, %arg1: memref<2x2x128xf32, #tpu.memory_space<vmem>>, %arg2: memref<2x128xf32, #tpu.memory_space<vmem>>, %arg3: memref<2x128xi32, #tpu.memory_space<vmem>>, %arg4: memref<2x128xi32, #tpu.memory_space<vmem>>, %arg5: memref<128x128xf32, #tpu.memory_space<vmem>>, %arg6: memref<128x128xf32, #tpu.memory_space<vmem>>, %arg7: memref<2x32xf32, #tpu.memory_space<vmem>>, %arg8: memref<32x2xf32, #tpu.memory_space<vmem>>, %arg9: memref<2xf32, #tpu.memory_space<smem>>, %arg10: memref<2x128xf32, #tpu.memory_space<vmem>>) attributes {dimension_semantics = [#tpu.dimension_semantics<parallel>], iteration_bounds = array<i64: 1>, scalar_prefetch = 0 : i64, scratch_operands = 0 : i64, tpu.core_type = #tpu.core_type<tc>, window_params = [{transform_indices = @transform_0, window_bounds = array<i64: 2, 2, 128>}, {transform_indices = @transform_1, window_bounds = array<i64: 2, 128>}, {transform_indices = @transform_2, window_bounds = array<i64: 2, 128>}, {transform_indices = @transform_3, window_bounds = array<i64: 2, 128>}, {pipeline_mode = #tpu.pipeline_mode<synchronous>, transform_indices = @transform_4, window_bounds = array<i64: 128, 128>}, {pipeline_mode = #tpu.pipeline_mode<synchronous>, transform_indices = @transform_5, window_bounds = array<i64: 128, 128>}, {pipeline_mode = #tpu.pipeline_mode<synchronous>, transform_indices = @transform_6, window_bounds = array<i64: 2, 32>}, {pipeline_mode = #tpu.pipeline_mode<synchronous>, transform_indices = @transform_7, window_bounds = array<i64: 32, 2>}, {transform_indices = @transform_8, window_bounds = array<i64: 2>}, {transform_indices = @transform_9, window_bounds = array<i64: 2, 128>}]} {
    %c0 = arith.constant 0 : index
    %c0_0 = arith.constant 0 : index
    %0 = vector.load %arg7[%c0, %c0_0] : memref<2x32xf32, #tpu.memory_space<vmem>>, vector<2x32xf32>
    %c0_1 = arith.constant 0 : index
    %c0_2 = arith.constant 0 : index
    %1 = vector.load %arg8[%c0_1, %c0_2] : memref<32x2xf32, #tpu.memory_space<vmem>>, vector<32x2xf32>
    %cst = arith.constant 0.000000e+00 : f32
    %2 = vector.broadcast %cst : f32 to vector<2x128x32xf32>
    %cst_3 = arith.constant 0.000000e+00 : f32
    %3 = vector.broadcast %cst_3 : f32 to vector<2x32x128xf32>
    %cst_4 = arith.constant 0.000000e+00 : f32
    %4 = vector.broadcast %cst_4 : f32 to vector<2x128xf32>
    %c0_5 = arith.constant 0 : index
    %c0_6 = arith.constant 0 : index
    %c0_7 = arith.constant 0 : index
    %5 = vector.load %arg1[%c0_5, %c0_6, %c0_7] : memref<2x2x128xf32, #tpu.memory_space<vmem>>, vector<1x2x128xf32>
    %6 = vector.shape_cast %5 : vector<1x2x128xf32> to vector<2x128xf32>
    %7 = vector.shape_cast %6 : vector<2x128xf32> to vector<2x128x1xf32>
    %8 = vector.extract_strided_slice %0 {offsets = [0, 0], sizes = [1, 32], strides = [1, 1]} : vector<2x32xf32> to vector<1x32xf32>
    %9 = vector.shape_cast %8 : vector<1x32xf32> to vector<1x1x32xf32>
    %10 = vector.broadcast %7 : vector<2x128x1xf32> to vector<2x128x32xf32>
    %11 = vector.broadcast %9 : vector<1x1x32xf32> to vector<2x128x32xf32>
    %12 = arith.mulf %10, %11 : vector<2x128x32xf32>
    %13 = arith.addf %2, %12 : vector<2x128x32xf32>
    %14 = vector.extract_strided_slice %1 {offsets = [0, 0], sizes = [32, 1], strides = [1, 1]} : vector<32x2xf32> to vector<32x1xf32>
    %15 = vector.shape_cast %14 : vector<32x1xf32> to vector<1x32x1xf32>
    %16 = vector.shape_cast %6 : vector<2x128xf32> to vector<2x1x128xf32>
    %17 = vector.broadcast %15 : vector<1x32x1xf32> to vector<2x32x128xf32>
    %18 = vector.broadcast %16 : vector<2x1x128xf32> to vector<2x32x128xf32>
    %19 = arith.mulf %17, %18 : vector<2x32x128xf32>
    %20 = arith.addf %3, %19 : vector<2x32x128xf32>
    %c0_8 = arith.constant 0 : index
    %21 = memref.load %arg9[%c0_8] : memref<2xf32, #tpu.memory_space<smem>>
    %22 = vector.broadcast %21 : f32 to vector<2x128xf32>
    %23 = arith.mulf %6, %22 : vector<2x128xf32>
    %24 = arith.addf %4, %23 : vector<2x128xf32>
    %c1 = arith.constant 1 : index
    %c0_9 = arith.constant 0 : index
    %c0_10 = arith.constant 0 : index
    %25 = vector.load %arg1[%c1, %c0_9, %c0_10] : memref<2x2x128xf32, #tpu.memory_space<vmem>>, vector<1x2x128xf32>
    %26 = vector.shape_cast %25 : vector<1x2x128xf32> to vector<2x128xf32>
    %27 = vector.shape_cast %26 : vector<2x128xf32> to vector<2x128x1xf32>
    %28 = vector.extract_strided_slice %0 {offsets = [1, 0], sizes = [1, 32], strides = [1, 1]} : vector<2x32xf32> to vector<1x32xf32>
    %29 = vector.shape_cast %28 : vector<1x32xf32> to vector<1x1x32xf32>
    %30 = vector.broadcast %27 : vector<2x128x1xf32> to vector<2x128x32xf32>
    %31 = vector.broadcast %29 : vector<1x1x32xf32> to vector<2x128x32xf32>
    %32 = arith.mulf %30, %31 : vector<2x128x32xf32>
    %33 = arith.addf %13, %32 : vector<2x128x32xf32>
    %34 = vector.extract_strided_slice %1 {offsets = [0, 1], sizes = [32, 1], strides = [1, 1]} : vector<32x2xf32> to vector<32x1xf32>
    %35 = vector.shape_cast %34 : vector<32x1xf32> to vector<1x32x1xf32>
    %36 = vector.shape_cast %26 : vector<2x128xf32> to vector<2x1x128xf32>
    %37 = vector.broadcast %35 : vector<1x32x1xf32> to vector<2x32x128xf32>
    %38 = vector.broadcast %36 : vector<2x1x128xf32> to vector<2x32x128xf32>
    %39 = arith.mulf %37, %38 : vector<2x32x128xf32>
    %40 = arith.addf %20, %39 : vector<2x32x128xf32>
    %c1_11 = arith.constant 1 : index
    %41 = memref.load %arg9[%c1_11] : memref<2xf32, #tpu.memory_space<smem>>
    %42 = vector.broadcast %41 : f32 to vector<2x128xf32>
    %43 = arith.mulf %26, %42 : vector<2x128xf32>
    %44 = arith.addf %24, %43 : vector<2x128xf32>
    %45 = arith.truncf %33 : vector<2x128x32xf32> to vector<2x128x32xbf16>
    %46 = arith.truncf %40 : vector<2x32x128xf32> to vector<2x32x128xbf16>
    %cst_12 = arith.constant dense<0.000000e+00> : vector<2x128x128xf32>
    %47 = tpu.matmul %45, %46, %cst_12 {dimension_numbers = #tpu.dot_dimension_numbers<[2], [1], [1], [2], [0, 0, 0, 1, 1, 2], [0], [0]>} : vector<2x128x32xbf16>, vector<2x32x128xbf16>, vector<2x128x128xf32> -> vector<2x128x128xf32>
    %c0_13 = arith.constant 0 : index
    %c0_14 = arith.constant 0 : index
    %48 = vector.load %arg2[%c0_13, %c0_14] : memref<2x128xf32, #tpu.memory_space<vmem>>, vector<2x128xf32>
    %cst_15 = arith.constant 0.000000e+00 : f32
    %49 = vector.broadcast %cst_15 : f32 to vector<2x128xf32>
    %50 = arith.cmpf ogt, %48, %49 : vector<2x128xf32>
    %51 = vector.shape_cast %50 : vector<2x128xi1> to vector<2x1x128xi1>
    %cst_16 = arith.constant -1.000000e+09 : f32
    %52 = vector.shape_cast %51 : vector<2x1x128xi1> to vector<2x1x128xi1>
    %53 = vector.broadcast %52 : vector<2x1x128xi1> to vector<2x128x128xi1>
    %54 = vector.broadcast %cst_16 : f32 to vector<2x128x128xf32>
    %55 = arith.select %53, %47, %54 : vector<2x128x128xi1>, vector<2x128x128xf32>
    %cst_17 = arith.constant dense<0xFF800000> : vector<2x128xf32>
    %56 = vector.multi_reduction <maximumf>, %55, %cst_17 [2] : vector<2x128x128xf32> to vector<2x128xf32>
    %57 = vector.shape_cast %56 : vector<2x128xf32> to vector<2x128x1xf32>
    %58 = vector.broadcast %57 : vector<2x128x1xf32> to vector<2x128x128xf32>
    %59 = arith.subf %55, %58 : vector<2x128x128xf32>
    %60 = math.exp %59 : vector<2x128x128xf32>
    %cst_18 = arith.constant dense<0.000000e+00> : vector<2x128xf32>
    %61 = vector.multi_reduction <add>, %60, %cst_18 [2] : vector<2x128x128xf32> to vector<2x128xf32>
    %62 = vector.shape_cast %61 : vector<2x128xf32> to vector<2x128x1xf32>
    %63 = tpu.reciprocal %62 {approx = true} : vector<2x128x1xf32> -> vector<2x128x1xf32>
    %64 = vector.broadcast %63 : vector<2x128x1xf32> to vector<2x128x128xf32>
    %65 = arith.mulf %60, %64 : vector<2x128x128xf32>
    %66 = vector.shape_cast %44 : vector<2x128xf32> to vector<2x1x128xf32>
    %67 = vector.broadcast %66 : vector<2x1x128xf32> to vector<2x128x128xf32>
    %68 = arith.mulf %65, %67 : vector<2x128x128xf32>
    %cst_19 = arith.constant dense<0.000000e+00> : vector<2x128xf32>
    %69 = vector.multi_reduction <add>, %68, %cst_19 [2] : vector<2x128x128xf32> to vector<2x128xf32>
    %c0_20 = arith.constant 0 : index
    %c0_21 = arith.constant 0 : index
    %70 = vector.load %arg5[%c0_20, %c0_21] : memref<128x128xf32, #tpu.memory_space<vmem>>, vector<128x128xf32>
    %cst_22 = arith.constant dense<0.000000e+00> : vector<2x128xf32>
    %71 = tpu.matmul %69, %70, %cst_22 {dimension_numbers = #tpu.dot_dimension_numbers<[1], [0], [0], [1], [0, 0, 1, 1], [], []>} : vector<2x128xf32>, vector<128x128xf32>, vector<2x128xf32> -> vector<2x128xf32>
    %cst_23 = arith.constant 0.142857149 : f32
    %72 = vector.broadcast %cst_23 : f32 to vector<2x128xf32>
    %73 = arith.mulf %72, %71 : vector<2x128xf32>
    %c0_24 = arith.constant 0 : index
    %c0_25 = arith.constant 0 : index
    %74 = vector.load %arg6[%c0_24, %c0_25] : memref<128x128xf32, #tpu.memory_space<vmem>>, vector<128x128xf32>
    %cst_26 = arith.constant dense<0.000000e+00> : vector<2x128xf32>
    %75 = tpu.matmul %69, %74, %cst_26 {dimension_numbers = #tpu.dot_dimension_numbers<[1], [0], [0], [1], [0, 0, 1, 1], [], []>} : vector<2x128xf32>, vector<128x128xf32>, vector<2x128xf32> -> vector<2x128xf32>
    %cst_27 = arith.constant 0.142857149 : f32
    %76 = vector.broadcast %cst_27 : f32 to vector<2x128xf32>
    %77 = arith.mulf %76, %75 : vector<2x128xf32>
    %c0_28 = arith.constant 0 : index
    %c0_29 = arith.constant 0 : index
    %78 = vector.load %arg3[%c0_28, %c0_29] : memref<2x128xi32, #tpu.memory_space<vmem>>, vector<2x128xi32>
    %c0_30 = arith.constant 0 : index
    %c0_31 = arith.constant 0 : index
    %79 = vector.load %arg4[%c0_30, %c0_31] : memref<2x128xi32, #tpu.memory_space<vmem>>, vector<2x128xi32>
    %c0_32 = arith.constant 0 : index
    %c0_33 = arith.constant 0 : index
    %c0_34 = arith.constant 0 : index
    %80 = vector.load %arg1[%c0_32, %c0_33, %c0_34] : memref<2x2x128xf32, #tpu.memory_space<vmem>>, vector<1x2x128xf32>
    %81 = vector.shape_cast %80 : vector<1x2x128xf32> to vector<2x128xf32>
    %82 = tpu.iota {dimensions = array<i32: 2>} : vector<1x1x128xi32>
    %83 = arith.subf %81, %73 : vector<2x128xf32>
    %84 = vector.shape_cast %83 : vector<2x128xf32> to vector<2x1x128xf32>
    %85 = arith.addf %81, %77 : vector<2x128xf32>
    %86 = vector.shape_cast %85 : vector<2x128xf32> to vector<2x1x128xf32>
    %87 = vector.shape_cast %78 : vector<2x128xi32> to vector<2x128x1xi32>
    %88 = vector.broadcast %82 : vector<1x1x128xi32> to vector<2x128x128xi32>
    %89 = vector.broadcast %87 : vector<2x128x1xi32> to vector<2x128x128xi32>
    %90 = arith.cmpi eq, %88, %89 : vector<2x128x128xi32>
    %cst_35 = arith.constant 0.000000e+00 : f32
    %91 = vector.shape_cast %84 : vector<2x1x128xf32> to vector<2x1x128xf32>
    %92 = vector.broadcast %91 : vector<2x1x128xf32> to vector<2x128x128xf32>
    %93 = vector.broadcast %cst_35 : f32 to vector<2x128x128xf32>
    %94 = arith.select %90, %92, %93 : vector<2x128x128xi1>, vector<2x128x128xf32>
    %cst_36 = arith.constant dense<0.000000e+00> : vector<2x128xf32>
    %95 = vector.multi_reduction <add>, %94, %cst_36 [2] : vector<2x128x128xf32> to vector<2x128xf32>
    %96 = vector.shape_cast %79 : vector<2x128xi32> to vector<2x128x1xi32>
    %97 = vector.broadcast %82 : vector<1x1x128xi32> to vector<2x128x128xi32>
    %98 = vector.broadcast %96 : vector<2x128x1xi32> to vector<2x128x128xi32>
    %99 = arith.cmpi eq, %97, %98 : vector<2x128x128xi32>
    %cst_37 = arith.constant 0.000000e+00 : f32
    %100 = vector.shape_cast %86 : vector<2x1x128xf32> to vector<2x1x128xf32>
    %101 = vector.broadcast %100 : vector<2x1x128xf32> to vector<2x128x128xf32>
    %102 = vector.broadcast %cst_37 : f32 to vector<2x128x128xf32>
    %103 = arith.select %99, %101, %102 : vector<2x128x128xi1>, vector<2x128x128xf32>
    %cst_38 = arith.constant dense<0.000000e+00> : vector<2x128xf32>
    %104 = vector.multi_reduction <add>, %103, %cst_38 [2] : vector<2x128x128xf32> to vector<2x128xf32>
    %105 = arith.addf %95, %73 : vector<2x128xf32>
    %106 = arith.subf %104, %77 : vector<2x128xf32>
    %107 = tpu.iota {dimensions = array<i32: 1>} : vector<1x128xi32>
    %108 = vector.broadcast %107 : vector<1x128xi32> to vector<2x128xi32>
    %109 = arith.subi %108, %78 : vector<2x128xi32>
    %c0_i32 = arith.constant 0 : i32
    %c7_i32 = arith.constant 7 : i32
    %110 = vector.broadcast %c0_i32 : i32 to vector<2x128xi32>
    %111 = arith.maxsi %110, %109 : vector<2x128xi32>
    %112 = vector.broadcast %c7_i32 : i32 to vector<2x128xi32>
    %113 = arith.minsi %112, %111 : vector<2x128xi32>
    %114 = arith.sitofp %113 : vector<2x128xi32> to vector<2x128xf32>
    %115 = vector.broadcast %107 : vector<1x128xi32> to vector<2x128xi32>
    %116 = arith.subi %79, %115 : vector<2x128xi32>
    %c0_i32_39 = arith.constant 0 : i32
    %c7_i32_40 = arith.constant 7 : i32
    %117 = vector.broadcast %c0_i32_39 : i32 to vector<2x128xi32>
    %118 = arith.maxsi %117, %116 : vector<2x128xi32>
    %119 = vector.broadcast %c7_i32_40 : i32 to vector<2x128xi32>
    %120 = arith.minsi %119, %118 : vector<2x128xi32>
    %121 = arith.sitofp %120 : vector<2x128xi32> to vector<2x128xf32>
    %cst_41 = arith.constant 0.142857149 : f32
    %122 = vector.broadcast %cst_41 : f32 to vector<2x128xf32>
    %123 = arith.mulf %114, %122 : vector<2x128xf32>
    %cst_42 = arith.constant 1.000000e+00 : f32
    %124 = vector.broadcast %cst_42 : f32 to vector<2x128xf32>
    %125 = arith.subf %124, %123 : vector<2x128xf32>
    %cst_43 = arith.constant 2.000000e+01 : f32
    %126 = vector.broadcast %cst_43 : f32 to vector<2x128xf32>
    %127 = arith.mulf %126, %125 : vector<2x128xf32>
    %128 = math.exp %127 : vector<2x128xf32>
    %cst_44 = arith.constant 1.94277616E-9 : f32
    %129 = vector.broadcast %cst_44 : f32 to vector<2x128xf32>
    %130 = arith.mulf %128, %129 : vector<2x128xf32>
    %cst_45 = arith.constant 2.32830644E-10 : f32
    %131 = vector.broadcast %cst_45 : f32 to vector<2x128xf32>
    %132 = arith.addf %130, %131 : vector<2x128xf32>
    %cst_46 = arith.constant 0.142857149 : f32
    %133 = vector.broadcast %cst_46 : f32 to vector<2x128xf32>
    %134 = arith.mulf %121, %133 : vector<2x128xf32>
    %cst_47 = arith.constant 1.000000e+00 : f32
    %135 = vector.broadcast %cst_47 : f32 to vector<2x128xf32>
    %136 = arith.subf %135, %134 : vector<2x128xf32>
    %cst_48 = arith.constant 2.000000e+01 : f32
    %137 = vector.broadcast %cst_48 : f32 to vector<2x128xf32>
    %138 = arith.mulf %137, %136 : vector<2x128xf32>
    %139 = math.exp %138 : vector<2x128xf32>
    %cst_49 = arith.constant 1.94277616E-9 : f32
    %140 = vector.broadcast %cst_49 : f32 to vector<2x128xf32>
    %141 = arith.mulf %139, %140 : vector<2x128xf32>
    %cst_50 = arith.constant 2.32830644E-10 : f32
    %142 = vector.broadcast %cst_50 : f32 to vector<2x128xf32>
    %143 = arith.addf %141, %142 : vector<2x128xf32>
    %144 = arith.mulf %105, %132 : vector<2x128xf32>
    %145 = arith.mulf %106, %143 : vector<2x128xf32>
    %146 = arith.addf %144, %145 : vector<2x128xf32>
    %147 = arith.addf %132, %143 : vector<2x128xf32>
    %148 = tpu.reciprocal %147 {approx = true} : vector<2x128xf32> -> vector<2x128xf32>
    %149 = arith.mulf %146, %148 : vector<2x128xf32>
    %150 = arith.negf %149 : vector<2x128xf32>
    %151 = math.exp %150 : vector<2x128xf32>
    %cst_51 = arith.constant 1.000000e+00 : f32
    %152 = vector.broadcast %cst_51 : f32 to vector<2x128xf32>
    %153 = arith.addf %152, %151 : vector<2x128xf32>
    %154 = arith.divf %152, %153 : vector<2x128xf32>
    %cst_52 = arith.constant 3.000000e+00 : f32
    %155 = vector.broadcast %cst_52 : f32 to vector<2x128xf32>
    %156 = arith.mulf %154, %155 : vector<2x128xf32>
    %cst_53 = arith.constant -1.000000e+00 : f32
    %157 = vector.broadcast %cst_53 : f32 to vector<2x128xf32>
    %158 = arith.addf %156, %157 : vector<2x128xf32>
    %c0_54 = arith.constant 0 : index
    %c0_55 = arith.constant 0 : index
    %159 = vector.load %arg10[%c0_54, %c0_55] : memref<2x128xf32, #tpu.memory_space<vmem>>, vector<2x128xf32>
    tpu.vector_store %arg10[%c0_54, %c0_55], %158 {strides = array<i32>} : memref<2x128xf32, #tpu.memory_space<vmem>>, vector<2x128xf32>,
    return
  }
  func.func @transform_0(%arg0: i32) -> (i32, i32, i32) {
    %c0_i32 = arith.constant 0 : i32
    %c0_i32_0 = arith.constant 0 : i32
    %c0_i32_1 = arith.constant 0 : i32
    return %c0_i32, %arg0, %c0_i32_0 : i32, i32, i32
  }
  func.func @transform_1(%arg0: i32) -> (i32, i32) {
    %c0_i32 = arith.constant 0 : i32
    %c0_i32_0 = arith.constant 0 : i32
    return %arg0, %c0_i32 : i32, i32
  }
  func.func @transform_2(%arg0: i32) -> (i32, i32) {
    %c0_i32 = arith.constant 0 : i32
    %c0_i32_0 = arith.constant 0 : i32
    return %arg0, %c0_i32 : i32, i32
  }
  func.func @transform_3(%arg0: i32) -> (i32, i32) {
    %c0_i32 = arith.constant 0 : i32
    %c0_i32_0 = arith.constant 0 : i32
    return %arg0, %c0_i32 : i32, i32
  }
  func.func @transform_4(%arg0: i32) -> (i32, i32) {
    %c0_i32 = arith.constant 0 : i32
    %c0_i32_0 = arith.constant 0 : i32
    %c0_i32_1 = arith.constant 0 : i32
    return %c0_i32, %c0_i32_0 : i32, i32
  }
  func.func @transform_5(%arg0: i32) -> (i32, i32) {
    %c0_i32 = arith.constant 0 : i32
    %c0_i32_0 = arith.constant 0 : i32
    %c0_i32_1 = arith.constant 0 : i32
    return %c0_i32, %c0_i32_0 : i32, i32
  }
  func.func @transform_6(%arg0: i32) -> (i32, i32) {
    %c0_i32 = arith.constant 0 : i32
    %c0_i32_0 = arith.constant 0 : i32
    %c0_i32_1 = arith.constant 0 : i32
    return %c0_i32, %c0_i32_0 : i32, i32
  }
  func.func @transform_7(%arg0: i32) -> (i32, i32) {
    %c0_i32 = arith.constant 0 : i32
    %c0_i32_0 = arith.constant 0 : i32
    %c0_i32_1 = arith.constant 0 : i32
    return %c0_i32, %c0_i32_0 : i32, i32
  }
  func.func @transform_8(%arg0: i32) -> i32 {
    %c0_i32 = arith.constant 0 : i32
    %c0_i32_0 = arith.constant 0 : i32
    return %c0_i32 : i32
  }
  func.func @transform_9(%arg0: i32) -> (i32, i32) {
    %c0_i32 = arith.constant 0 : i32
    %c0_i32_0 = arith.constant 0 : i32
    return %arg0, %c0_i32 : i32, i32
  }
}

</mosaic_0001>

<bundles_post_ra>
// kernel: tpu_custom_call.1
= control target key start
LH: loop header
LB: loop body
LE: loop exit
PB: predicated region body
PF: predicated region fallthrough
CT: control target
= control target key end

     0   :  { %14 = vsyncpa [#allocation3], 0  ;;  %s6787_s0 = inlined_call_operand.vmem [shape: f32[2,2,128], index: 0, kind: input, shape index: {}]   ;;  %s6788_s1 = inlined_call_operand.vmem [shape: f32[2,128], index: 1, kind: input, shape index: {}]   ;;  %s6789_s2 = inlined_call_operand.vmem [shape: s32[2,128], index: 2, kind: input, shape index: {}]   ;;  %s6790_s3 = inlined_call_operand.vmem [shape: s32[2,128], index: 3, kind: input, shape index: {}]   ;;  %s6791_s4 = inlined_call_operand.hbm [shape: f32[128,128], index: 4, kind: input, shape index: {}]   ;;  %s6792_s5 = inlined_call_operand.hbm [shape: f32[128,128], index: 5, kind: input, shape index: {}]   ;;  %s6793_s6 = inlined_call_operand.vmem [shape: f32[2,32], index: 6, kind: input, shape index: {}]   ;;  %s6794_s7 = inlined_call_operand.vmem [shape: f32[32,2], index: 7, kind: input, shape index: {}]   ;;  %s6795_s8 = inlined_call_operand.vmem [shape: f32[2], index: 8, kind: input, shape index: {}]   ;;  %s6796_s9 = inlined_call_operand.hbm [shape: f32[2,128], index: 9, kind: output, shape index: {}]  }
   0x1   :  { %15 = vsyncpa [#allocation7], 0 }
   0x2   :  { %16 = vsyncpa [#allocation5], 0 }
   0x3   :  { %17 = vsyncpa [#allocation4], 0  ;;  %s4565_s30 = smov [#allocation2]  }
   0x4   :  { %s31_s10 = sshll.u32 %s4565_s30, 4  ;;  %s32_s10 = int_to_ptr.vmem [resolvable:$true] %s31_s10 }
   0x5   :  { %s4493_s11 = scalar_lea.vmem %s32_s10, 2048  ;;  %p4498_p1 = scmp.lt.s32.totalorder %s32_s10, %s32_s10 }
   0x6   :  { %p4494_p0 = scmp.ne.s32.totalorder %s32_s10, %s4493_s11  ;;  %p4499_p2 = scmp.lt.s32.totalorder %s4493_s11, %s4493_s11 }
   0x8   :  { %p4500_p3 = por %p4499_p2, %p4498_p1 }
   0xa   :  { %p4501_p4 = pnand %p4500_p3, %p4494_p0 }
   0xc   :  { %4504 = shalt.err (!%p4501_p4)
}
   0xd   :  { %s4566_s12 = smov 128   ;;  %s4567_s13 = smov 8  }
   0xe   :  { %37 = dma.hbm_to_vmem [thread:$0]  %s6791_s4, 2048, %s32_s10, [#allocation3], %s4566_s12, %s4566_s12, %s4567_s13  }
   0xf   :  { %s4568_s16 = smov [#allocation6]   ;;  %s60_s20 = sshll.u32 %s6795_s8, 4  ;;  %s61_s20 = int_to_ptr.vmem [resolvable:$true] %s60_s20 }
  0x10   :  { %s43_s17 = sshll.u32 %s4568_s16, 4  ;;  %s44_s17 = int_to_ptr.vmem [resolvable:$true] %s43_s17 }
  0x11   :  { %s4513_s21 = scalar_lea.vmem %s44_s17, 2048  ;;  %p4518_p6 = scmp.lt.s32.totalorder %s44_s17, %s44_s17 }
  0x12   :  { %p4514_p5 = scmp.ne.s32.totalorder %s44_s17, %s4513_s21  ;;  %p4519_p7 = scmp.lt.s32.totalorder %s4513_s21, %s4513_s21 }
  0x14   :  { %p4520_p8 = por %p4519_p7, %p4518_p6 }
  0x16   :  { %p4521_p9 = pnand %p4520_p8, %p4514_p5 }
  0x18   :  { %4524 = shalt.err (!%p4521_p9)
}
  0x19   :  { %49 = dma.hbm_to_vmem [thread:$0]  %s6792_s5, 2048, %s44_s17, [#allocation7], %s4566_s12, %s4566_s12, %s4567_s13  }
  0x1a   :  { %s4525_s4 = scalar_lea.vmem %s61_s20, 16  ;;  %p4530_p11 = scmp.lt.s32.totalorder %s61_s20, %s61_s20 }
  0x1b   :  { %p4526_p10 = scmp.ne.s32.totalorder %s61_s20, %s4525_s4  ;;  %p4531_p12 = scmp.lt.s32.totalorder %s4525_s4, %s4525_s4 }
  0x1d   :  { %p4532_p13 = por %p4531_p12, %p4530_p11 }
  0x1f   :  { %p4533_p0 = pnand %p4532_p13, %p4526_p10 }
  0x21   :  { %4536 = shalt.err (!%p4533_p0)
}
  0x22   :  { %s4569_s8 = smov [#allocation8]  }
  0x23   :  { %63 = dma.vmem_to_smem %s61_s20, 16, %s4569_s8, [#allocation5]  }
  0x24   :  { %4557 = dma.done.wait [#allocation3], 2048  }
  0x25   :  { %4558 = vsyncadd [#allocation3], 4294965248 }
  0x26   :  { %4559 = dma.done.wait [#allocation7], 2048  }
  0x27   :  { %4560 = vsyncadd [#allocation7], 4294965248 }
  0x28   :  { %4561 = dma.done.wait [#allocation5], 16  }
  0x29   :  { %4562 = vsyncadd [#allocation5], 4294967280 }
  0x2a   :  { %73 = sfence }
  0x2b   :  { %v6797_v0 = vlaneseq  ;;  %v6798_v1 = vmov 0   ;;  %v4642_v3 = vld [vmem:[%s6787_s0] sm:$0x3]  ;;  %v4571_v6 = vmov 1   ;;  %v4657_v9 = vld [vmem:[%s6787_s0 + $0x2] sm:$0x3] }
  0x2c   :  { %4215 = vset.pattern.permute.xlu1 %v6798_v1  ;;  %4217 = vset.pattern.permute.xlu0 %v4571_v6  ;;  %v77_v11 = vld [vmem:[%s6794_s7 + $0x8] sm:$0xff]  ;;  %v78_v12 = vld [vmem:[%s6794_s7 + $0x10] sm:$0xff]  ;;  %v76_v24 = vld [vmem:[%s6794_s7] sm:$0xff]  ;;  %vm649_vm0 = vcmask 261120   ;;  %s3991_s18 = sld [smem:[#allocation8 + $0x1]]  ;;  %vm4574_vm10 = vmmov 0  }
  0x2d   :  { %v4637_v2 = vshrl.u32 %v6797_v0, 7  ;;  %v79_v27 = vld [vmem:[%s6794_s7 + $0x18] sm:$0xff]  ;;  %v4742_v48 = vld [vmem:[%s6789_s2] sm:$0x3]  ;;  %vm1439_vm11 = vcmask 130112   ;;  %vm1446_vm12 = vcmask 195712  }
  0x2e   :  { %6865 = vst [vmem:[#allocation30_spill] sm:$0xff] %v4742_v48  ;;  %v75_v54 = vld [vmem:[%s6793_s6] sm:$0x3]  ;;  %vm1453_vm13 = vcmask 261312   ;;  %vm1460_vm14 = vcmask 326912   ;;  %vm1467_vm15 = vcmask 392512  }
  0x2f   :  { %6849 = vst [vmem:[#allocation14_spill] sm:$0xff] %v4637_v2  ;;  %v4645_v4 = vsub.s32 0, %v4637_v2  ;;  %v4650_v7 = vsub.s32 1, %v4637_v2 }
  0x31   :  { %6850 = vst [vmem:[#allocation15_spill] sm:$0xff] %v4645_v4  ;;  %v84_v5 = vrot.slane %v4642_v3, %v4645_v4  ;;  %6851 = vst [vmem:[#allocation16_spill] sm:$0xff] %v4650_v7  ;;  %v151_v8 = vrot.slane %v4642_v3, %v4650_v7  ;;  %v361_v10 = vrot.slane %v4657_v9, %v4645_v4 }
  0x32   :  { %v428_v13 = vrot.slane %v4657_v9, %v4650_v7  ;;  %v1832_v49 = vrot.slane %v4742_v48, %v4645_v4  ;;  %v4758_v55 = vrot.slane %v75_v54, %v4650_v7  ;;  %v4765_v58 = vrot.slane %v75_v54, %v4645_v4 }
  0x33   :  { %94 = vbcast.lane.b32.xlu1 %v84_v5, 272  ;;  %86 = vbcast.lane.b32.xlu0 %v84_v5, 256 }
  0x37   :  { %98 = vbcast.lane.b32.xlu1 %v84_v5, 280  ;;  %90 = vbcast.lane.b32.xlu0 %v84_v5, 264 }
  0x3b   :  { %106 = vbcast.lane.b32.xlu1 %v84_v5, 296  ;;  %102 = vbcast.lane.b32.xlu0 %v84_v5, 288 }
  0x3f   :  { %114 = vbcast.lane.b32.xlu1 %v84_v5, 312  ;;  %110 = vbcast.lane.b32.xlu0 %v84_v5, 304 }
  0x43   :  { %122 = vbcast.lane.b32.xlu1 %v84_v5, 328  ;;  %118 = vbcast.lane.b32.xlu0 %v84_v5, 320 }
  0x47   :  { %130 = vbcast.lane.b32.xlu1 %v84_v5, 344  ;;  %126 = vbcast.lane.b32.xlu0 %v84_v5, 336 }
  0x4b   :  { %138 = vbcast.lane.b32.xlu1 %v84_v5, 360  ;;  %134 = vbcast.lane.b32.xlu0 %v84_v5, 352 }
  0x4f   :  { %146 = vbcast.lane.b32.xlu1 %v84_v5, 376  ;;  %142 = vbcast.lane.b32.xlu0 %v84_v5, 368 }
  0x53   :  { %157 = vbcast.lane.b32.xlu1 %v151_v8, 264  ;;  %153 = vbcast.lane.b32.xlu0 %v151_v8, 256 }
  0x57   :  { %165 = vbcast.lane.b32.xlu1 %v151_v8, 280  ;;  %161 = vbcast.lane.b32.xlu0 %v151_v8, 272 }
  0x5b   :  { %173 = vbcast.lane.b32.xlu1 %v151_v8, 296  ;;  %169 = vbcast.lane.b32.xlu0 %v151_v8, 288 }
  0x5f   :  { %181 = vbcast.lane.b32.xlu1 %v151_v8, 312  ;;  %177 = vbcast.lane.b32.xlu0 %v151_v8, 304 }
  0x63   :  { %189 = vbcast.lane.b32.xlu1 %v151_v8, 328  ;;  %185 = vbcast.lane.b32.xlu0 %v151_v8, 320 }
  0x67   :  { %197 = vbcast.lane.b32.xlu1 %v151_v8, 344  ;;  %193 = vbcast.lane.b32.xlu0 %v151_v8, 336 }
  0x6b   :  { %205 = vbcast.lane.b32.xlu1 %v151_v8, 360  ;;  %201 = vbcast.lane.b32.xlu0 %v151_v8, 352 }
  0x6f   :  { %213 = vbcast.lane.b32.xlu1 %v151_v8, 376  ;;  %209 = vbcast.lane.b32.xlu0 %v151_v8, 368 }
  0x73   :  { %367 = vbcast.lane.b32.xlu0 %v361_v10, 264  ;;  %313 = vperm.xlu1 %4215, %v77_v11  }
  0x77   :  { %375 = vbcast.lane.b32.xlu0 %v361_v10, 280  ;;  %318 = vperm.xlu1 %4215, %v78_v12  }
  0x7b   :  { %383 = vbcast.lane.b32.xlu0 %v361_v10, 296  ;;  %363 = vbcast.lane.b32.xlu1 %v361_v10, 256 }
  0x7c   :  { %4216 = vset.pattern.permute.xlu1 %v4571_v6 }
  0x7f   :  { %391 = vbcast.lane.b32.xlu0 %v361_v10, 312  ;;  %371 = vbcast.lane.b32.xlu1 %v361_v10, 272 }
  0x83   :  { %399 = vbcast.lane.b32.xlu0 %v361_v10, 328  ;;  %379 = vbcast.lane.b32.xlu1 %v361_v10, 288 }
  0x87   :  { %407 = vbcast.lane.b32.xlu0 %v361_v10, 344  ;;  %387 = vbcast.lane.b32.xlu1 %v361_v10, 304 }
  0x8b   :  { %415 = vbcast.lane.b32.xlu0 %v361_v10, 360  ;;  %395 = vbcast.lane.b32.xlu1 %v361_v10, 320 }
  0x8f   :  { %423 = vbcast.lane.b32.xlu0 %v361_v10, 376  ;;  %403 = vbcast.lane.b32.xlu1 %v361_v10, 336 }
  0x93   :  { %434 = vbcast.lane.b32.xlu0 %v428_v13, 264  ;;  %411 = vbcast.lane.b32.xlu1 %v361_v10, 352 }
  0x97   :  { %442 = vbcast.lane.b32.xlu0 %v428_v13, 280  ;;  %419 = vbcast.lane.b32.xlu1 %v361_v10, 368 }
  0x9b   :  { %450 = vbcast.lane.b32.xlu0 %v428_v13, 296  ;;  %430 = vbcast.lane.b32.xlu1 %v428_v13, 256 }
  0x9f   :  { %458 = vbcast.lane.b32.xlu0 %v428_v13, 312  ;;  %438 = vbcast.lane.b32.xlu1 %v428_v13, 272 }
  0xa3   :  { %466 = vbcast.lane.b32.xlu0 %v428_v13, 328  ;;  %446 = vbcast.lane.b32.xlu1 %v428_v13, 288 }
  0xa5   :  { %v4669_v14 = vpop.permute.xlu1 %94  ;;  %v4671_v15 = vpop.permute.xlu0 %86 }
  0xa6   :  { %v219_v62 = vmul.f32 %v4765_v58, %v4671_v15 }
  0xa7   :  { %474 = vbcast.lane.b32.xlu0 %v428_v13, 344  ;;  %454 = vbcast.lane.b32.xlu1 %v428_v13, 304 }
  0xa9   :  { %v4673_v16 = vpop.permute.xlu1 %98  ;;  %v4675_v17 = vpop.permute.xlu0 %90 }
  0xaa   :  { %v220_v63 = vmul.f32 %v4765_v58, %v4675_v17 }
  0xab   :  { %482 = vbcast.lane.b32.xlu0 %v428_v13, 360  ;;  %462 = vbcast.lane.b32.xlu1 %v428_v13, 320 }
  0xad   :  { %v4677_v18 = vpop.permute.xlu1 %106  ;;  %v4679_v19 = vpop.permute.xlu0 %102 }
  0xaf   :  { %490 = vbcast.lane.b32.xlu0 %v428_v13, 376  ;;  %470 = vbcast.lane.b32.xlu1 %v428_v13, 336 }
  0xb1   :  { %v4681_v20 = vpop.permute.xlu1 %114  ;;  %v4683_v21 = vpop.permute.xlu0 %110 }
  0xb3   :  { %588 = vperm.xlu0 %4217, %v77_v11   ;;  %478 = vbcast.lane.b32.xlu1 %v428_v13, 352 }
  0xb5   :  { %v4685_v22 = vpop.permute.xlu1 %122  ;;  %v4687_v23 = vpop.permute.xlu0 %118 }
  0xb6   :  { %6852 = vst [vmem:[#allocation17_spill] sm:$0xff] %v4685_v22 }
  0xb7   :  { %486 = vbcast.lane.b32.xlu1 %v428_v13, 368  ;;  %4218 = vset.pattern.permute.xlu0 %v6798_v1 }
  0xb8   :  { %308 = vperm.xlu0 %4218, %v76_v24  }
  0xb9   :  { %v4693_v25 = vpop.permute.xlu1 %130  ;;  %v4695_v26 = vpop.permute.xlu0 %126 }
  0xba   :  { %6853 = vst [vmem:[#allocation18_spill] sm:$0xff] %v4693_v25  ;;  %6854 = vst [vmem:[#allocation19_spill] sm:$0xff] %v4695_v26 }
  0xbb   :  { %584 = vperm.xlu1 %4216, %v76_v24  }
  0xbc   :  { %323 = vperm.xlu0 %4218, %v79_v27  }
  0xbd   :  { %v4700_v28 = vpop.permute.xlu1 %138  ;;  %v4702_v29 = vpop.permute.xlu0 %134 }
  0xbe   :  { %6855 = vst [vmem:[#allocation20_spill] sm:$0xff] %v4700_v28  ;;  %6856 = vst [vmem:[#allocation21_spill] sm:$0xff] %v4702_v29 }
  0xbf   :  { %592 = vperm.xlu1 %4216, %v78_v12  }
  0xc0   :  { %1838 = vbcast.lane.b32.xlu0 %v1832_v49, 264 }
  0xc1   :  { %v4704_v30 = vpop.permute.xlu1 %146  ;;  %v4706_v31 = vpop.permute.xlu0 %142 }
  0xc2   :  { %6857 = vst [vmem:[#allocation22_spill] sm:$0xff] %v4704_v30  ;;  %6858 = vst [vmem:[#allocation23_spill] sm:$0xff] %v4706_v31 }
  0xc3   :  { %596 = vperm.xlu1 %4216, %v79_v27   ;;  %v1899_v27 = vrot.slane %v4742_v48, %v4650_v7 }
  0xc4   :  { %1850 = vbcast.lane.b32.xlu0 %v1832_v49, 288 }
  0xc5   :  { %v4708_v32 = vpop.permute.xlu1 %157  ;;  %v4710_v33 = vpop.permute.xlu0 %153 }
  0xc6   :  { %v235_v0 = vmul.f32 %v4765_v58, %v4710_v33 }
  0xc7   :  { %4219 = vset.pattern.permute.xlu1 %v6798_v1 }
  0xc8   :  { %1834 = vbcast.lane.b32.xlu1 %v1832_v49, 256  ;;  %1858 = vbcast.lane.b32.xlu0 %v1832_v49, 304 }
  0xc9   :  { %v4713_v34 = vpop.permute.xlu1 %165  ;;  %v4715_v35 = vpop.permute.xlu0 %161 }
  0xcc   :  { %1842 = vbcast.lane.b32.xlu1 %v1832_v49, 272  ;;  %1866 = vbcast.lane.b32.xlu0 %v1832_v49, 320 }
  0xcd   :  { %v4717_v36 = vpop.permute.xlu1 %173  ;;  %v4719_v37 = vpop.permute.xlu0 %169 }
  0xd0   :  { %1846 = vbcast.lane.b32.xlu1 %v1832_v49, 280  ;;  %1874 = vbcast.lane.b32.xlu0 %v1832_v49, 336 }
  0xd1   :  { %v4721_v38 = vpop.permute.xlu0 %177  ;;  %v4723_v39 = vpop.permute.xlu1 %181 }
  0xd4   :  { %1854 = vbcast.lane.b32.xlu1 %v1832_v49, 296  ;;  %1882 = vbcast.lane.b32.xlu0 %v1832_v49, 352 }
  0xd5   :  { %v4725_v40 = vpop.permute.xlu0 %185  ;;  %v4727_v41 = vpop.permute.xlu1 %189 }
  0xd6   :  { %6859 = vst [vmem:[#allocation24_spill] sm:$0xff] %v4727_v41 }
  0xd8   :  { %1862 = vbcast.lane.b32.xlu1 %v1832_v49, 312  ;;  %1890 = vbcast.lane.b32.xlu0 %v1832_v49, 368 }
  0xd9   :  { %v4729_v42 = vpop.permute.xlu0 %193  ;;  %v4733_v44 = vpop.permute.xlu1 %197 }
  0xda   :  { %6860 = vst [vmem:[#allocation25_spill] sm:$0xff] %v4729_v42  ;;  %6862 = vst [vmem:[#allocation27_spill] sm:$0xff] %v4733_v44 }
  0xdc   :  { %1870 = vbcast.lane.b32.xlu1 %v1832_v49, 328  ;;  %1901 = vbcast.lane.b32.xlu0 %v1899_v27, 256 }
  0xdd   :  { %v4731_v43 = vpop.permute.xlu0 %201  ;;  %v4737_v46 = vpop.permute.xlu1 %205 }
  0xde   :  { %6861 = vst [vmem:[#allocation26_spill] sm:$0xff] %v4731_v43  ;;  %6864 = vst [vmem:[#allocation29_spill] sm:$0xff] %v4737_v46 }
  0xe0   :  { %1878 = vbcast.lane.b32.xlu1 %v1832_v49, 344  ;;  %1909 = vbcast.lane.b32.xlu0 %v1899_v27, 272 }
  0xe1   :  { %v4735_v45 = vpop.permute.xlu0 %209  ;;  %v4748_v51 = vpop.permute.xlu1 %213 }
  0xe2   :  { %6863 = vst [vmem:[#allocation28_spill] sm:$0xff] %v4735_v45  ;;  %6866 = vst [vmem:[#allocation31_spill] sm:$0xff] %v4748_v51 }
  0xe4   :  { %1886 = vbcast.lane.b32.xlu1 %v1832_v49, 360  ;;  %1917 = vbcast.lane.b32.xlu0 %v1899_v27, 288 }
  0xe5   :  { %v368_v47 = vpop.permute.xlu0 %367 }
  0xe6   :  { %v497_v59 = vmul.f32 %v4758_v55, %v368_v47 }
  0xe8   :  { %v529_v10 = vadd.f32 %v497_v59, %v220_v63  ;;  %1894 = vbcast.lane.b32.xlu1 %v1832_v49, 376  ;;  %1925 = vbcast.lane.b32.xlu0 %v1899_v27, 304 }
  0xe9   :  { %v4746_v50 = vpop.permute.xlu0 %375 }
  0xec   :  { %1905 = vbcast.lane.b32.xlu1 %v1899_v27, 264  ;;  %1933 = vbcast.lane.b32.xlu0 %v1899_v27, 320 }
  0xed   :  { %v4750_v52 = vpop.permute.xlu0 %383 }
  0xee   :  { %v4752_v53 = vpop.permute.xlu1 %313 }
  0xf0   :  { %1913 = vbcast.lane.b32.xlu1 %v1899_v27, 280  ;;  %1941 = vbcast.lane.b32.xlu0 %v1899_v27, 336 }
  0xf1   :  { %v4760_v56 = vpop.permute.xlu0 %391 }
  0xf2   :  { %v4762_v57 = vpop.permute.xlu1 %318 }
  0xf4   :  { %1921 = vbcast.lane.b32.xlu1 %v1899_v27, 296  ;;  %1949 = vbcast.lane.b32.xlu0 %v1899_v27, 352 }
  0xf5   :  { %v4768_v60 = vpop.permute.xlu0 %399 }
  0xf6   :  { %v364_v61 = vpop.permute.xlu1 %363 }
  0xf7   :  { %v496_v5 = vmul.f32 %v4758_v55, %v364_v61 }
  0xf8   :  { %1929 = vbcast.lane.b32.xlu1 %v1899_v27, 312  ;;  %1957 = vbcast.lane.b32.xlu0 %v1899_v27, 368 }
  0xf9   :  { %v4775_v6 = vpop.permute.xlu0 %407  ;;  %v528_v8 = vadd.f32 %v496_v5, %v219_v62 }
  0xfa   :  { %6867 = vst [vmem:[#allocation32_spill] sm:$0xff] %v4775_v6  ;;  %v4777_v11 = vpop.permute.xlu1 %371 }
  0xfb   :  { %v629_v12 = vpack.c.bf16 %v529_v10, %v528_v8 }
  0xfc   :  { %1937 = vbcast.lane.b32.xlu1 %v1899_v27, 328 }
  0xfd   :  { %v4779_v13 = vpop.permute.xlu0 %415  ;;  %4098 = vmatprep.mubr.msk.bf16.mxu0 %vm649_vm0, %v629_v12  ;;  %v236_v12 = vmul.f32 %v4765_v58, %v4708_v32  ;;  %v4820_v32 = vld [vmem:[%s6790_s3] sm:$0x3] }
  0xfe   :  { %6868 = vst [vmem:[#allocation33_spill] sm:$0xff] %v4779_v13  ;;  %v4782_v15 = vpop.permute.xlu1 %379  ;;  %6873 = vst [vmem:[#allocation38_spill] sm:$0xff] %v4820_v32 }
 0x100   :  { %1945 = vbcast.lane.b32.xlu1 %v1899_v27, 344 }
 0x101   :  { %v4784_v17 = vpop.permute.xlu0 %423 }
 0x102   :  { %6869 = vst [vmem:[#allocation34_spill] sm:$0xff] %v4784_v17  ;;  %v4786_v24 = vpop.permute.xlu1 %387 }
 0x104   :  { %1953 = vbcast.lane.b32.xlu1 %v1899_v27, 360 }
 0x105   :  { %v435_v47 = vpop.permute.xlu0 %434 }
 0x106   :  { %v4790_v54 = vpop.permute.xlu1 %395  ;;  %v513_v8 = vmul.f32 %v4758_v55, %v435_v47 }
 0x108   :  { %v545_v48 = vadd.f32 %v513_v8, %v236_v12  ;;  %1961 = vbcast.lane.b32.xlu1 %v1899_v27, 376 }
 0x109   :  { %v4792_v59 = vpop.permute.xlu0 %442 }
 0x10a   :  { %v4794_v61 = vpop.permute.xlu1 %403 }
 0x10b   :  { %6870 = vst [vmem:[#allocation35_spill] sm:$0xff] %v4794_v61 }
 0x10d   :  { %v4798_v63 = vpop.permute.xlu0 %450 }
 0x10e   :  { %v4796_v62 = vpop.permute.xlu1 %411 }
 0x10f   :  { %6871 = vst [vmem:[#allocation36_spill] sm:$0xff] %v4796_v62 }
 0x111   :  { %v4803_v49 = vpop.permute.xlu0 %458 }
 0x112   :  { %v4800_v5 = vpop.permute.xlu1 %419 }
 0x113   :  { %6872 = vst [vmem:[#allocation37_spill] sm:$0xff] %v4800_v5 }
 0x115   :  { %v4812_v17 = vpop.permute.xlu0 %466 }
 0x116   :  { %v431_v10 = vpop.permute.xlu1 %430 }
 0x117   :  { %v512_v1 = vmul.f32 %v4758_v55, %v431_v10 }
 0x119   :  { %v544_v7 = vadd.f32 %v512_v1, %v235_v0  ;;  %v4572_v0 = vmov 1966171168   ;;  %v4822_v33 = vpop.permute.xlu0 %474 }
 0x11a   :  { %v4810_v51 = vpop.permute.xlu1 %438  ;;  %v285_v1 = vunpack.c.l.s4 %v4572_v0  ;;  %6874 = vst [vmem:[#allocation39_spill] sm:$0xff] %v4822_v33 }
 0x11b   :  { %v637_v30 = vpack.c.bf16 %v545_v48, %v544_v7  ;;  %v4828_v48 = vrot.slane %v4820_v32, %v4645_v4 }
 0x11d   :  { %4118 = vmatprep.mubr.msk.bf16.mxu1 %vm649_vm0, %v637_v30  ;;  %2110 = vbcast.lane.b32.xlu0 %v4828_v48, 264  ;;  %v286_v30 = vunpack.c.0.s8 %v285_v1  ;;  %v4833_v10 = vpop.permute.xlu0 %482 }
 0x11e   :  { %v4815_v47 = vpop.permute.xlu1 %446  ;;  %6875 = vst [vmem:[#allocation40_spill] sm:$0xff] %v4833_v10  ;;  %2106 = vbcast.lane.b32.xlu1 %v4828_v48, 256 }
 0x11f   :  { %v4837_v12 = vsub.s32 %v286_v30, %v4637_v2 }
 0x121   :  { %2122 = vbcast.lane.b32.xlu0 %v4828_v48, 288  ;;  %6876 = vst [vmem:[#allocation41_spill] sm:$0xff] %v4837_v12  ;;  %v290_v32 = vrot.slane %v4642_v3, %v4837_v12  ;;  %v4845_v1 = vpop.permute.xlu0 %490  ;;  %v567_v45 = vrot.slane %v4657_v9, %v4837_v12 }
 0x122   :  { %v4824_v7 = vpop.permute.xlu1 %454  ;;  %6878 = vst [vmem:[#allocation43_spill] sm:$0xff] %v4845_v1  ;;  %2114 = vbcast.lane.b32.xlu1 %v4828_v48, 272 }
 0x123   :  { %v291_v30 = vcombine.high %v290_v32, %v290_v32  ;;  %v568_v2 = vcombine.high %v567_v45, %v567_v45  ;;  %v298_v3 = vrot.slane %v290_v32, %v4837_v12  ;;  %v575_v9 = vrot.slane %v567_v45, %v4837_v12 }
 0x125   :  { %2130 = vbcast.lane.b32.xlu0 %v4828_v48, 304  ;;  %v305_v1 = vrot.slane %v291_v30, %v4837_v12  ;;  %v582_v46 = vrot.slane %v568_v2, %v4837_v12  ;;  %v602_v10 = vrot.slane %v575_v9, %v4645_v4  ;;  %v221_v12 = vmul.f32 %v4765_v58, %v4669_v14 }
 0x126   :  { %v4831_v8 = vpop.permute.xlu1 %462  ;;  %2118 = vbcast.lane.b32.xlu1 %v4828_v48, 280 }
 0x127   :  { %v333_v25 = vrot.slane %v305_v1, %v4645_v4  ;;  %v606_v32 = vrot.slane %v582_v46, %v4645_v4 }
 0x129   :  { %2138 = vbcast.lane.b32.xlu0 %v4828_v48, 320  ;;  %v342_v1 = vmul.f32 %v333_v25, %v4762_v57  ;;  %v341_v61 = vmul.f32 %v333_v25, %v4752_v53 }
 0x12a   :  { %v4839_v0 = vpop.permute.xlu1 %470  ;;  %2126 = vbcast.lane.b32.xlu1 %v4828_v48, 296 }
 0x12b   :  { %6877 = vst [vmem:[#allocation42_spill] sm:$0xff] %v4839_v0 }
 0x12d   :  { %2146 = vbcast.lane.b32.xlu0 %v4828_v48, 336 }
 0x12e   :  { %v4849_v27 = vpop.permute.xlu1 %478  ;;  %v589_v31 = vpop.permute.xlu0 %588  ;;  %2134 = vbcast.lane.b32.xlu1 %v4828_v48, 312 }
 0x12f   :  { %6879 = vst [vmem:[#allocation44_spill] sm:$0xff] %v4849_v27  ;;  %v610_v9 = vmul.f32 %v602_v10, %v589_v31  ;;  %v614_v27 = vmul.f32 %v606_v32, %v589_v31  ;;  %v222_v31 = vmul.f32 %v4765_v58, %v4673_v16  ;;  %v500_v16 = vmul.f32 %v4758_v55, %v4782_v15 }
 0x131   :  { %2154 = vbcast.lane.b32.xlu0 %v4828_v48, 352 }
 0x132   :  { %v4853_v5 = vpop.permute.xlu1 %486  ;;  %2142 = vbcast.lane.b32.xlu1 %v4828_v48, 328 }
 0x133   :  { %6880 = vst [vmem:[#allocation45_spill] sm:$0xff] %v4853_v5  ;;  %v309_v28 = vpop.permute.xlu0 %308  ;;  %v329_v5 = vrot.slane %v298_v3, %v4645_v4 }
 0x134   :  { %v340_v43 = vmul.f32 %v333_v25, %v309_v28 }
 0x135   :  { %v336_v30 = vmul.f32 %v329_v5, %v309_v28  ;;  %v338_v3 = vmul.f32 %v329_v5, %v4762_v57  ;;  %v223_v57 = vmul.f32 %v4765_v58, %v4679_v19  ;;  %v516_v19 = vmul.f32 %v4758_v55, %v4815_v47 }
 0x136   :  { %v585_v44 = vpop.permute.xlu1 %584  ;;  %2150 = vbcast.lane.b32.xlu1 %v4828_v48, 344 }
 0x137   :  { %v609_v45 = vmul.f32 %v602_v10, %v585_v44  ;;  %v613_v33 = vmul.f32 %v606_v32, %v585_v44  ;;  %v324_v2 = vpop.permute.xlu0 %323  ;;  %v337_v44 = vmul.f32 %v329_v5, %v4752_v53 }
 0x138   :  { %v339_v4 = vmul.f32 %v329_v5, %v324_v2  ;;  %v343_v62 = vmul.f32 %v333_v25, %v324_v2  ;;  %v514_v25 = vmul.f32 %v4758_v55, %v4810_v51  ;;  %v515_v51 = vmul.f32 %v4758_v55, %v4792_v59 }
 0x139   :  { %v617_v29 = vadd.f32 %v609_v45, %v336_v30  ;;  %v621_v26 = vadd.f32 %v613_v33, %v340_v43  ;;  %v618_v53 = vadd.f32 %v610_v9, %v337_v44  ;;  %v622_v43 = vadd.f32 %v614_v27, %v341_v61  ;;  %v6882_v9 = vld [vmem:[#allocation24_spill] sm:$0xff] }
 0x13a   :  { %v593_v13 = vpop.permute.xlu1 %592  ;;  %v225_v61 = vmul.f32 %v4765_v58, %v4683_v21  ;;  %v504_v21 = vmul.f32 %v4758_v55, %v4790_v54  ;;  %v241_v45 = vmul.f32 %v4765_v58, %v4721_v38  ;;  %v503_v2 = vmul.f32 %v4758_v55, %v4760_v56 }
 0x13b   :  { %v611_v6 = vmul.f32 %v602_v10, %v593_v13  ;;  %v615_v42 = vmul.f32 %v606_v32, %v593_v13  ;;  %v243_v54 = vmul.f32 %v4765_v58, %v4725_v40  ;;  %v226_v38 = vmul.f32 %v4765_v58, %v4681_v20 }
 0x13c   :  { %v242_v56 = vmul.f32 %v4765_v58, %v4723_v39 }
 0x13d   :  { %v619_v14 = vadd.f32 %v611_v6, %v338_v3  ;;  %v623_v41 = vadd.f32 %v615_v42, %v342_v1  ;;  %v499_v42 = vmul.f32 %v4758_v55, %v4746_v50  ;;  %v501_v50 = vmul.f32 %v4758_v55, %v4750_v52  ;;  %v6881_v1 = vld [vmem:[#allocation17_spill] sm:$0xff] }
 0x13e   :  { %v597_v46 = vpop.permute.xlu1 %596  ;;  %v517_v6 = vmul.f32 %v4758_v55, %v4798_v63  ;;  %v228_v40 = vmul.f32 %v4765_v58, %v6881_v1 }
 0x13f   :  { %v612_v28 = vmul.f32 %v602_v10, %v597_v46  ;;  %v616_v0 = vmul.f32 %v606_v32, %v597_v46  ;;  %v498_v10 = vmul.f32 %v4758_v55, %v4777_v11  ;;  %v238_v11 = vmul.f32 %v4765_v58, %v4713_v34 }
 0x140   :  { %v227_v34 = vmul.f32 %v4765_v58, %v4687_v23  ;;  %v520_v23 = vmul.f32 %v4758_v55, %v4831_v8  ;;  %v521_v8 = vmul.f32 %v4758_v55, %v4812_v17 }
 0x141   :  { %v620_v13 = vadd.f32 %v612_v28, %v339_v4  ;;  %v624_v22 = vadd.f32 %v616_v0, %v343_v62  ;;  %v237_v4 = vmul.f32 %v4765_v58, %v4715_v35  ;;  %v239_v35 = vmul.f32 %v4765_v58, %v4719_v37 }
 0x142   :  { %v530_v15 = vadd.f32 %v498_v10, %v221_v12  ;;  %v532_v37 = vadd.f32 %v500_v16, %v223_v57  ;;  %v531_v62 = vadd.f32 %v499_v42, %v222_v31  ;;  %v547_v63 = vadd.f32 %v515_v51, %v238_v11  ;;  %v6884_v31 = vld [vmem:[#allocation21_spill] sm:$0xff]  ;;  %v6887_v42 = vld [vmem:[#allocation36_spill] sm:$0xff]  ;;  %v6891_v11 = vld [vmem:[#allocation39_spill] sm:$0xff] }
 0x143   :  { %v646_v5 = vpack.c.bf16 %v620_v13, %v619_v14  ;;  %v648_v33 = vpack.c.bf16 %v624_v22, %v623_v41  ;;  %v645_v22 = vpack.c.bf16 %v618_v53, %v617_v29  ;;  %v647_v41 = vpack.c.bf16 %v622_v43, %v621_v26  ;;  %v6883_v14 = vld [vmem:[#allocation19_spill] sm:$0xff]  ;;  %v6888_v51 = vld [vmem:[#allocation44_spill] sm:$0xff] }
 0x144   :  { %v546_v59 = vadd.f32 %v514_v25, %v237_v4  ;;  %v224_v26 = vmul.f32 %v4765_v58, %v4677_v18  ;;  %v240_v29 = vmul.f32 %v4765_v58, %v4717_v36  ;;  %v548_v52 = vadd.f32 %v516_v19, %v239_v35  ;;  %v6885_v25 = vld [vmem:[#allocation35_spill] sm:$0xff] }
 0x145   :  { %4094 = vmatprep.subr.bf16.mxu0 %v646_v5  ;;  %4114 = vmatprep.subr.bf16.mxu1 %v648_v33  ;;  %v630_v0 = vpack.c.bf16 %v531_v62, %v530_v15  ;;  %v502_v18 = vmul.f32 %v4758_v55, %v4786_v24  ;;  %v518_v36 = vmul.f32 %v4758_v55, %v4824_v7  ;;  %v6895_v62 = vld [vmem:[#allocation18_spill] sm:$0xff] }
 0x146   :  { %4095 = vmatpush3.bf16.msra.mxu0 %v646_v5  ;;  %4115 = vmatpush3.bf16.msra.mxu1 %v648_v33  ;;  %v533_v47 = vadd.f32 %v501_v50, %v224_v26  ;;  %v549_v12 = vadd.f32 %v517_v6, %v240_v29  ;;  %v638_v27 = vpack.c.bf16 %v547_v63, %v546_v59  ;;  %v6886_v5 = vld [vmem:[#allocation42_spill] sm:$0xff]  ;;  %v6890_v50 = vld [vmem:[#allocation32_spill] sm:$0xff]  ;;  %v6893_v29 = vld [vmem:[#allocation33_spill] sm:$0xff] }
 0x147   :  { %4096 = vmatprep.subr.bf16.mxu0 %v645_v22  ;;  %4116 = vmatprep.subr.bf16.mxu1 %v647_v41  ;;  %v519_v24 = vmul.f32 %v4758_v55, %v4803_v49  ;;  %v505_v7 = vmul.f32 %v4758_v55, %v4768_v60  ;;  %v534_v49 = vadd.f32 %v502_v18, %v225_v61  ;;  %v6892_v59 = vld [vmem:[#allocation26_spill] sm:$0xff]  ;;  %v6897_v18 = vld [vmem:[#allocation20_spill] sm:$0xff] }
 0x148   :  { %v631_v32 = vpack.c.bf16 %v533_v47, %v532_v37  ;;  %v639_v30 = vpack.c.bf16 %v549_v12, %v548_v52  ;;  %v550_v3 = vadd.f32 %v518_v36, %v241_v45  ;;  %v244_v60 = vmul.f32 %v4765_v58, %v6882_v9  ;;  %v6894_v52 = vld [vmem:[#allocation40_spill] sm:$0xff]  ;;  %v6898_v36 = vld [vmem:[#allocation29_spill] sm:$0xff] }
 0x149   :  { %v536_v46 = vadd.f32 %v504_v21, %v227_v34  ;;  %v552_v17 = vadd.f32 %v520_v23, %v243_v54  ;;  %v535_v28 = vadd.f32 %v503_v2, %v226_v38  ;;  %v551_v44 = vadd.f32 %v519_v24, %v242_v56  ;;  %v6896_v34 = vld [vmem:[#allocation27_spill] sm:$0xff]  ;;  %v6900_v56 = vld [vmem:[#allocation45_spill] sm:$0xff] }
 0x14a   :  { %4097 = vmatpush3.bf16.msra.mxu0 %v645_v22  ;;  %4117 = vmatpush3.bf16.msra.mxu1 %v647_v41  ;;  %v229_v13 = vmul.f32 %v4765_v58, %v6883_v14  ;;  %v231_v20 = vmul.f32 %v4765_v58, %v6884_v31  ;;  %v537_v57 = vadd.f32 %v505_v7, %v228_v40  ;;  %v6889_v41 = vld [vmem:[#allocation25_spill] sm:$0xff] }
 0x14b   :  { %v553_v39 = vadd.f32 %v521_v8, %v244_v60  ;;  %v632_v10 = vpack.c.bf16 %v535_v28, %v534_v49  ;;  %v506_v53 = vmul.f32 %v4758_v55, %v6885_v25  ;;  %v640_v43 = vpack.c.bf16 %v551_v44, %v550_v3  ;;  %v6899_v7 = vld [vmem:[#allocation37_spill] sm:$0xff]  ;;  %v6901_v3 = vld [vmem:[#allocation23_spill] sm:$0xff]  ;;  %v6902_v60 = vld [vmem:[#allocation28_spill] sm:$0xff] }
 0x14c   :  { %v522_v33 = vmul.f32 %v4758_v55, %v6886_v5  ;;  %v633_v4 = vpack.c.bf16 %v537_v57, %v536_v46  ;;  %v508_v16 = vmul.f32 %v4758_v55, %v6887_v42  ;;  %v524_v22 = vmul.f32 %v4758_v55, %v6888_v51  ;;  %v6904_v44 = vld [vmem:[#allocation43_spill] sm:$0xff]  ;;  %v892_v5 = vld [vmem:[%s6788_s1] sm:$0x3]  ;;  %s352_s1 = sld [smem:[#allocation8]] }
 0x14d   :  { %4099 = vmatmul.mubr.msk.bf16.vlgmr.msra.gmra.mxu0 %vm649_vm0, %v630_v0  ;;  %4119 = vmatmul.mubr.msk.bf16.vlgmr.msra.gmra.mxu1 %vm649_vm0, %v638_v27  ;;  %v641_v19 = vpack.c.bf16 %v553_v39, %v552_v17  ;;  %v245_v35 = vmul.f32 %v4765_v58, %v6889_v41  ;;  %v507_v6 = vmul.f32 %v4758_v55, %v6890_v50  ;;  %v6903_v17 = vld [vmem:[#allocation34_spill] sm:$0xff]  ;;  %vm893_vm1 = vcmp.gt.f32.partialorder %v892_v5, 0.0  ;;  %v6908_v42 = vld [vmem:[#allocation41_spill] sm:$0xff] }
 0x14e   :  { %4102 = vmatprep.mubr.msk.bf16.mxu0 %vm649_vm0, %v631_v32  ;;  %4122 = vmatprep.mubr.msk.bf16.mxu1 %vm649_vm0, %v639_v30  ;;  %v523_v15 = vmul.f32 %v4758_v55, %v6891_v11  ;;  %v247_v26 = vmul.f32 %v4765_v58, %v6892_v59  ;;  %v509_v37 = vmul.f32 %v4758_v55, %v6893_v29  ;;  %v5011_v11 = vpop.permute.xlu1 %1834 }
 0x14f   :  { %v525_v61 = vmul.f32 %v4758_v55, %v6894_v52  ;;  %v230_v63 = vmul.f32 %v4765_v58, %v6895_v62  ;;  %v246_v47 = vmul.f32 %v4765_v58, %v6896_v34  ;;  %v538_v12 = vadd.f32 %v506_v53, %v229_v13  ;;  %v6905_v13 = vld [vmem:[#allocation22_spill] sm:$0xff] }
 0x150   :  { %v554_v0 = vadd.f32 %v522_v33, %v245_v35  ;;  %v232_v27 = vmul.f32 %v4765_v58, %v6897_v18  ;;  %v248_v32 = vmul.f32 %v4765_v58, %v6898_v36  ;;  %v540_v21 = vadd.f32 %v508_v16, %v231_v20  ;;  %v6906_v20 = vld [vmem:[#allocation31_spill] sm:$0xff] }
 0x151   :  { %v556_v30 = vadd.f32 %v524_v22, %v247_v26  ;;  %v539_v23 = vadd.f32 %v507_v6, %v230_v63  ;;  %v555_v45 = vadd.f32 %v523_v15, %v246_v47  ;;  %v510_v8 = vmul.f32 %v4758_v55, %v6899_v7  ;;  %v6909_v35 = vld [vmem:[#allocation15_spill] sm:$0xff] }
 0x152   :  { %v541_v2 = vadd.f32 %v509_v37, %v232_v27  ;;  %v557_v24 = vadd.f32 %v525_v61, %v248_v32  ;;  %v526_v49 = vmul.f32 %v4758_v55, %v6900_v56  ;;  %v233_v1 = vmul.f32 %v4765_v58, %v6901_v3  ;;  %v5029_v61 = vpop.permute.xlu1 %1842 }
 0x153   :  { %v634_v54 = vpack.c.bf16 %v539_v23, %v538_v12  ;;  %v642_v38 = vpack.c.bf16 %v555_v45, %v554_v0  ;;  %v249_v46 = vmul.f32 %v4765_v58, %v6902_v60  ;;  %v511_v28 = vmul.f32 %v4758_v55, %v6903_v17 }
 0x154   :  { %v635_v40 = vpack.c.bf16 %v541_v2, %v540_v21  ;;  %v643_v9 = vpack.c.bf16 %v557_v24, %v556_v30  ;;  %v527_v14 = vmul.f32 %v4758_v55, %v6904_v44  ;;  %v234_v31 = vmul.f32 %v4765_v58, %v6905_v13 }
 0x155   :  { %4103 = vmatmul.mubr.msk.bf16.gmra.mxu0 %vm649_vm0, %v632_v10  ;;  %4123 = vmatmul.mubr.msk.bf16.gmra.mxu1 %vm649_vm0, %v640_v43  ;;  %v250_v57 = vmul.f32 %v4765_v58, %v6906_v20  ;;  %v542_v39 = vadd.f32 %v510_v8, %v233_v1  ;;  %v558_v10 = vadd.f32 %v526_v49, %v249_v46  ;;  %v6907_v33 = vmov 0  }
 0x156   :  { %4106 = vmatprep.mubr.msk.bf16.mxu0 %vm649_vm0, %v633_v4  ;;  %4126 = vmatprep.mubr.msk.bf16.mxu1 %vm649_vm0, %v641_v19  ;;  %v543_v25 = vadd.f32 %v511_v28, %v234_v31  ;;  %v894_v4 = vsel %vm893_vm1, 1, %v6907_v33  ;;  %v5043_v27 = vpop.permute.xlu1 %1846  ;;  %vm1481_vm1 = vcmask 523712  }
 0x157   :  { %v559_v53 = vadd.f32 %v527_v14, %v250_v57  ;;  %v901_v16 = vrot.slane %v894_v4, %v6908_v42 }
 0x158   :  { %v636_v43 = vpack.c.bf16 %v543_v25, %v542_v39 }
 0x159   :  { %v644_v55 = vpack.c.bf16 %v559_v53, %v558_v10  ;;  %v902_v58 = vcombine.high %v901_v16, %v901_v16  ;;  %v909_v19 = vrot.slane %v901_v16, %v6908_v42 }
 0x15a   :  { %v5063_v2 = vpop.permute.xlu1 %1854 }
 0x15b   :  { %v916_v51 = vrot.slane %v902_v58, %v6908_v42  ;;  %vm917_vm2 = vcmp.ne.s32.totalorder %v909_v19, 0 }
 0x15c   :  { %v919_v22 = vsel %vm917_vm2, 1, %v6907_v33  ;;  %vm1488_vm2 = vcmask 589312  }
 0x15d   :  { %4107 = vmatmul.mubr.msk.bf16.gmra.mxu0 %vm649_vm0, %v634_v54  ;;  %4127 = vmatmul.mubr.msk.bf16.gmra.mxu1 %vm649_vm0, %v642_v38  ;;  %vm918_vm3 = vcmp.ne.s32.totalorder %v916_v51, 0  ;;  %v924_v50 = vrot.slane %v919_v22, %v6909_v35 }
 0x15e   :  { %4110 = vmatprep.mubr.msk.bf16.mxu0 %vm649_vm0, %v635_v40  ;;  %4130 = vmatprep.mubr.msk.bf16.mxu1 %vm649_vm0, %v643_v9  ;;  %v920_v41 = vsel %vm918_vm3, 1, %v6907_v33  ;;  %v5077_v49 = vpop.permute.xlu1 %1862  ;;  %vm1495_vm3 = vcmask 654912  }
 0x15f   :  { %v928_v6 = vrot.slane %v920_v41, %v6909_v35  ;;  %vm5013_vm4 = vcmp.eq.s32.totalorder %v924_v50, 1  ;;  %6914 = vst [vmem:[#allocation17_spill] sm:$0xff] %v5077_v49 }
 0x161   :  { %vm5017_vm5 = vcmp.eq.s32.totalorder %v928_v6, 1 }
 0x162   :  { %v5097_v17 = vpop.permute.xlu1 %1870 }
 0x163   :  { %6915 = vst [vmem:[#allocation24_spill] sm:$0xff] %v5097_v17 }
 0x165   :  { %4111 = vmatmul.mubr.msk.bf16.gmra.mxu0 %vm649_vm0, %v636_v43  ;;  %4131 = vmatmul.mubr.msk.bf16.gmra.mxu1 %vm649_vm0, %v644_v55  ;;  %vm1474_vm0 = vcmask 458112  }
 0x166   :  { %v5111_v57 = vpop.permute.xlu1 %1878 }
 0x167   :  { %6916 = vst [vmem:[#allocation19_spill] sm:$0xff] %v5111_v57 }
 0x16a   :  { %v5131_v5 = vpop.permute.xlu1 %1886 }
 0x16b   :  { %6917 = vst [vmem:[#allocation21_spill] sm:$0xff] %v5131_v5 }
 0x16e   :  { %v5145_v22 = vpop.permute.xlu1 %1894 }
 0x16f   :  { %6918 = vst [vmem:[#allocation35_spill] sm:$0xff] %v5145_v22 }
 0x20d   :  { %v4100_v26 = vpop.f32.mrf.mxu0  ;;  %v4120_v29 = vpop.f32.mrf.mxu1 }
 0x20e   :  { %v5023_v37 = vsel %vm5013_vm4, %v4100_v26, -1e+09  ;;  %v5027_v52 = vsel %vm5017_vm5, %v4120_v29, -1e+09  ;;  %v6919_v26 = vlaneseq }
 0x20f   :  { %999 = vmax.xlane.f32.xlu1 %v5027_v52  ;;  %v829_v62 = vpop.f32.mrf.mxu1  ;;  %967 = vmax.xlane.f32.xlu0 %v5023_v37  ;;  %v708_v63 = vpop.f32.mrf.mxu0 }
 0x210   :  { %v5035_v47 = vsel %vm5017_vm5, %v829_v62, -1e+09  ;;  %v5039_v12 = vsel %vm5013_vm4, %v708_v63, -1e+09  ;;  %v5158_v29 = vand.u32 127, %v6919_v26  ;;  %v6931_v26 = vld [vmem:[#allocation16_spill] sm:$0xff] }
 0x211   :  { %v4101_v34 = vpop.f32.mrf.mxu0  ;;  %v4121_v0 = vpop.f32.mrf.mxu1 }
 0x212   :  { %v5047_v36 = vsel %vm5013_vm4, %v4101_v34, -1e+09  ;;  %v5057_v23 = vsel %vm5017_vm5, %v4121_v0, -1e+09  ;;  %v5168_v34 = vpop.permute.xlu1 %1905  ;;  %v5170_v0 = vpop.permute.xlu0 %1838 }
 0x213   :  { %995 = vmax.xlane.f32.xlu1 %v5035_v47  ;;  %963 = vmax.xlane.f32.xlu0 %v5039_v12  ;;  %v711_v18 = vpop.f32.mrf.mxu0  ;;  %v832_v21 = vpop.f32.mrf.mxu1  ;;  %6920 = vst [vmem:[#allocation42_spill] sm:$0xff] %v5168_v34  ;;  %6921 = vst [vmem:[#allocation36_spill] sm:$0xff] %v5170_v0 }
 0x214   :  { %v5051_v32 = vsel %vm5013_vm4, %v711_v18, -1e+09  ;;  %v5069_v7 = vsel %vm5017_vm5, %v832_v21, -1e+09  ;;  %v6922_v21 = vld [vmem:[#allocation30_spill] sm:$0xff] }
 0x215   :  { %v4104_v30 = vpop.f32.mrf.mxu0  ;;  %v4124_v24 = vpop.f32.mrf.mxu1 }
 0x216   :  { %v5061_v45 = vsel %vm5013_vm4, %v4104_v30, -1e+09  ;;  %v5073_v8 = vsel %vm5017_vm5, %v4124_v24, -1e+09  ;;  %v2771_v30 = vsub.s32 %v5158_v29, %v6922_v21 }
 0x217   :  { %969 = vmax.xlane.f32.xlu0 %v5047_v36  ;;  %965 = vmax.xlane.f32.xlu1 %v5051_v32  ;;  %v724_v54 = vpop.f32.mrf.mxu0  ;;  %v845_v38 = vpop.f32.mrf.mxu1 }
 0x218   :  { %v5081_v3 = vsel %vm5013_vm4, %v724_v54, -1e+09  ;;  %v5091_v60 = vsel %vm5017_vm5, %v845_v38, -1e+09  ;;  %vm2772_vm6 = vcmp.gt.s32.totalorder %v2771_v30, 0  ;;  %v5181_v38 = vpop.permute.xlu1 %1913 }
 0x219   :  { %v4105_v56 = vpop.f32.mrf.mxu0  ;;  %v4125_v40 = vpop.f32.mrf.mxu1  ;;  %6923 = vst [vmem:[#allocation44_spill] sm:$0xff] %v5181_v38 }
 0x21a   :  { %v5085_v1 = vsel %vm5013_vm4, %v4105_v56, -1e+09  ;;  %v5095_v46 = vsel %vm5017_vm5, %v4125_v40, -1e+09  ;;  %v5183_v56 = vpop.permute.xlu0 %1850 }
 0x21b   :  { %1001 = vmax.xlane.f32.xlu0 %v5057_v23  ;;  %975 = vmax.xlane.f32.xlu1 %v5061_v45  ;;  %v727_v9 = vpop.f32.mrf.mxu0  ;;  %v848_v28 = vpop.f32.mrf.mxu1  ;;  %6924 = vst [vmem:[#allocation25_spill] sm:$0xff] %v5183_v56 }
 0x21c   :  { %v5103_v14 = vsel %vm5013_vm4, %v727_v9, -1e+09  ;;  %v5115_v39 = vsel %vm5017_vm5, %v848_v28, -1e+09  ;;  %v2773_v9 = vsel %vm2772_vm6, %v2771_v30, 0  ;;  %v5190_v28 = vpop.permute.xlu1 %1921  ;;  %vm1516_vm6 = vcmask 851712  }
 0x21d   :  { %v4108_v44 = vpop.f32.mrf.mxu0  ;;  %v4128_v31 = vpop.f32.mrf.mxu1  ;;  %vm2774_vm7 = vcmp.lt.s32.totalorder %v2773_v9, 7  ;;  %6925 = vst [vmem:[#allocation32_spill] sm:$0xff] %v5190_v28 }
 0x21e   :  { %v5107_v13 = vsel %vm5013_vm4, %v4108_v44, -1e+09  ;;  %v5119_v10 = vsel %vm5017_vm5, %v4128_v31, -1e+09  ;;  %v5192_v44 = vpop.permute.xlu0 %1858  ;;  %v2775_v31 = vsel %vm2774_vm7, %v2773_v9, 7  ;;  %vm6844_vm7 = vcmask 917312  }
 0x21f   :  { %997 = vmax.xlane.f32.xlu0 %v5069_v7  ;;  %1007 = vmax.xlane.f32.xlu1 %v5073_v8  ;;  %v740_v20 = vpop.f32.mrf.mxu0  ;;  %v861_v25 = vpop.f32.mrf.mxu1  ;;  %6926 = vst [vmem:[#allocation39_spill] sm:$0xff] %v5192_v44 }
 0x220   :  { %v5125_v43 = vsel %vm5013_vm4, %v740_v20, -1e+09  ;;  %v5137_v16 = vsel %vm5017_vm5, %v861_v25, -1e+09  ;;  %v2776_v20 = vcvt.s32.f32 %v2775_v31  ;;  %v5194_v25 = vpop.permute.xlu1 %1929 }
 0x221   :  { %v4109_v53 = vpop.f32.mrf.mxu0  ;;  %v4129_v33 = vpop.f32.mrf.mxu1  ;;  %6927 = vst [vmem:[#allocation26_spill] sm:$0xff] %v5194_v25 }
 0x222   :  { %v5129_v55 = vsel %vm5013_vm4, %v4109_v53, -1e+09  ;;  %v5141_v58 = vsel %vm5017_vm5, %v4129_v33, -1e+09  ;;  %v5196_v53 = vpop.permute.xlu0 %1866  ;;  %v2783_v33 = vmul.f32 0.14285715, %v2776_v20 }
 0x223   :  { %971 = vmax.xlane.f32.xlu1 %v5081_v3  ;;  %977 = vmax.xlane.f32.xlu0 %v5085_v1  ;;  %v743_v4 = vpop.f32.mrf.mxu0  ;;  %v864_v19 = vpop.f32.mrf.mxu1  ;;  %6928 = vst [vmem:[#allocation33_spill] sm:$0xff] %v5196_v53 }
 0x224   :  { %v5149_v41 = vsel %vm5013_vm4, %v743_v4, -1e+09  ;;  %v5162_v62 = vsel %vm5017_vm5, %v864_v19, -1e+09  ;;  %v5199_v4 = vpop.permute.xlu1 %1937 }
 0x225   :  { %v4112_v51 = vpop.f32.mrf.mxu0  ;;  %v4132_v6 = vpop.f32.mrf.mxu1  ;;  %6929 = vst [vmem:[#allocation40_spill] sm:$0xff] %v5199_v4 }
 0x226   :  { %v5153_v50 = vsel %vm5013_vm4, %v4112_v51, -1e+09  ;;  %v5166_v63 = vsel %vm5017_vm5, %v4132_v6, -1e+09  ;;  %v5201_v19 = vpop.permute.xlu0 %1874  ;;  %v2784_v51 = vsub.f32 1.0, %v2783_v33 }
 0x227   :  { %1003 = vmax.xlane.f32.xlu1 %v5091_v60  ;;  %1009 = vmax.xlane.f32.xlu0 %v5095_v46  ;;  %v756_v18 = vpop.f32.mrf.mxu0  ;;  %v877_v54 = vpop.f32.mrf.mxu1  ;;  %6930 = vst [vmem:[#allocation18_spill] sm:$0xff] %v5201_v19 }
 0x228   :  { %v5178_v24 = vsel %vm5013_vm4, %v756_v18, -1e+09  ;;  %v5187_v40 = vsel %vm5017_vm5, %v877_v54, -1e+09  ;;  %v2785_v6 = vmul.f32 20.0, %v2784_v51  ;;  %v6932_v18 = vld [vmem:[#allocation38_spill] sm:$0xff]  ;;  %v5209_v30 = vpop.permute.xlu1 %1945 }
 0x229   :  { %v5207_v21 = vrot.slane %v6932_v18, %v6931_v26  ;;  %6933 = vst [vmem:[#allocation27_spill] sm:$0xff] %v5209_v30 }
 0x22a   :  { %v5211_v54 = vpop.permute.xlu0 %1882  ;;  %v2786_v9 = vmul.f32 1.442695, %v2785_v6  ;;  %v4113_v6 = vpop.f32.mrf.mxu0 }
 0x22b   :  { %973 = vmax.xlane.f32.xlu0 %v5103_v14  ;;  %983 = vmax.xlane.f32.xlu1 %v5107_v13  ;;  %6934 = vst [vmem:[#allocation20_spill] sm:$0xff] %v5211_v54  ;;  %v5232_v4 = vsel %vm5013_vm4, %v4113_v6, -1e+09 }
 0x22c   :  { %v5214_v31 = vpop.permute.xlu1 %1953  ;;  %4220 = vpow2.f32 %v2786_v9  ;;  %v4133_v9 = vpop.f32.mrf.mxu1 }
 0x22d   :  { %6935 = vst [vmem:[#allocation29_spill] sm:$0xff] %v5214_v31  ;;  %v5242_v38 = vsel %vm5017_vm5, %v4133_v9, -1e+09 }
 0x22e   :  { %v5216_v20 = vpop.permute.xlu0 %1890 }
 0x22f   :  { %1005 = vmax.xlane.f32.xlu0 %v5115_v39  ;;  %1015 = vmax.xlane.f32.xlu1 %v5119_v10  ;;  %6936 = vst [vmem:[#allocation37_spill] sm:$0xff] %v5216_v20 }
 0x232   :  { %v5222_v33 = vpop.permute.xlu0 %1901 }
 0x233   :  { %979 = vmax.xlane.f32.xlu1 %v5125_v43  ;;  %985 = vmax.xlane.f32.xlu0 %v5129_v55  ;;  %6938 = vst [vmem:[#allocation23_spill] sm:$0xff] %v5222_v33 }
 0x236   :  { %v5227_v30 = vpop.permute.xlu0 %1909 }
 0x237   :  { %1011 = vmax.xlane.f32.xlu1 %v5137_v16  ;;  %1017 = vmax.xlane.f32.xlu0 %v5141_v58  ;;  %6940 = vst [vmem:[#allocation34_spill] sm:$0xff] %v5227_v30  ;;  %v759_v30 = vpop.f32.mrf.mxu0 }
 0x238   :  { %v5252_v33 = vsel %vm5013_vm4, %v759_v30, -1e+09  ;;  %vm1502_vm4 = vcmask 720512  }
 0x239   :  { %v4221_v31 = vpop.eup %4220 }
 0x23a   :  { %v2788_v25 = vmul.f32 1.9427762e-09, %v4221_v31  ;;  %v5238_v28 = vpop.permute.xlu0 %1917 }
 0x23b   :  { %981 = vmax.xlane.f32.xlu0 %v5149_v41  ;;  %991 = vmax.xlane.f32.xlu1 %v5153_v50  ;;  %6942 = vst [vmem:[#allocation22_spill] sm:$0xff] %v5238_v28  ;;  %v880_v28 = vpop.f32.mrf.mxu1 }
 0x23c   :  { %v5246_v6 = vadd.f32 2.3283064e-10, %v2788_v25  ;;  %v5264_v25 = vsel %vm5017_vm5, %v880_v28, -1e+09  ;;  %vm1509_vm5 = vcmask 786112  }
 0x23e   :  { %v5254_v31 = vpop.permute.xlu0 %1925  ;;  %v5260_v9 = vrot.slane %v5246_v6, %v6909_v35 }
 0x23f   :  { %1013 = vmax.xlane.f32.xlu0 %v5162_v62  ;;  %1023 = vmax.xlane.f32.xlu1 %v5166_v63  ;;  %6944 = vst [vmem:[#allocation41_spill] sm:$0xff] %v5254_v31 }
 0x242   :  { %v5270_v30 = vpop.permute.xlu0 %1933 }
 0x243   :  { %987 = vmax.xlane.f32.xlu1 %v5178_v24  ;;  %6946 = vst [vmem:[#allocation30_spill] sm:$0xff] %v5270_v30 }
 0x247   :  { %1019 = vmax.xlane.f32.xlu1 %v5187_v40 }
 0x255   :  { %2162 = vbcast.lane.b32.xlu0 %v4828_v48, 368 }
 0x258   :  { %2158 = vbcast.lane.b32.xlu1 %v4828_v48, 360 }
 0x25c   :  { %2166 = vbcast.lane.b32.xlu1 %v4828_v48, 376  ;;  %v5220_v48 = vpop.permute.xlu1 %1961 }
 0x25d   :  { %6937 = vst [vmem:[#allocation45_spill] sm:$0xff] %v5220_v48 }
 0x260   :  { %2177 = vbcast.lane.b32.xlu1 %v5207_v21, 264  ;;  %v5225_v51 = vpop.permute.xlu1 %2106 }
 0x261   :  { %6939 = vst [vmem:[#allocation28_spill] sm:$0xff] %v5225_v51 }
 0x264   :  { %2185 = vbcast.lane.b32.xlu1 %v5207_v21, 280  ;;  %v5236_v48 = vpop.permute.xlu1 %2114 }
 0x265   :  { %6941 = vst [vmem:[#allocation43_spill] sm:$0xff] %v5236_v48 }
 0x268   :  { %2193 = vbcast.lane.b32.xlu1 %v5207_v21, 296  ;;  %v5248_v34 = vpop.permute.xlu1 %2118 }
 0x269   :  { %6943 = vst [vmem:[#allocation31_spill] sm:$0xff] %v5248_v34  ;;  %v5275_v34 = vpop.permute.xlu0 %1941 }
 0x26a   :  { %6948 = vst [vmem:[#allocation38_spill] sm:$0xff] %v5275_v34 }
 0x26c   :  { %2201 = vbcast.lane.b32.xlu1 %v5207_v21, 312  ;;  %v5268_v15 = vpop.permute.xlu1 %2126 }
 0x26d   :  { %6945 = vst [vmem:[#allocation15_spill] sm:$0xff] %v5268_v15  ;;  %v5281_v28 = vpop.permute.xlu0 %1949 }
 0x26e   :  { %6950 = vst [vmem:[#allocation47_spill] sm:$0xff] %v5281_v28  ;;  %v5297_v28 = vrot.slane %v5246_v6, %v6931_v26 }
 0x270   :  { %2209 = vbcast.lane.b32.xlu1 %v5207_v21, 328  ;;  %v5273_v31 = vpop.permute.xlu1 %2134 }
 0x271   :  { %6947 = vst [vmem:[#allocation16_spill] sm:$0xff] %v5273_v31  ;;  %v5286_v15 = vpop.permute.xlu0 %1957 }
 0x272   :  { %6952 = vst [vmem:[#allocation49_spill] sm:$0xff] %v5286_v15 }
 0x274   :  { %2217 = vbcast.lane.b32.xlu1 %v5207_v21, 344  ;;  %993 = vmax.xlane.f32.xlu0 %v5232_v4  ;;  %v5279_v59 = vpop.permute.xlu1 %2142 }
 0x275   :  { %6949 = vst [vmem:[#allocation46_spill] sm:$0xff] %v5279_v59  ;;  %v5291_v34 = vpop.permute.xlu0 %2110 }
 0x276   :  { %6953 = vst [vmem:[#allocation50_spill] sm:$0xff] %v5291_v34 }
 0x278   :  { %2225 = vbcast.lane.b32.xlu1 %v5207_v21, 360  ;;  %1025 = vmax.xlane.f32.xlu0 %v5242_v38  ;;  %v5284_v48 = vpop.permute.xlu1 %2150 }
 0x279   :  { %6951 = vst [vmem:[#allocation48_spill] sm:$0xff] %v5284_v48  ;;  %v5300_v15 = vpop.permute.xlu0 %2122 }
 0x27a   :  { %6954 = vst [vmem:[#allocation51_spill] sm:$0xff] %v5300_v15 }
 0x27c   :  { %2233 = vbcast.lane.b32.xlu1 %v5207_v21, 376  ;;  %989 = vmax.xlane.f32.xlu0 %v5252_v33 }
 0x27d   :  { %v5307_v34 = vpop.permute.xlu0 %2130 }
 0x27e   :  { %6955 = vst [vmem:[#allocation52_spill] sm:$0xff] %v5307_v34 }
 0x280   :  { %2807 = vbcast.lane.b32.xlu1 %v5260_v9, 264  ;;  %1021 = vmax.xlane.f32.xlu0 %v5264_v25 }
 0x281   :  { %v5312_v51 = vpop.permute.xlu0 %2138 }
 0x282   :  { %6956 = vst [vmem:[#allocation53_spill] sm:$0xff] %v5312_v51 }
 0x284   :  { %2815 = vbcast.lane.b32.xlu1 %v5260_v9, 280 }
 0x285   :  { %v5317_v22 = vpop.permute.xlu0 %2146 }
 0x286   :  { %6957 = vst [vmem:[#allocation54_spill] sm:$0xff] %v5317_v22 }
 0x288   :  { %2823 = vbcast.lane.b32.xlu1 %v5260_v9, 296 }
 0x289   :  { %v5321_v19 = vpop.permute.xlu0 %2154 }
 0x28a   :  { %6958 = vst [vmem:[#allocation55_spill] sm:$0xff] %v5321_v19 }
 0x28c   :  { %2831 = vbcast.lane.b32.xlu1 %v5260_v9, 312 }
 0x290   :  { %2839 = vbcast.lane.b32.xlu1 %v5260_v9, 328 }
 0x294   :  { %2847 = vbcast.lane.b32.xlu1 %v5260_v9, 344 }
 0x296   :  { %2173 = vbcast.lane.b32.xlu0 %v5207_v21, 256 }
 0x298   :  { %v1000_v30 = vpop.xlane.xlu1 %999  ;;  %2855 = vbcast.lane.b32.xlu1 %v5260_v9, 360  ;;  %v968_v51 = vpop.xlane.xlu0 %967 }
 0x299   :  { %v1029_v57 = vsub.f32 %v5023_v37, %v968_v51 }
 0x29a   :  { %2181 = vbcast.lane.b32.xlu0 %v5207_v21, 272 }
 0x29b   :  { %v1063_v22 = vmul.f32 1.442695, %v1029_v57 }
 0x29c   :  { %v996_v59 = vpop.xlane.xlu1 %995  ;;  %2863 = vbcast.lane.b32.xlu1 %v5260_v9, 376  ;;  %v964_v17 = vpop.xlane.xlu0 %963 }
 0x29d   :  { %4222 = vpow2.f32 %v1063_v22  ;;  %v1027_v56 = vsub.f32 %v5039_v12, %v964_v17  ;;  %v1043_v37 = vsub.f32 %v5035_v47, %v996_v59 }
 0x29e   :  { %2189 = vbcast.lane.b32.xlu0 %v5207_v21, 288 }
 0x29f   :  { %v1059_v51 = vmul.f32 1.442695, %v1027_v56 }
 0x2a0   :  { %v5302_v48 = vpop.xlane.xlu1 %965  ;;  %2874 = vbcast.lane.b32.xlu1 %v5297_v28, 264 }
 0x2a2   :  { %2197 = vbcast.lane.b32.xlu0 %v5207_v21, 304 }
 0x2a4   :  { %v976_v31 = vpop.xlane.xlu1 %975  ;;  %2882 = vbcast.lane.b32.xlu1 %v5297_v28, 280 }
 0x2a5   :  { %v1033_v57 = vsub.f32 %v5061_v45, %v976_v31  ;;  %v970_v31 = vpop.xlane.xlu0 %969 }
 0x2a6   :  { %2205 = vbcast.lane.b32.xlu0 %v5207_v21, 320 }
 0x2a7   :  { %v1071_v12 = vmul.f32 1.442695, %v1033_v57 }
 0x2a8   :  { %v1008_v20 = vpop.xlane.xlu1 %1007  ;;  %2890 = vbcast.lane.b32.xlu1 %v5297_v28, 296 }
 0x2a9   :  { %v1049_v17 = vsub.f32 %v5073_v8, %v1008_v20 }
 0x2aa   :  { %2213 = vbcast.lane.b32.xlu0 %v5207_v21, 336  ;;  %v5348_v47 = vpop.eup %4222 }
 0x2ab   :  { %v1103_v56 = vmul.f32 1.442695, %v1049_v17 }
 0x2ac   :  { %v972_v15 = vpop.xlane.xlu1 %971  ;;  %2898 = vbcast.lane.b32.xlu1 %v5297_v28, 312 }
 0x2ae   :  { %2221 = vbcast.lane.b32.xlu0 %v5207_v21, 352 }
 0x2b0   :  { %v1004_v54 = vpop.xlane.xlu1 %1003  ;;  %2906 = vbcast.lane.b32.xlu1 %v5297_v28, 328 }
 0x2b1   :  { %v1047_v20 = vsub.f32 %v5091_v60, %v1004_v54 }
 0x2b2   :  { %2229 = vbcast.lane.b32.xlu0 %v5207_v21, 368  ;;  %v1045_v21 = vsub.f32 %v5027_v52, %v1000_v30  ;;  %v1091_v52 = vmul.f32 1.442695, %v1043_v37 }
 0x2b3   :  { %v1099_v59 = vmul.f32 1.442695, %v1047_v20 }
 0x2b4   :  { %v984_v34 = vpop.xlane.xlu1 %983  ;;  %v1095_v19 = vmul.f32 1.442695, %v1045_v21 }
 0x2b5   :  { %v1037_v21 = vsub.f32 %v5107_v13, %v984_v34 }
 0x2b6   :  { %2803 = vbcast.lane.b32.xlu0 %v5260_v9, 256  ;;  %4224 = vpow2.f32 %v1095_v19  ;;  %v1031_v19 = vsub.f32 %v5081_v3, %v972_v15  ;;  %v5365_v15 = vpop.xlane.xlu0 %1001 }
 0x2b7   :  { %4226 = vpow2.f32 %v1059_v51  ;;  %v1079_v60 = vmul.f32 1.442695, %v1037_v21 }
 0x2b8   :  { %v5323_v5 = vpop.xlane.xlu1 %1015  ;;  %4228 = vpow2.f32 %v1091_v52  ;;  %v1067_v8 = vmul.f32 1.442695, %v1031_v19 }
 0x2b9   :  { %4230 = vpow2.f32 %v1071_v12  ;;  %v1053_v54 = vsub.f32 %v5119_v10, %v5323_v5 }
 0x2ba   :  { %2811 = vbcast.lane.b32.xlu0 %v5260_v9, 272  ;;  %4232 = vpow2.f32 %v1103_v56  ;;  %v5379_v57 = vpop.xlane.xlu0 %997 }
 0x2bb   :  { %4234 = vpow2.f32 %v1067_v8  ;;  %v1111_v13 = vmul.f32 1.442695, %v1053_v54 }
 0x2bc   :  { %v5326_v53 = vpop.xlane.xlu1 %979  ;;  %4236 = vpow2.f32 %v1099_v59 }
 0x2bd   :  { %4238 = vpow2.f32 %v1079_v60  ;;  %v1035_v34 = vsub.f32 %v5125_v43, %v5326_v53  ;;  %v2777_v43 = vsub.s32 %v6932_v18, %v5158_v29  ;;  %v1030_v18 = vsub.f32 %v5047_v36, %v970_v31 }
 0x2be   :  { %2819 = vbcast.lane.b32.xlu0 %v5260_v9, 288  ;;  %v5390_v5 = vpop.xlane.xlu0 %977  ;;  %4240 = vpow2.f32 %v1111_v13 }
 0x2bf   :  { %v1075_v17 = vmul.f32 1.442695, %v1035_v34  ;;  %vm2778_vm8 = vcmp.gt.s32.totalorder %v2777_v43, 0 }
 0x2c0   :  { %v5330_v44 = vpop.xlane.xlu1 %1011  ;;  %v2779_v54 = vsel %vm2778_vm8, %v2777_v43, 0  ;;  %vm6839_vm8 = vcmask 982912  }
 0x2c1   :  { %v1051_v56 = vsub.f32 %v5137_v16, %v5330_v44  ;;  %4242 = vpow2.f32 %v1075_v17  ;;  %vm2780_vm9 = vcmp.lt.s32.totalorder %v2779_v54, 7 }
 0x2c2   :  { %2827 = vbcast.lane.b32.xlu0 %v5260_v9, 304  ;;  %v1010_v21 = vpop.xlane.xlu0 %1009  ;;  %v2781_v36 = vsel %vm2780_vm9, %v2779_v54, 7  ;;  %vm6836_vm9 = vcmask 1048512  }
 0x2c3   :  { %v5353_v45 = vpop.eup %4224  ;;  %v1107_v53 = vmul.f32 1.442695, %v1051_v56  ;;  %v1065_v56 = vmul.f32 1.442695, %v1030_v18 }
 0x2c4   :  { %v5335_v49 = vpop.xlane.xlu1 %991 }
 0x2c5   :  { %v1041_v8 = vsub.f32 %v5153_v50, %v5335_v49  ;;  %4244 = vpow2.f32 %v1107_v53 }
 0x2c6   :  { %2835 = vbcast.lane.b32.xlu0 %v5260_v9, 320  ;;  %v974_v50 = vpop.xlane.xlu0 %973 }
 0x2c7   :  { %v1087_v16 = vmul.f32 1.442695, %v1041_v8 }
 0x2c8   :  { %v5340_v0 = vpop.xlane.xlu1 %1023 }
 0x2c9   :  { %v1057_v44 = vsub.f32 %v5166_v63, %v5340_v0  ;;  %4246 = vpow2.f32 %v1087_v16  ;;  %v1046_v63 = vsub.f32 %v5057_v23, %v5365_v15  ;;  %v2782_v23 = vcvt.s32.f32 %v2781_v36 }
 0x2ca   :  { %2843 = vbcast.lane.b32.xlu0 %v5260_v9, 336  ;;  %v1006_v8 = vpop.xlane.xlu0 %1005 }
 0x2cb   :  { %v1119_v13 = vmul.f32 1.442695, %v1057_v44  ;;  %v2790_v18 = vmul.f32 0.14285715, %v2782_v23 }
 0x2cc   :  { %v5345_v22 = vpop.xlane.xlu1 %987 }
 0x2cd   :  { %v1039_v34 = vsub.f32 %v5178_v24, %v5345_v22  ;;  %4248 = vpow2.f32 %v1119_v13  ;;  %v1028_v24 = vsub.f32 %v5051_v32, %v5302_v48  ;;  %v1097_v22 = vmul.f32 1.442695, %v1046_v63 }
 0x2ce   :  { %2851 = vbcast.lane.b32.xlu0 %v5260_v9, 352  ;;  %4250 = vpow2.f32 %v1065_v56  ;;  %v986_v32 = vpop.xlane.xlu0 %985  ;;  %v1034_v13 = vsub.f32 %v5085_v1, %v5390_v5  ;;  %v1050_v63 = vsub.f32 %v5095_v46, %v1010_v21 }
 0x2cf   :  { %v1083_v0 = vmul.f32 1.442695, %v1039_v34  ;;  %v1061_v44 = vmul.f32 1.442695, %v1028_v24  ;;  %v2791_v34 = vsub.f32 1.0, %v2790_v18  ;;  %v1032_v24 = vsub.f32 %v5103_v14, %v974_v50 }
 0x2d0   :  { %v5355_v30 = vpop.xlane.xlu1 %1019  ;;  %v1105_v5 = vmul.f32 1.442695, %v1050_v63 }
 0x2d1   :  { %v1055_v31 = vsub.f32 %v5187_v40, %v5355_v30  ;;  %4252 = vpow2.f32 %v1083_v0  ;;  %v1044_v40 = vsub.f32 %v5069_v7, %v5379_v57  ;;  %v1073_v57 = vmul.f32 1.442695, %v1034_v13 }
 0x2d2   :  { %2859 = vbcast.lane.b32.xlu0 %v5260_v9, 368  ;;  %v5360_v9 = vpop.eup %4226  ;;  %4254 = vpow2.f32 %v1097_v22  ;;  %v1018_v36 = vpop.xlane.xlu0 %1017 }
 0x2d3   :  { %v5369_v37 = vpop.eup %4228  ;;  %v1115_v15 = vmul.f32 1.442695, %v1055_v31  ;;  %v1093_v54 = vmul.f32 1.442695, %v1044_v40  ;;  %v2792_v31 = vmul.f32 20.0, %v2791_v34  ;;  %v1048_v40 = vsub.f32 %v5115_v39, %v1006_v8 }
 0x2d4   :  { %1127 = vadd.xlane.f32.xlu1 %v5348_v47  ;;  %v5363_v3 = vpop.permute.xlu1 %2158  ;;  %v5377_v52 = vpop.eup %4230  ;;  %v1054_v8 = vsub.f32 %v5141_v58, %v1018_v36 }
 0x2d5   :  { %v5385_v12 = vpop.eup %4232  ;;  %4256 = vpow2.f32 %v1115_v15  ;;  %v2793_v21 = vmul.f32 1.442695, %v2792_v31  ;;  %v1101_v50 = vmul.f32 1.442695, %v1048_v40 }
 0x2d6   :  { %2870 = vbcast.lane.b32.xlu0 %v5297_v28, 256  ;;  %v5395_v19 = vpop.eup %4234  ;;  %4258 = vpow2.f32 %v1061_v44  ;;  %v982_v46 = vpop.xlane.xlu0 %981  ;;  %v1069_v44 = vmul.f32 1.442695, %v1032_v24 }
 0x2d7   :  { %v5404_v59 = vpop.eup %4236  ;;  %4260 = vpow2.f32 %v1093_v54  ;;  %v1038_v54 = vsub.f32 %v5129_v55, %v986_v32  ;;  %v1036_v55 = vsub.f32 %v5149_v41, %v982_v46 }
 0x2d8   :  { %1159 = vadd.xlane.f32.xlu1 %v5353_v45  ;;  %v5375_v51 = vpop.permute.xlu1 %2166  ;;  %v5409_v60 = vpop.eup %4238  ;;  %4262 = vpow2.f32 %v1073_v57 }
 0x2d9   :  { %6959 = vst [vmem:[#allocation56_spill] sm:$0xff] %v5375_v51  ;;  %v5417_v17 = vpop.eup %4240  ;;  %4264 = vpow2.f32 %v1105_v5  ;;  %v1081_v39 = vmul.f32 1.442695, %v1038_v54  ;;  %v1113_v5 = vmul.f32 1.442695, %v1054_v8 }
 0x2da   :  { %2878 = vbcast.lane.b32.xlu0 %v5297_v28, 272  ;;  %v5426_v53 = vpop.eup %4242  ;;  %4266 = vpow2.f32 %v2793_v21  ;;  %v1014_v13 = vpop.xlane.xlu0 %1013  ;;  %v1077_v58 = vmul.f32 1.442695, %v1036_v55 }
 0x2db   :  { %v5431_v16 = vpop.eup %4244  ;;  %4268 = vpow2.f32 %v1069_v44  ;;  %v1052_v36 = vsub.f32 %v5162_v62, %v1014_v13 }
 0x2dc   :  { %1123 = vadd.xlane.f32.xlu1 %v5360_v9  ;;  %v5388_v10 = vpop.permute.xlu1 %2177  ;;  %v5438_v48 = vpop.eup %4246  ;;  %4270 = vpow2.f32 %v1101_v50 }
 0x2dd   :  { %6960 = vst [vmem:[#allocation57_spill] sm:$0xff] %v5388_v10  ;;  %v5445_v7 = vpop.eup %4248  ;;  %4272 = vpow2.f32 %v1081_v39  ;;  %v1109_v41 = vmul.f32 1.442695, %v1052_v36 }
 0x2de   :  { %2886 = vbcast.lane.b32.xlu0 %v5297_v28, 288  ;;  %v5448_v0 = vpop.eup %4250  ;;  %v5479_v31 = vpop.permute.xlu0 %2162  ;;  %4274 = vpow2.f32 %v1113_v5 }
 0x2df   :  { %v5452_v1 = vpop.eup %4252  ;;  %6969 = vst [vmem:[#allocation66_spill] sm:$0xff] %v5479_v31  ;;  %4276 = vpow2.f32 %v1077_v58 }
 0x2e0   :  { %1155 = vadd.xlane.f32.xlu1 %v5369_v37  ;;  %v5402_v20 = vpop.permute.xlu1 %2185  ;;  %v5455_v22 = vpop.eup %4254  ;;  %4278 = vpow2.f32 %v1109_v41 }
 0x2e1   :  { %6961 = vst [vmem:[#allocation58_spill] sm:$0xff] %v5402_v20 }
 0x2e2   :  { %2894 = vbcast.lane.b32.xlu0 %v5297_v28, 304  ;;  %v5461_v15 = vpop.eup %4256 }
 0x2e3   :  { %v5464_v18 = vpop.eup %4258 }
 0x2e4   :  { %1135 = vadd.xlane.f32.xlu1 %v5377_v52  ;;  %v5413_v49 = vpop.permute.xlu1 %2193  ;;  %v5471_v34 = vpop.eup %4260 }
 0x2e5   :  { %6962 = vst [vmem:[#allocation59_spill] sm:$0xff] %v5413_v49  ;;  %v5475_v57 = vpop.eup %4262 }
 0x2e6   :  { %2902 = vbcast.lane.b32.xlu0 %v5297_v28, 320  ;;  %v5483_v32 = vpop.eup %4264 }
 0x2e7   :  { %v4267_v21 = vpop.eup %4266 }
 0x2e8   :  { %1167 = vadd.xlane.f32.xlu1 %v5385_v12  ;;  %v5424_v43 = vpop.permute.xlu1 %2201  ;;  %v5489_v40 = vpop.eup %4268  ;;  %v2795_v50 = vmul.f32 1.9427762e-09, %v4267_v21 }
 0x2e9   :  { %6963 = vst [vmem:[#allocation60_spill] sm:$0xff] %v5424_v43  ;;  %v5493_v54 = vpop.eup %4270 }
 0x2ea   :  { %2910 = vbcast.lane.b32.xlu0 %v5297_v28, 336  ;;  %v2796_v8 = vadd.f32 2.3283064e-10, %v2795_v50  ;;  %v5499_v62 = vpop.eup %4272 }
 0x2eb   :  { %v5508_v21 = vpop.eup %4274 }
 0x2ec   :  { %1131 = vadd.xlane.f32.xlu1 %v5395_v19  ;;  %v5436_v30 = vpop.permute.xlu1 %2209  ;;  %v5504_v5 = vrot.slane %v2796_v8, %v6909_v35  ;;  %v5512_v36 = vpop.eup %4276 }
 0x2ed   :  { %6964 = vst [vmem:[#allocation61_spill] sm:$0xff] %v5436_v30  ;;  %v5518_v41 = vpop.eup %4278 }
 0x2f0   :  { %1163 = vadd.xlane.f32.xlu1 %v5404_v59  ;;  %v5443_v56 = vpop.permute.xlu1 %2217 }
 0x2f1   :  { %6965 = vst [vmem:[#allocation62_spill] sm:$0xff] %v5443_v56 }
 0x2f4   :  { %1143 = vadd.xlane.f32.xlu1 %v5409_v60  ;;  %v5458_v23 = vpop.permute.xlu1 %2225 }
 0x2f5   :  { %6966 = vst [vmem:[#allocation63_spill] sm:$0xff] %v5458_v23 }
 0x2f8   :  { %1175 = vadd.xlane.f32.xlu1 %v5417_v17  ;;  %v5468_v14 = vpop.permute.xlu1 %2233 }
 0x2f9   :  { %6967 = vst [vmem:[#allocation64_spill] sm:$0xff] %v5468_v14 }
 0x2fc   :  { %1139 = vadd.xlane.f32.xlu1 %v5426_v53  ;;  %v5477_v63 = vpop.permute.xlu1 %2807 }
 0x2fd   :  { %6968 = vst [vmem:[#allocation65_spill] sm:$0xff] %v5477_v63  ;;  %v994_v24 = vpop.xlane.xlu0 %993 }
 0x2fe   :  { %v1042_v43 = vsub.f32 %v5232_v4, %v994_v24 }
 0x300   :  { %1171 = vadd.xlane.f32.xlu1 %v5431_v16  ;;  %v5486_v44 = vpop.permute.xlu1 %2815  ;;  %v1089_v49 = vmul.f32 1.442695, %v1042_v43 }
 0x301   :  { %6970 = vst [vmem:[#allocation67_spill] sm:$0xff] %v5486_v44  ;;  %v1026_v46 = vpop.xlane.xlu0 %1025 }
 0x304   :  { %1151 = vadd.xlane.f32.xlu1 %v5438_v48  ;;  %v5495_v39 = vpop.permute.xlu1 %2823 }
 0x305   :  { %6971 = vst [vmem:[#allocation68_spill] sm:$0xff] %v5495_v39  ;;  %v990_v13 = vpop.xlane.xlu0 %989 }
 0x306   :  { %v1040_v4 = vsub.f32 %v5252_v33, %v990_v13 }
 0x308   :  { %1183 = vadd.xlane.f32.xlu1 %v5445_v7  ;;  %v5506_v55 = vpop.permute.xlu1 %2831 }
 0x309   :  { %1129 = vadd.xlane.f32.xlu0 %v5448_v0  ;;  %6972 = vst [vmem:[#allocation69_spill] sm:$0xff] %v5506_v55  ;;  %v1022_v58 = vpop.xlane.xlu0 %1021 }
 0x30a   :  { %v1056_v43 = vsub.f32 %v5264_v25, %v1022_v58 }
 0x30c   :  { %1147 = vadd.xlane.f32.xlu1 %v5452_v1  ;;  %v5514_v50 = vpop.permute.xlu1 %2839 }
 0x30d   :  { %1161 = vadd.xlane.f32.xlu0 %v5455_v22  ;;  %6973 = vst [vmem:[#allocation70_spill] sm:$0xff] %v5514_v50  ;;  %v5520_v39 = vpop.permute.xlu0 %2173 }
 0x30e   :  { %6974 = vst [vmem:[#allocation71_spill] sm:$0xff] %v5520_v39 }
 0x310   :  { %1179 = vadd.xlane.f32.xlu1 %v5461_v15  ;;  %v5524_v55 = vpop.permute.xlu1 %2847 }
 0x311   :  { %1125 = vadd.xlane.f32.xlu0 %v5464_v18  ;;  %6975 = vst [vmem:[#allocation72_spill] sm:$0xff] %v5524_v55  ;;  %v5527_v44 = vpop.permute.xlu0 %2181  ;;  %v5544_v55 = vrot.slane %v2796_v8, %v6931_v26 }
 0x312   :  { %6976 = vst [vmem:[#allocation73_spill] sm:$0xff] %v5527_v44 }
 0x314   :  { %v5529_v63 = vpop.permute.xlu1 %2855 }
 0x315   :  { %1157 = vadd.xlane.f32.xlu0 %v5471_v34  ;;  %6977 = vst [vmem:[#allocation74_spill] sm:$0xff] %v5529_v63  ;;  %v5532_v50 = vpop.permute.xlu0 %2189 }
 0x316   :  { %6978 = vst [vmem:[#allocation75_spill] sm:$0xff] %v5532_v50  ;;  %v1058_v50 = vsub.f32 %v5242_v38, %v1026_v46 }
 0x318   :  { %v5535_v14 = vpop.permute.xlu1 %2863 }
 0x319   :  { %1137 = vadd.xlane.f32.xlu0 %v5475_v57  ;;  %6979 = vst [vmem:[#allocation76_spill] sm:$0xff] %v5535_v14  ;;  %v5538_v23 = vpop.permute.xlu0 %2197 }
 0x31a   :  { %6980 = vst [vmem:[#allocation77_spill] sm:$0xff] %v5538_v23  ;;  %v3227_v23 = vadd.f32 %v2796_v8, %v5246_v6  ;;  %v1085_v6 = vmul.f32 1.442695, %v1040_v4 }
 0x31c   :  { %v5540_v56 = vpop.permute.xlu1 %2874  ;;  %4280 = vrcp.f32 %v3227_v23  ;;  %v1117_v23 = vmul.f32 1.442695, %v1056_v43 }
 0x31d   :  { %1169 = vadd.xlane.f32.xlu0 %v5483_v32  ;;  %6981 = vst [vmem:[#allocation78_spill] sm:$0xff] %v5540_v56  ;;  %v5547_v63 = vpop.permute.xlu0 %2205  ;;  %4282 = vpow2.f32 %v1089_v49 }
 0x31e   :  { %6982 = vst [vmem:[#allocation79_spill] sm:$0xff] %v5547_v63 }
 0x320   :  { %v5550_v30 = vpop.permute.xlu1 %2882 }
 0x321   :  { %2914 = vbcast.lane.b32.xlu1 %v5297_v28, 344  ;;  %1133 = vadd.xlane.f32.xlu0 %v5489_v40  ;;  %6983 = vst [vmem:[#allocation80_spill] sm:$0xff] %v5550_v30  ;;  %v5553_v14 = vpop.permute.xlu0 %2213 }
 0x322   :  { %6984 = vst [vmem:[#allocation81_spill] sm:$0xff] %v5553_v14  ;;  %v1121_v14 = vmul.f32 1.442695, %v1058_v50 }
 0x324   :  { %v5556_v56 = vpop.permute.xlu1 %2890  ;;  %4284 = vpow2.f32 %v1121_v14 }
 0x325   :  { %2922 = vbcast.lane.b32.xlu1 %v5297_v28, 360  ;;  %1165 = vadd.xlane.f32.xlu0 %v5493_v54  ;;  %6985 = vst [vmem:[#allocation82_spill] sm:$0xff] %v5556_v56  ;;  %v5561_v63 = vpop.permute.xlu0 %2221  ;;  %4286 = vpow2.f32 %v1085_v6 }
 0x326   :  { %6986 = vst [vmem:[#allocation83_spill] sm:$0xff] %v5561_v63  ;;  %4288 = vpow2.f32 %v1117_v23 }
 0x328   :  { %v5564_v30 = vpop.permute.xlu1 %2898 }
 0x329   :  { %2930 = vbcast.lane.b32.xlu1 %v5297_v28, 376  ;;  %1145 = vadd.xlane.f32.xlu0 %v5499_v62  ;;  %6987 = vst [vmem:[#allocation84_spill] sm:$0xff] %v5564_v30  ;;  %v5568_v24 = vpop.permute.xlu0 %2229  ;;  %v4281_v49 = vpop.eup %4280 }
 0x32a   :  { %6988 = vst [vmem:[#allocation85_spill] sm:$0xff] %v5568_v24  ;;  %v5577_v8 = vpop.eup %4282  ;;  %v5581_v14 = vrot.slane %v4281_v49, %v6909_v35  ;;  %v5600_v23 = vrot.slane %v4281_v49, %v6931_v26  ;;  %v626_v24 = vstv %s3991_s18  ;;  %v4482_v49 = vld [vmem:[%s6787_s0] sm:$0x3] }
 0x32c   :  { %v5571_v38 = vpop.permute.xlu1 %2906 }
 0x32d   :  { %3006 = vbcast.lane.b32.xlu1 %v5504_v5, 264  ;;  %1177 = vadd.xlane.f32.xlu0 %v5508_v21  ;;  %6989 = vst [vmem:[#allocation86_spill] sm:$0xff] %v5571_v38  ;;  %v5574_v46 = vpop.permute.xlu0 %2803 }
 0x32e   :  { %6990 = vst [vmem:[#allocation87_spill] sm:$0xff] %v5574_v46  ;;  %v353_v46 = vstv %s352_s1 }
 0x32f   :  { %v354_v20 = vmul.f32 %v4482_v49, %v353_v46 }
 0x331   :  { %3014 = vbcast.lane.b32.xlu1 %v5504_v5, 280  ;;  %1141 = vadd.xlane.f32.xlu0 %v5512_v36  ;;  %v5584_v25 = vpop.permute.xlu0 %2811  ;;  %v5586_v58 = vpop.eup %4284 }
 0x332   :  { %6991 = vst [vmem:[#allocation88_spill] sm:$0xff] %v5584_v25  ;;  %v5590_v50 = vpop.eup %4286 }
 0x333   :  { %v5596_v43 = vpop.eup %4288 }
 0x335   :  { %3022 = vbcast.lane.b32.xlu1 %v5504_v5, 296  ;;  %1173 = vadd.xlane.f32.xlu0 %v5518_v41  ;;  %v5592_v4 = vpop.permute.xlu0 %2819 }
 0x336   :  { %6992 = vst [vmem:[#allocation89_spill] sm:$0xff] %v5592_v4 }
 0x339   :  { %3030 = vbcast.lane.b32.xlu1 %v5504_v5, 312  ;;  %v5603_v38 = vpop.permute.xlu0 %2827 }
 0x33a   :  { %6993 = vst [vmem:[#allocation90_spill] sm:$0xff] %v5603_v38  ;;  %v4483_v38 = vld [vmem:[%s6787_s0 + $0x2] sm:$0x3] }
 0x33b   :  { %v627_v44 = vmul.f32 %v4483_v38, %v626_v24 }
 0x33d   :  { %3038 = vbcast.lane.b32.xlu1 %v5504_v5, 328  ;;  %v5606_v56 = vpop.permute.xlu0 %2835  ;;  %v628_v39 = vadd.f32 %v627_v44, %v354_v20 }
 0x33e   :  { %6994 = vst [vmem:[#allocation91_spill] sm:$0xff] %v5606_v56 }
 0x33f   :  { %v1258_v51 = vrot.slane %v628_v39, %v6908_v42 }
 0x341   :  { %3046 = vbcast.lane.b32.xlu1 %v5504_v5, 344  ;;  %v5608_v25 = vpop.permute.xlu0 %2843  ;;  %v1266_v46 = vrot.slane %v1258_v51, %v6908_v42  ;;  %v1259_v24 = vcombine.high %v1258_v51, %v1258_v51 }
 0x342   :  { %6995 = vst [vmem:[#allocation92_spill] sm:$0xff] %v5608_v25 }
 0x343   :  { %v5629_v44 = vrot.slane %v1266_v46, %v6909_v35  ;;  %v1273_v39 = vrot.slane %v1259_v24, %v6908_v42 }
 0x345   :  { %3054 = vbcast.lane.b32.xlu1 %v5504_v5, 360  ;;  %v5616_v10 = vpop.permute.xlu0 %2851  ;;  %v5638_v49 = vrot.slane %v1273_v39, %v6909_v35 }
 0x346   :  { %6996 = vst [vmem:[#allocation93_spill] sm:$0xff] %v5616_v10  ;;  %v1448_v10 = vadd.s32 4294967272, %v5158_v29 }
 0x349   :  { %3062 = vbcast.lane.b32.xlu1 %v5504_v5, 376  ;;  %v5619_v25 = vpop.permute.xlu0 %2859 }
 0x34a   :  { %6997 = vst [vmem:[#allocation94_spill] sm:$0xff] %v5619_v25 }
 0x34b   :  { %2918 = vbcast.lane.b32.xlu0 %v5297_v28, 352 }
 0x34d   :  { %3073 = vbcast.lane.b32.xlu1 %v5544_v55, 264 }
 0x351   :  { %3081 = vbcast.lane.b32.xlu1 %v5544_v55, 280 }
 0x355   :  { %3089 = vbcast.lane.b32.xlu1 %v5544_v55, 296 }
 0x359   :  { %3097 = vbcast.lane.b32.xlu1 %v5544_v55, 312 }
 0x35d   :  { %3105 = vbcast.lane.b32.xlu1 %v5544_v55, 328  ;;  %v1128_v33 = vpop.xlane.xlu1 %1127 }
 0x35e   :  { %4290 = vrcp.f32 %v1128_v33  ;;  %v5625_v33 = vpop.permute.xlu0 %2870 }
 0x35f   :  { %6998 = vst [vmem:[#allocation95_spill] sm:$0xff] %v5625_v33  ;;  %v1462_v33 = vadd.s32 4294967256, %v5158_v29 }
 0x361   :  { %3113 = vbcast.lane.b32.xlu1 %v5544_v55, 344  ;;  %v1160_v13 = vpop.xlane.xlu1 %1159 }
 0x362   :  { %4292 = vrcp.f32 %v1160_v13 }
 0x365   :  { %3121 = vbcast.lane.b32.xlu1 %v5544_v55, 360  ;;  %v1124_v6 = vpop.xlane.xlu1 %1123 }
 0x366   :  { %4294 = vrcp.f32 %v1124_v6 }
 0x369   :  { %3129 = vbcast.lane.b32.xlu1 %v5544_v55, 376  ;;  %v1156_v30 = vpop.xlane.xlu1 %1155 }
 0x36a   :  { %1153 = vadd.xlane.f32.xlu0 %v5577_v8  ;;  %4296 = vrcp.f32 %v1156_v30  ;;  %v5633_v30 = vpop.permute.xlu0 %2878 }
 0x36b   :  { %v4291_v38 = vpop.eup %4290  ;;  %6999 = vst [vmem:[#allocation96_spill] sm:$0xff] %v5633_v30 }
 0x36d   :  { %3239 = vbcast.lane.b32.xlu1 %v5581_v14, 264  ;;  %v1136_v4 = vpop.xlane.xlu1 %1135 }
 0x36e   :  { %1185 = vadd.xlane.f32.xlu0 %v5586_v58  ;;  %4298 = vrcp.f32 %v1136_v4 }
 0x36f   :  { %v4293_v13 = vpop.eup %4292 }
 0x370   :  { %v1237_v6 = vmul.f32 %v4293_v13, %v5353_v45 }
 0x371   :  { %3247 = vbcast.lane.b32.xlu1 %v5581_v14, 280  ;;  %v1168_v63 = vpop.xlane.xlu1 %1167 }
 0x372   :  { %1149 = vadd.xlane.f32.xlu0 %v5590_v50  ;;  %4300 = vrcp.f32 %v1168_v63  ;;  %v1302_v46 = vmul.f32 %v5638_v49, %v1237_v6  ;;  %v5644_v63 = vpop.permute.xlu0 %2886 }
 0x373   :  { %v4295_v4 = vpop.eup %4294  ;;  %7000 = vst [vmem:[#allocation97_spill] sm:$0xff] %v5644_v63 }
 0x374   :  { %v1219_v24 = vmul.f32 %v4295_v4, %v5360_v9 }
 0x375   :  { %3255 = vbcast.lane.b32.xlu1 %v5581_v14, 296  ;;  %v1132_v56 = vpop.xlane.xlu1 %1131 }
 0x376   :  { %1181 = vadd.xlane.f32.xlu0 %v5596_v43  ;;  %4302 = vrcp.f32 %v1132_v56  ;;  %v5649_v56 = vpop.permute.xlu0 %2894 }
 0x377   :  { %7001 = vst [vmem:[#allocation98_spill] sm:$0xff] %v5649_v56 }
 0x379   :  { %3302 = vbcast.lane.b32.xlu1 %v5600_v23, 256  ;;  %v1164_v31 = vpop.xlane.xlu1 %1163 }
 0x37a   :  { %4304 = vrcp.f32 %v1164_v31 }
 0x37d   :  { %v1144_v20 = vpop.xlane.xlu1 %1143 }
 0x37e   :  { %4306 = vrcp.f32 %v1144_v20 }
 0x38c   :  { %2926 = vbcast.lane.b32.xlu0 %v5297_v28, 368  ;;  %v1221_v28 = vmul.f32 %v4291_v38, %v5348_v47  ;;  %v1176_v47 = vpop.xlane.xlu1 %1175  ;;  %v4297_v38 = vpop.eup %4296 }
 0x38d   :  { %v1235_v39 = vmul.f32 %v4297_v38, %v5369_v37  ;;  %v4299_v13 = vpop.eup %4298  ;;  %4308 = vrcp.f32 %v1176_v47 }
 0x38e   :  { %v1286_v51 = vmul.f32 %v5629_v44, %v1221_v28  ;;  %v1284_v28 = vmul.f32 %v5629_v44, %v1219_v24  ;;  %v4301_v6 = vpop.eup %4300  ;;  %v5657_v24 = vpop.permute.xlu0 %2902 }
 0x38f   :  { %v1300_v9 = vmul.f32 %v5638_v49, %v1235_v39  ;;  %v1241_v37 = vmul.f32 %v4301_v6, %v5385_v12  ;;  %7002 = vst [vmem:[#allocation99_spill] sm:$0xff] %v5657_v24 }
 0x390   :  { %3002 = vbcast.lane.b32.xlu0 %v5504_v5, 256  ;;  %v1140_v45 = vpop.xlane.xlu1 %1139 }
 0x391   :  { %4310 = vrcp.f32 %v1140_v45 }
 0x392   :  { %v5662_v47 = vpop.permute.xlu0 %2910 }
 0x393   :  { %7003 = vst [vmem:[#allocation100_spill] sm:$0xff] %v5662_v47 }
 0x394   :  { %3010 = vbcast.lane.b32.xlu0 %v5504_v5, 272  ;;  %v1172_v4 = vpop.xlane.xlu1 %1171 }
 0x395   :  { %4312 = vrcp.f32 %v1172_v4 }
 0x396   :  { %v1130_v45 = vpop.xlane.xlu0 %1129 }
 0x398   :  { %3018 = vbcast.lane.b32.xlu0 %v5504_v5, 288  ;;  %v1152_v20 = vpop.xlane.xlu1 %1151 }
 0x399   :  { %4314 = vrcp.f32 %v1152_v20 }
 0x39c   :  { %3026 = vbcast.lane.b32.xlu0 %v5504_v5, 304 }
 0x39d   :  { %1320 = vadd.xlane.f32.xlu1 %v1286_v51  ;;  %v1225_v51 = vmul.f32 %v4299_v13, %v5377_v52  ;;  %v1306_v52 = vmul.f32 %v5638_v49, %v1241_v37  ;;  %v1184_v13 = vpop.xlane.xlu1 %1183  ;;  %v1162_v37 = vpop.xlane.xlu0 %1161 }
 0x39e   :  { %4316 = vrcp.f32 %v1184_v13 }
 0x39f   :  { %v1290_v31 = vmul.f32 %v5629_v44, %v1225_v51 }
 0x3a0   :  { %3034 = vbcast.lane.b32.xlu0 %v5504_v5, 320 }
 0x3a1   :  { %1352 = vadd.xlane.f32.xlu1 %v1302_v46  ;;  %v4303_v46 = vpop.eup %4302  ;;  %v1148_v6 = vpop.xlane.xlu1 %1147 }
 0x3a2   :  { %v1223_v38 = vmul.f32 %v4303_v46, %v5395_v19  ;;  %4318 = vrcp.f32 %v1148_v6 }
 0x3a4   :  { %3042 = vbcast.lane.b32.xlu0 %v5504_v5, 336  ;;  %v1288_v12 = vmul.f32 %v5629_v44, %v1223_v38  ;;  %v1126_v38 = vpop.xlane.xlu0 %1125 }
 0x3a5   :  { %1316 = vadd.xlane.f32.xlu1 %v1284_v28  ;;  %v4305_v28 = vpop.eup %4304 }
 0x3a6   :  { %v4307_v39 = vpop.eup %4306 }
 0x3a7   :  { %v4309_v51 = vpop.eup %4308 }
 0x3a8   :  { %3050 = vbcast.lane.b32.xlu0 %v5504_v5, 352  ;;  %v1158_v13 = vpop.xlane.xlu0 %1157 }
 0x3a9   :  { %1348 = vadd.xlane.f32.xlu1 %v1300_v9  ;;  %v1229_v9 = vmul.f32 %v4307_v39, %v5409_v60 }
 0x3ab   :  { %v1294_v4 = vmul.f32 %v5629_v44, %v1229_v9 }
 0x3ac   :  { %3058 = vbcast.lane.b32.xlu0 %v5504_v5, 368  ;;  %v1239_v5 = vmul.f32 %v4305_v28, %v5404_v59  ;;  %v1245_v59 = vmul.f32 %v4309_v51, %v5417_v17 }
 0x3ad   :  { %1328 = vadd.xlane.f32.xlu1 %v1290_v31  ;;  %v4311_v31 = vpop.eup %4310 }
 0x3ae   :  { %v1304_v19 = vmul.f32 %v5638_v49, %v1239_v5  ;;  %v1310_v46 = vmul.f32 %v5638_v49, %v1245_v59  ;;  %v1227_v60 = vmul.f32 %v4311_v31, %v5426_v53  ;;  %v4313_v20 = vpop.eup %4312 }
 0x3af   :  { %v1243_v17 = vmul.f32 %v4313_v20, %v5431_v16  ;;  %v1138_v16 = vpop.xlane.xlu0 %1137 }
 0x3b0   :  { %3069 = vbcast.lane.b32.xlu0 %v5544_v55, 256  ;;  %v1292_v28 = vmul.f32 %v5629_v44, %v1227_v60 }
 0x3b1   :  { %1360 = vadd.xlane.f32.xlu1 %v1306_v52  ;;  %v1180_v52 = vpop.xlane.xlu1 %1179  ;;  %v1308_v5 = vmul.f32 %v5638_v49, %v1243_v17 }
 0x3b2   :  { %4320 = vrcp.f32 %v1180_v52 }
 0x3b3   :  { %4322 = vrcp.f32 %v1130_v45 }
 0x3b4   :  { %3077 = vbcast.lane.b32.xlu0 %v5544_v55, 272  ;;  %4324 = vrcp.f32 %v1162_v37 }
 0x3b5   :  { %1324 = vadd.xlane.f32.xlu1 %v1288_v12  ;;  %v4315_v12 = vpop.eup %4314  ;;  %4326 = vrcp.f32 %v1126_v38 }
 0x3b6   :  { %v1233_v39 = vmul.f32 %v4315_v12, %v5438_v48  ;;  %v4317_v53 = vpop.eup %4316  ;;  %4328 = vrcp.f32 %v1158_v13 }
 0x3b7   :  { %v1249_v9 = vmul.f32 %v4317_v53, %v5445_v7  ;;  %v4319_v51 = vpop.eup %4318  ;;  %v1170_v7 = vpop.xlane.xlu0 %1169  ;;  %4330 = vrcp.f32 %v1138_v16 }
 0x3b8   :  { %3085 = vbcast.lane.b32.xlu0 %v5544_v55, 288  ;;  %4332 = vrcp.f32 %v1170_v7 }
 0x3b9   :  { %1356 = vadd.xlane.f32.xlu1 %v1304_v19  ;;  %v1298_v19 = vmul.f32 %v5629_v44, %v1233_v39  ;;  %v1314_v6 = vmul.f32 %v5638_v49, %v1249_v9 }
 0x3bc   :  { %3093 = vbcast.lane.b32.xlu0 %v5544_v55, 304 }
 0x3bd   :  { %1336 = vadd.xlane.f32.xlu1 %v1294_v4  ;;  %v1231_v4 = vmul.f32 %v4319_v51, %v5452_v1 }
 0x3bf   :  { %v4321_v59 = vpop.eup %4320  ;;  %v1296_v48 = vmul.f32 %v5629_v44, %v1231_v4 }
 0x3c0   :  { %3101 = vbcast.lane.b32.xlu0 %v5544_v55, 320  ;;  %v1247_v31 = vmul.f32 %v4321_v59, %v5461_v15  ;;  %v4323_v52 = vpop.eup %4322 }
 0x3c1   :  { %1368 = vadd.xlane.f32.xlu1 %v1310_v46  ;;  %v1134_v46 = vpop.xlane.xlu0 %1133  ;;  %v1222_v17 = vmul.f32 %v4323_v52, %v5448_v0  ;;  %v4325_v12 = vpop.eup %4324 }
 0x3c2   :  { %v1238_v37 = vmul.f32 %v4325_v12, %v5455_v22  ;;  %v4327_v38 = vpop.eup %4326  ;;  %4334 = vrcp.f32 %v1134_v46 }
 0x3c3   :  { %v1287_v45 = vmul.f32 %v5629_v44, %v1222_v17  ;;  %v1220_v53 = vmul.f32 %v4327_v38, %v5464_v18  ;;  %v4329_v0 = vpop.eup %4328 }
 0x3c4   :  { %3109 = vbcast.lane.b32.xlu0 %v5544_v55, 336  ;;  %v1303_v39 = vmul.f32 %v5638_v49, %v1238_v37  ;;  %v1236_v22 = vmul.f32 %v4329_v0, %v5471_v34  ;;  %v4331_v9 = vpop.eup %4330 }
 0x3c5   :  { %1332 = vadd.xlane.f32.xlu1 %v1292_v28  ;;  %v1166_v1 = vpop.xlane.xlu0 %1165  ;;  %v4333_v4 = vpop.eup %4332 }
 0x3c6   :  { %4336 = vrcp.f32 %v1166_v1  ;;  %v1301_v16 = vmul.f32 %v5638_v49, %v1236_v22  ;;  %v1242_v59 = vmul.f32 %v4333_v4, %v5483_v32 }
 0x3c8   :  { %3117 = vbcast.lane.b32.xlu0 %v5544_v55, 352  ;;  %v1307_v7 = vmul.f32 %v5638_v49, %v1242_v59  ;;  %v1395_v59 = vld [vmem:[#allocation2 + $0x78] sm:$0xff] }
 0x3c9   :  { %1364 = vadd.xlane.f32.xlu1 %v1308_v5  ;;  %v1146_v60 = vpop.xlane.xlu0 %1145 }
 0x3ca   :  { %4338 = vrcp.f32 %v1146_v60 }
 0x3cc   :  { %3125 = vbcast.lane.b32.xlu0 %v5544_v55, 368  ;;  %v1312_v55 = vmul.f32 %v5638_v49, %v1247_v31  ;;  %v5718_v31 = vpop.permute.xlu1 %2914 }
 0x3cd   :  { %1344 = vadd.xlane.f32.xlu1 %v1298_v19  ;;  %v1178_v15 = vpop.xlane.xlu0 %1177  ;;  %v1285_v19 = vmul.f32 %v5629_v44, %v1220_v53  ;;  %7005 = vst [vmem:[#allocation102_spill] sm:$0xff] %v5718_v31 }
 0x3ce   :  { %4340 = vrcp.f32 %v1178_v15 }
 0x3d0   :  { %3235 = vbcast.lane.b32.xlu0 %v5581_v14, 256 }
 0x3d1   :  { %1376 = vadd.xlane.f32.xlu1 %v1314_v6  ;;  %v1142_v20 = vpop.xlane.xlu0 %1141  ;;  %v1226_v6 = vmul.f32 %v4331_v9, %v5475_v57  ;;  %v5724_v57 = vpop.permute.xlu1 %2922 }
 0x3d2   :  { %4342 = vrcp.f32 %v1142_v20  ;;  %7006 = vst [vmem:[#allocation103_spill] sm:$0xff] %v5724_v57 }
 0x3d3   :  { %v1291_v18 = vmul.f32 %v5629_v44, %v1226_v6 }
 0x3d4   :  { %3243 = vbcast.lane.b32.xlu0 %v5581_v14, 272 }
 0x3d5   :  { %1340 = vadd.xlane.f32.xlu1 %v1296_v48  ;;  %v1174_v28 = vpop.xlane.xlu0 %1173  ;;  %v4335_v48 = vpop.eup %4334 }
 0x3d6   :  { %v4337_v46 = vpop.eup %4336  ;;  %4344 = vrcp.f32 %v1174_v28  ;;  %v5732_v12 = vpop.permute.xlu1 %2930 }
 0x3d7   :  { %v1240_v60 = vmul.f32 %v4337_v46, %v5493_v54  ;;  %v4339_v15 = vpop.eup %4338  ;;  %7007 = vst [vmem:[#allocation104_spill] sm:$0xff] %v5732_v12  ;;  %v1706_v46 = vld [vmem:[#allocation6 + $0x70] sm:$0xff] }
 0x3d8   :  { %3251 = vbcast.lane.b32.xlu0 %v5581_v14, 288  ;;  %v1230_v20 = vmul.f32 %v4339_v15, %v5499_v62  ;;  %v1392_v15 = vld [vmem:[#allocation2 + $0x60] sm:$0xff] }
 0x3d9   :  { %1372 = vadd.xlane.f32.xlu1 %v1312_v55  ;;  %v5704_v5 = vpop.permute.xlu0 %2918  ;;  %v1224_v55 = vmul.f32 %v4335_v48, %v5489_v40  ;;  %v1305_v52 = vmul.f32 %v5638_v49, %v1240_v60  ;;  %v1705_v60 = vld [vmem:[#allocation6 + $0x68] sm:$0xff] }
 0x3da   :  { %7004 = vst [vmem:[#allocation101_spill] sm:$0xff] %v5704_v5  ;;  %v1295_v28 = vmul.f32 %v5629_v44, %v1230_v20  ;;  %v5738_v38 = vpop.permute.xlu1 %3006 }
 0x3db   :  { %v1289_v32 = vmul.f32 %v5629_v44, %v1224_v55  ;;  %v4341_v17 = vpop.eup %4340  ;;  %v1394_v55 = vld [vmem:[#allocation2 + $0x70] sm:$0xff] }
 0x3dc   :  { %3259 = vbcast.lane.b32.xlu0 %v5581_v14, 304 }
 0x3de   :  { %v5746_v22 = vpop.permute.xlu1 %3014 }
 0x3df   :  { %v4343_v37 = vpop.eup %4342 }
 0x3e0   :  { %3306 = vbcast.lane.b32.xlu0 %v5600_v23, 264  ;;  %v1228_v62 = vmul.f32 %v4343_v37, %v5512_v36  ;;  %v1390_v37 = vld [vmem:[#allocation2 + $0x50] sm:$0xff] }
 0x3e2   :  { %v1293_v0 = vmul.f32 %v5629_v44, %v1228_v62  ;;  %v1389_v62 = vld [vmem:[#allocation2 + $0x48] sm:$0xff] }
 0x3e3   :  { %v4345_v53 = vpop.eup %4344 }
 0x3ea   :  { %3310 = vbcast.lane.b32.xlu1 %v5600_v23, 272 }
 0x3ee   :  { %3318 = vbcast.lane.b32.xlu1 %v5600_v23, 288 }
 0x3f2   :  { %3326 = vbcast.lane.b32.xlu1 %v5600_v23, 304 }
 0x3f3   :  { %v5708_v13 = vpop.xlane.xlu0 %1153 }
 0x3f4   :  { %4346 = vrcp.f32 %v5708_v13 }
 0x3f6   :  { %3330 = vbcast.lane.b32.xlu1 %v5600_v23, 312 }
 0x3f7   :  { %v5712_v51 = vpop.xlane.xlu0 %1185 }
 0x3f8   :  { %4348 = vrcp.f32 %v5712_v51 }
 0x3fa   :  { %3334 = vbcast.lane.b32.xlu1 %v5600_v23, 320 }
 0x3fb   :  { %v5720_v34 = vpop.xlane.xlu0 %1149 }
 0x3fc   :  { %4350 = vrcp.f32 %v5720_v34 }
 0x3fe   :  { %3338 = vbcast.lane.b32.xlu1 %v5600_v23, 328 }
 0x3ff   :  { %1322 = vadd.xlane.f32.xlu0 %v1287_v45  ;;  %v5726_v1 = vpop.xlane.xlu0 %1181  ;;  %v1246_v45 = vmul.f32 %v4341_v17, %v5508_v21 }
 0x400   :  { %4352 = vrcp.f32 %v5726_v1 }
 0x403   :  { %1354 = vadd.xlane.f32.xlu0 %v1303_v39  ;;  %v5734_v40 = vpop.permute.xlu0 %2926  ;;  %v1311_v39 = vmul.f32 %v5638_v49, %v1246_v45  ;;  %v1703_v45 = vld [vmem:[#allocation6 + $0x58] sm:$0xff] }
 0x404   :  { %7008 = vst [vmem:[#allocation105_spill] sm:$0xff] %v5734_v40 }
 0x407   :  { %1318 = vadd.xlane.f32.xlu0 %v1285_v19  ;;  %v5740_v54 = vpop.permute.xlu0 %3002  ;;  %v1244_v19 = vmul.f32 %v4345_v53, %v5518_v41  ;;  %v1707_v41 = vld [vmem:[#allocation6 + $0x78] sm:$0xff] }
 0x409   :  { %v1309_v21 = vmul.f32 %v5638_v49, %v1244_v19 }
 0x40b   :  { %1350 = vadd.xlane.f32.xlu0 %v1301_v16  ;;  %v5748_v9 = vpop.permute.xlu0 %3010  ;;  %v5751_v16 = vpop.permute.xlu1 %3022 }
 0x40f   :  { %1330 = vadd.xlane.f32.xlu0 %v1291_v18  ;;  %v5753_v6 = vpop.permute.xlu0 %3018  ;;  %v5755_v4 = vpop.permute.xlu1 %3030 }
 0x413   :  { %1362 = vadd.xlane.f32.xlu0 %v1307_v7  ;;  %v5757_v36 = vpop.permute.xlu0 %3026  ;;  %v5759_v18 = vpop.permute.xlu1 %3038  ;;  %v6811_v7 = vmov 0.0  }
 0x414   :  { %7009 = vst [vmem:[#allocation106_spill] sm:$0xff] %v5759_v18  ;;  %4134 = vmatprep.subr.mxu0 %v6811_v7  ;;  %4169 = vmatprep.subr.mxu1 %v6811_v7 }
 0x415   :  { %4135 = vmatpush3.msra.mxu0 %v1395_v59  ;;  %4170 = vmatpush3.msra.mxu1 %v1707_v41 }
 0x416   :  { %4136 = vmatprep.subr.mxu0 %v6811_v7  ;;  %4171 = vmatprep.subr.mxu1 %v6811_v7 }
 0x417   :  { %1326 = vadd.xlane.f32.xlu0 %v1289_v32  ;;  %v5761_v48 = vpop.permute.xlu0 %3034  ;;  %v1393_v32 = vld [vmem:[#allocation2 + $0x68] sm:$0xff]  ;;  %4137 = vmatpush3.msra.mxu0 %v1394_v55  ;;  %v5769_v20 = vpop.permute.xlu1 %3046 }
 0x418   :  { %4172 = vmatpush3.msra.mxu1 %v1706_v46  ;;  %4138 = vmatprep.subr.mxu0 %v6811_v7  ;;  %7010 = vst [vmem:[#allocation107_spill] sm:$0xff] %v5769_v20 }
 0x419   :  { %4173 = vmatprep.subr.mxu1 %v6811_v7  ;;  %4139 = vmatpush3.msra.mxu0 %v1393_v32  ;;  %v4347_v32 = vpop.eup %4346 }
 0x41a   :  { %4174 = vmatpush3.msra.mxu1 %v1705_v60  ;;  %4140 = vmatprep.subr.mxu0 %v6811_v7  ;;  %v4349_v13 = vpop.eup %4348 }
 0x41b   :  { %1358 = vadd.xlane.f32.xlu0 %v1305_v52  ;;  %v1704_v52 = vld [vmem:[#allocation6 + $0x60] sm:$0xff]  ;;  %v5771_v17 = vpop.permute.xlu0 %3042  ;;  %4175 = vmatprep.subr.mxu1 %v6811_v7  ;;  %v5779_v53 = vpop.permute.xlu1 %3054 }
 0x41c   :  { %7011 = vst [vmem:[#allocation108_spill] sm:$0xff] %v5771_v17  ;;  %4141 = vmatpush3.msra.mxu0 %v1392_v15  ;;  %4176 = vmatpush3.msra.mxu1 %v1704_v52  ;;  %7012 = vst [vmem:[#allocation109_spill] sm:$0xff] %v5779_v53  ;;  %v1234_v15 = vmul.f32 %v4347_v32, %v5577_v8  ;;  %v1469_v53 = vadd.s32 4294967248, %v5158_v29 }
 0x41d   :  { %4142 = vmatprep.subr.mxu0 %v6811_v7  ;;  %4177 = vmatprep.subr.mxu1 %v6811_v7 }
 0x41e   :  { %4178 = vmatpush3.msra.mxu1 %v1703_v45  ;;  %v1299_v51 = vmul.f32 %v5629_v44, %v1234_v15  ;;  %v1250_v45 = vmul.f32 %v4349_v13, %v5586_v58  ;;  %v1388_v13 = vld [vmem:[#allocation2 + $0x40] sm:$0xff] }
 0x41f   :  { %1338 = vadd.xlane.f32.xlu0 %v1295_v28  ;;  %v1391_v28 = vld [vmem:[#allocation2 + $0x58] sm:$0xff]  ;;  %4179 = vmatprep.subr.mxu1 %v6811_v7  ;;  %v5782_v19 = vpop.permute.xlu0 %3050 }
 0x420   :  { %4143 = vmatpush3.msra.mxu0 %v1391_v28  ;;  %7013 = vst [vmem:[#allocation110_spill] sm:$0xff] %v5782_v19  ;;  %v1315_v1 = vmul.f32 %v5638_v49, %v1250_v45  ;;  %v1387_v45 = vld [vmem:[#allocation2 + $0x38] sm:$0xff] }
 0x421   :  { %4144 = vmatprep.subr.mxu0 %v6811_v7 }
 0x422   :  { %4145 = vmatpush3.msra.mxu0 %v1390_v37  ;;  %v4351_v37 = vpop.eup %4350 }
 0x423   :  { %1370 = vadd.xlane.f32.xlu0 %v1311_v39  ;;  %v1702_v39 = vld [vmem:[#allocation6 + $0x50] sm:$0xff]  ;;  %4146 = vmatprep.subr.mxu0 %v6811_v7  ;;  %v5791_v59 = vpop.permute.xlu0 %3058 }
 0x424   :  { %4180 = vmatpush3.msra.mxu1 %v1702_v39  ;;  %4147 = vmatpush3.msra.mxu0 %v1389_v62  ;;  %7015 = vst [vmem:[#allocation112_spill] sm:$0xff] %v5791_v59  ;;  %v1232_v39 = vmul.f32 %v4351_v37, %v5590_v50  ;;  %v4353_v62 = vpop.eup %4352  ;;  %v1699_v50 = vld [vmem:[#allocation6 + $0x38] sm:$0xff]  ;;  %v7026_v37 = vmov 0.0  }
 0x425   :  { %4181 = vmatprep.subr.mxu1 %v6811_v7  ;;  %4148 = vmatprep.subr.mxu0 %v6811_v7  ;;  %v1248_v32 = vmul.f32 %v4353_v62, %v5596_v43  ;;  %v1697_v62 = vld [vmem:[#allocation6 + $0x28] sm:$0xff] }
 0x426   :  { %v1297_v8 = vmul.f32 %v5629_v44, %v1232_v39  ;;  %4149 = vmatpush3.msra.mxu0 %v1388_v13  ;;  %v1386_v44 = vld [vmem:[#allocation2 + $0x30] sm:$0xff]  ;;  %4166 = vmatprep.mubr.msk.f32.mxu0 %vm4574_vm10, %v7026_v37 }
 0x427   :  { %1334 = vadd.xlane.f32.xlu0 %v1293_v0  ;;  %v1701_v0 = vld [vmem:[#allocation6 + $0x48] sm:$0xff]  ;;  %v5796_v55 = vpop.permute.xlu0 %3069  ;;  %v1313_v15 = vmul.f32 %v5638_v49, %v1248_v32  ;;  %4150 = vmatprep.subr.mxu0 %v7026_v37  ;;  %v1696_v32 = vld [vmem:[#allocation6 + $0x20] sm:$0xff] }
 0x428   :  { %4182 = vmatpush3.msra.mxu1 %v1701_v0  ;;  %7017 = vst [vmem:[#allocation114_spill] sm:$0xff] %v5796_v55  ;;  %4151 = vmatpush3.msra.mxu0 %v1387_v45  ;;  %v1385_v49 = vld [vmem:[#allocation2 + $0x28] sm:$0xff]  ;;  %v1695_v45 = vld [vmem:[#allocation6 + $0x18] sm:$0xff]  ;;  %v1455_v55 = vadd.s32 4294967264, %v5158_v29 }
 0x429   :  { %4183 = vmatprep.subr.mxu1 %v6811_v7  ;;  %4152 = vmatprep.subr.mxu0 %v7026_v37 }
 0x42a   :  { %4153 = vmatpush3.msra.mxu0 %v1386_v44  ;;  %v1694_v44 = vld [vmem:[#allocation6 + $0x10] sm:$0xff]  ;;  %4201 = vmatprep.mubr.msk.f32.mxu1 %vm4574_vm10, %v7026_v37  ;;  %vm6833_vm10 = vcmask 1041409  }
 0x42b   :  { %1366 = vadd.xlane.f32.xlu0 %v1309_v21  ;;  %v5788_v21 = vpop.permute.xlu1 %3062  ;;  %v5802_v60 = vpop.permute.xlu0 %3077  ;;  %4154 = vmatprep.subr.mxu0 %v7026_v37 }
 0x42c   :  { %7014 = vst [vmem:[#allocation111_spill] sm:$0xff] %v5788_v21  ;;  %7019 = vst [vmem:[#allocation116_spill] sm:$0xff] %v5802_v60  ;;  %4155 = vmatpush3.msra.mxu0 %v1385_v49  ;;  %v1693_v49 = vld [vmem:[#allocation6 + $0x8] sm:$0xff] }
 0x42d   :  { %4156 = vmatprep.subr.mxu0 %v7026_v37  ;;  %v7036_v60 = vld [vmem:[#allocation14_spill] sm:$0xff] }
 0x42e   :  { %v5927_v25 = vsub.s32 %v1455_v55, %v7036_v60  ;;  %v5937_v55 = vsub.s32 %v1469_v53, %v7036_v60 }
 0x42f   :  { %v5794_v41 = vpop.permute.xlu1 %3073  ;;  %v5807_v28 = vpop.permute.xlu0 %3085 }
 0x430   :  { %7016 = vst [vmem:[#allocation113_spill] sm:$0xff] %v5794_v41  ;;  %7021 = vst [vmem:[#allocation118_spill] sm:$0xff] %v5807_v28  ;;  %v5916_v41 = vsub.s32 %v1448_v10, %v7036_v60 }
 0x431   :  { %7042 = vst [vmem:[#allocation136_spill] sm:$0xff] %v5927_v25  ;;  %7043 = vst [vmem:[#allocation137_spill] sm:$0xff] %v5937_v55 }
 0x432   :  { %7040 = vst [vmem:[#allocation134_spill] sm:$0xff] %v5916_v41 }
 0x433   :  { %v5799_v46 = vpop.permute.xlu1 %3081  ;;  %v5815_v0 = vpop.permute.xlu0 %3093 }
 0x434   :  { %7018 = vst [vmem:[#allocation115_spill] sm:$0xff] %v5799_v46  ;;  %7023 = vst [vmem:[#allocation120_spill] sm:$0xff] %v5815_v0 }
 0x437   :  { %v5805_v52 = vpop.permute.xlu1 %3089  ;;  %v5821_v58 = vpop.permute.xlu0 %3101 }
 0x438   :  { %7020 = vst [vmem:[#allocation117_spill] sm:$0xff] %v5805_v52  ;;  %7025 = vst [vmem:[#allocation122_spill] sm:$0xff] %v5821_v58  ;;  %v1441_v52 = vadd.s32 4294967280, %v5158_v29 }
 0x43a   :  { %v5906_v20 = vsub.s32 %v1441_v52, %v7036_v60 }
 0x43b   :  { %v5811_v34 = vpop.permute.xlu1 %3097  ;;  %v5829_v39 = vpop.permute.xlu0 %3109 }
 0x43c   :  { %7022 = vst [vmem:[#allocation119_spill] sm:$0xff] %v5811_v34  ;;  %7028 = vst [vmem:[#allocation124_spill] sm:$0xff] %v5829_v39  ;;  %v1434_v34 = vadd.s32 4294967288, %v5158_v29 }
 0x43d   :  { %7039 = vst [vmem:[#allocation133_spill] sm:$0xff] %v5906_v20 }
 0x43f   :  { %v5819_v7 = vpop.permute.xlu1 %3105  ;;  %v5838_v13 = vpop.permute.xlu0 %3117 }
 0x440   :  { %7024 = vst [vmem:[#allocation121_spill] sm:$0xff] %v5819_v7  ;;  %7030 = vst [vmem:[#allocation126_spill] sm:$0xff] %v5838_v13 }
 0x441   :  { %3314 = vbcast.lane.b32.xlu0 %v5600_v23, 280 }
 0x443   :  { %v5826_v43 = vpop.permute.xlu1 %3113 }
 0x444   :  { %7027 = vst [vmem:[#allocation123_spill] sm:$0xff] %v5826_v43 }
 0x460   :  { %1346 = vadd.xlane.f32.xlu0 %v1299_v51  ;;  %v1700_v51 = vld [vmem:[#allocation6 + $0x40] sm:$0xff] }
 0x461   :  { %4184 = vmatpush3.msra.mxu1 %v1700_v51  ;;  %v1383_v51 = vld [vmem:[#allocation2 + $0x18] sm:$0xff] }
 0x462   :  { %4185 = vmatprep.subr.mxu1 %v7026_v37 }
 0x463   :  { %4186 = vmatpush3.msra.mxu1 %v1699_v50  ;;  %v1382_v50 = vld [vmem:[#allocation2 + $0x10] sm:$0xff] }
 0x464   :  { %1378 = vadd.xlane.f32.xlu0 %v1315_v1  ;;  %v1698_v1 = vld [vmem:[#allocation6 + $0x30] sm:$0xff]  ;;  %4187 = vmatprep.subr.mxu1 %v7026_v37 }
 0x465   :  { %4188 = vmatpush3.msra.mxu1 %v1698_v1  ;;  %v1381_v1 = vld [vmem:[#allocation2 + $0x8] sm:$0xff] }
 0x466   :  { %4189 = vmatprep.subr.mxu1 %v7026_v37 }
 0x467   :  { %4190 = vmatpush3.msra.mxu1 %v1697_v62  ;;  %v1380_v62 = vld [vmem:[#allocation2] sm:$0xff] }
 0x468   :  { %1342 = vadd.xlane.f32.xlu0 %v1297_v8  ;;  %v1384_v8 = vld [vmem:[#allocation2 + $0x20] sm:$0xff]  ;;  %4191 = vmatprep.subr.mxu1 %v7026_v37 }
 0x469   :  { %4157 = vmatpush3.msra.mxu0 %v1384_v8  ;;  %4192 = vmatpush3.msra.mxu1 %v1696_v32  ;;  %v1692_v32 = vld [vmem:[#allocation6] sm:$0xff] }
 0x46a   :  { %4158 = vmatprep.subr.mxu0 %v7026_v37  ;;  %4193 = vmatprep.subr.mxu1 %v7026_v37 }
 0x46b   :  { %4159 = vmatpush3.msra.mxu0 %v1383_v51  ;;  %4194 = vmatpush3.msra.mxu1 %v1695_v45  ;;  %v5848_v51 = vpop.permute.xlu0 %3125 }
 0x46c   :  { %1374 = vadd.xlane.f32.xlu0 %v1313_v15  ;;  %v5836_v15 = vpop.permute.xlu1 %3121  ;;  %4160 = vmatprep.subr.mxu0 %v7026_v37  ;;  %7032 = vst [vmem:[#allocation128_spill] sm:$0xff] %v5848_v51 }
 0x46d   :  { %7029 = vst [vmem:[#allocation125_spill] sm:$0xff] %v5836_v15  ;;  %4195 = vmatprep.subr.mxu1 %v7026_v37  ;;  %4161 = vmatpush3.msra.mxu0 %v1382_v50 }
 0x46e   :  { %4196 = vmatpush3.msra.mxu1 %v1694_v44  ;;  %4162 = vmatprep.subr.mxu0 %v7026_v37 }
 0x46f   :  { %4197 = vmatprep.subr.mxu1 %v7026_v37  ;;  %4163 = vmatpush3.msra.mxu0 %v1381_v1  ;;  %v5856_v50 = vpop.permute.xlu0 %3235 }
 0x470   :  { %v5846_v8 = vpop.permute.xlu1 %3129  ;;  %4198 = vmatpush3.msra.mxu1 %v1693_v49  ;;  %4164 = vmatprep.subr.mxu0 %v7026_v37 }
 0x471   :  { %7031 = vst [vmem:[#allocation127_spill] sm:$0xff] %v5846_v8  ;;  %4199 = vmatprep.subr.mxu1 %v7026_v37  ;;  %4165 = vmatpush3.msra.mxu0 %v1380_v62 }
 0x472   :  { %4200 = vmatpush3.msra.mxu1 %v1692_v32 }
 0x473   :  { %v5862_v1 = vpop.permute.xlu0 %3243 }
 0x474   :  { %v5854_v45 = vpop.permute.xlu1 %3239 }
 0x477   :  { %v5867_v62 = vpop.permute.xlu0 %3251 }
 0x478   :  { %v5859_v44 = vpop.permute.xlu1 %3247 }
 0x47b   :  { %v5872_v32 = vpop.permute.xlu0 %3259 }
 0x47c   :  { %v5865_v49 = vpop.permute.xlu1 %3255  ;;  %7034 = vst [vmem:[#allocation130_spill] sm:$0xff] %v5872_v32 }
 0x47f   :  { %v5874_v8 = vpop.permute.xlu0 %3306 }
 0x480   :  { %v5870_v37 = vpop.permute.xlu1 %3302  ;;  %7035 = vst [vmem:[#allocation131_spill] sm:$0xff] %v5874_v8  ;;  %v5901_v8 = vsub.s32 %v5158_v29, %v7036_v60 }
 0x481   :  { %7033 = vst [vmem:[#allocation129_spill] sm:$0xff] %v5870_v37  ;;  %v5896_v37 = vsub.s32 %v1434_v34, %v7036_v60 }
 0x482   :  { %3322 = vbcast.lane.b32.xlu0 %v5600_v23, 296  ;;  %7038 = vst [vmem:[#allocation132_spill] sm:$0xff] %v5901_v8 }
 0x483   :  { %7037 = vst [vmem:[#allocation14_spill] sm:$0xff] %v5896_v37 }
 0x484   :  { %v1321_v12 = vpop.xlane.xlu1 %1320 }
 0x485   :  { %v1445_v21 = vrot.slane %v1321_v12, %v5906_v20 }
 0x486   :  { %3263 = vbcast.lane.b32.xlu0 %v5581_v14, 312 }
 0x488   :  { %v1323_v40 = vpop.xlane.xlu0 %1322  ;;  %v1353_v51 = vpop.xlane.xlu1 %1352 }
 0x489   :  { %v1551_v12 = vrot.slane %v1353_v51, %v5906_v20  ;;  %v1483_v51 = vadd.s32 4294967232, %v5158_v29 }
 0x48a   :  { %3267 = vbcast.lane.b32.xlu0 %v5581_v14, 320 }
 0x48c   :  { %v5876_v15 = vpop.xlane.xlu0 %1354  ;;  %v1317_v57 = vpop.xlane.xlu1 %1316 }
 0x48d   :  { %v1433_v46 = vrot.slane %v1317_v57, %v5901_v8  ;;  %v5923_v57 = vsub.s32 %v1462_v33, %v7036_v60 }
 0x48e   :  { %3271 = vbcast.lane.b32.xlu0 %v5581_v14, 328 }
 0x48f   :  { %7041 = vst [vmem:[#allocation135_spill] sm:$0xff] %v5923_v57 }
 0x490   :  { %v1319_v47 = vpop.xlane.xlu0 %1318  ;;  %v1349_v39 = vpop.xlane.xlu1 %1348 }
 0x491   :  { %v1438_v19 = vrot.slane %v1319_v47, %v5896_v37  ;;  %v1542_v59 = vrot.slane %v1349_v39, %v5901_v8 }
 0x493   :  { %v1440_v47 = vsel %vm1439_vm11, %v1438_v19, %v1433_v46  ;;  %v1452_v19 = vrot.slane %v1323_v40, %v5916_v41  ;;  %v1476_v46 = vadd.s32 4294967240, %v5158_v29  ;;  %v1556_v40 = vrot.slane %v5876_v15, %v5916_v41 }
 0x494   :  { %v1351_v5 = vpop.xlane.xlu0 %1350  ;;  %v5878_v13 = vpop.xlane.xlu1 %1328  ;;  %v1447_v10 = vsel %vm1446_vm12, %v1445_v21, %v1440_v47 }
 0x495   :  { %v1546_v52 = vrot.slane %v1351_v5, %v5896_v37  ;;  %v1454_v33 = vsel %vm1453_vm13, %v1452_v19, %v1447_v10  ;;  %v7072_v37 = vld [vmem:[#allocation17_spill] sm:$0xff] }
 0x497   :  { %v1547_v5 = vsel %vm1439_vm11, %v1546_v52, %v1542_v59  ;;  %v1490_v59 = vadd.s32 4294967224, %v5158_v29  ;;  %v5946_v52 = vsub.s32 %v1476_v46, %v7036_v60  ;;  %v1497_v46 = vadd.s32 4294967216, %v5158_v29 }
 0x498   :  { %v5880_v43 = vpop.xlane.xlu0 %1330  ;;  %v5882_v31 = vpop.xlane.xlu1 %1360  ;;  %v1552_v47 = vsel %vm1446_vm12, %v1551_v12, %v1547_v5  ;;  %v1473_v5 = vrot.slane %v5878_v13, %v5937_v55 }
 0x499   :  { %7044 = vst [vmem:[#allocation138_spill] sm:$0xff] %v5946_v52  ;;  %v1557_v19 = vsel %vm1453_vm13, %v1556_v40, %v1552_v47  ;;  %v1504_v40 = vadd.s32 4294967208, %v5158_v29 }
 0x49c   :  { %v5884_v24 = vpop.xlane.xlu0 %1362  ;;  %v1325_v58 = vpop.xlane.xlu1 %1324 }
 0x49d   :  { %v1459_v21 = vrot.slane %v1325_v58, %v5927_v25 }
 0x4a0   :  { %v1327_v7 = vpop.xlane.xlu0 %1326  ;;  %v1357_v0 = vpop.xlane.xlu1 %1356 }
 0x4a1   :  { %v1466_v39 = vrot.slane %v1327_v7, %v5923_v57  ;;  %v1461_v7 = vsel %vm1460_vm14, %v1459_v21, %v1454_v33  ;;  %v1561_v12 = vrot.slane %v1357_v0, %v5927_v25  ;;  %v5960_v33 = vsub.s32 %v1490_v59, %v7036_v60 }
 0x4a2   :  { %v5963_v21 = vsub.s32 %v1483_v51, %v7036_v60  ;;  %v1571_v0 = vrot.slane %v5882_v31, %v5937_v55  ;;  %v1576_v31 = vrot.slane %v5884_v24, %v5946_v52 }
 0x4a3   :  { %v1468_v58 = vsel %vm1467_vm15, %v1466_v39, %v1461_v7  ;;  %7045 = vst [vmem:[#allocation139_spill] sm:$0xff] %v5960_v33  ;;  %v1562_v47 = vsel %vm1460_vm14, %v1561_v12, %v1557_v19  ;;  %v5978_v19 = vsub.s32 %v1497_v46, %v7036_v60  ;;  %v5987_v12 = vsub.s32 %v1504_v40, %v7036_v60 }
 0x4a4   :  { %v5886_v56 = vpop.xlane.xlu0 %1358  ;;  %v5888_v28 = vpop.xlane.xlu1 %1336  ;;  %7046 = vst [vmem:[#allocation140_spill] sm:$0xff] %v5963_v21  ;;  %v1475_v39 = vsel %vm1474_vm0, %v1473_v5, %v1468_v58  ;;  %v1511_v5 = vadd.s32 4294967200, %v5158_v29 }
 0x4a5   :  { %v1566_v15 = vrot.slane %v5886_v56, %v5923_v57  ;;  %v1480_v56 = vrot.slane %v5880_v43, %v5946_v52  ;;  %7048 = vst [vmem:[#allocation142_spill] sm:$0xff] %v5978_v19  ;;  %7049 = vst [vmem:[#allocation143_spill] sm:$0xff] %v5987_v12  ;;  %v1501_v24 = vrot.slane %v5888_v28, %v5978_v19 }
 0x4a7   :  { %v1567_v13 = vsel %vm1467_vm15, %v1566_v15, %v1562_v47  ;;  %v1482_v51 = vsel %vm1481_vm1, %v1480_v56, %v1475_v39  ;;  %v1518_v56 = vadd.s32 4294967192, %v5158_v29 }
 0x4a8   :  { %v5891_v63 = vpop.xlane.xlu0 %1338  ;;  %v5893_v30 = vpop.xlane.xlu1 %1368  ;;  %v1572_v15 = vsel %vm1474_vm0, %v1571_v0, %v1567_v13  ;;  %v1525_v0 = vadd.s32 4294967184, %v5158_v29 }
 0x4a9   :  { %v1577_v47 = vsel %vm1481_vm1, %v1576_v31, %v1572_v15  ;;  %v6007_v28 = vsub.s32 %v1518_v56, %v7036_v60 }
 0x4ab   :  { %7051 = vst [vmem:[#allocation145_spill] sm:$0xff] %v6007_v28 }
 0x4ac   :  { %v5908_v17 = vpop.xlane.xlu0 %1370  ;;  %v5911_v34 = vpop.xlane.xlu1 %1332 }
 0x4ad   :  { %v1487_v43 = vrot.slane %v5911_v34, %v5963_v21  ;;  %v1596_v56 = vrot.slane %v5908_v17, %v5987_v12 }
 0x4af   :  { %v1489_v39 = vsel %vm1488_vm2, %v1487_v43, %v1482_v51  ;;  %v5999_v51 = vsub.s32 %v1511_v5, %v7036_v60  ;;  %v1532_v5 = vadd.s32 4294967176, %v5158_v29 }
 0x4b0   :  { %v1335_v18 = vpop.xlane.xlu0 %1334  ;;  %v1365_v32 = vpop.xlane.xlu1 %1364 }
 0x4b1   :  { %v1494_v58 = vrot.slane %v1335_v18, %v5960_v33  ;;  %v1581_v13 = vrot.slane %v1365_v32, %v5963_v21  ;;  %7050 = vst [vmem:[#allocation144_spill] sm:$0xff] %v5999_v51  ;;  %v1591_v32 = vrot.slane %v5893_v30, %v5978_v19 }
 0x4b3   :  { %v1496_v46 = vsel %vm1495_vm3, %v1494_v58, %v1489_v39  ;;  %v1582_v58 = vsel %vm1488_vm2, %v1581_v13, %v1577_v47 }
 0x4b4   :  { %v1367_v10 = vpop.xlane.xlu0 %1366  ;;  %v5949_v53 = vpop.xlane.xlu1 %1344  ;;  %v1503_v43 = vsel %vm1502_vm4, %v1501_v24, %v1496_v46  ;;  %v6014_v46 = vsub.s32 %v1525_v0, %v7036_v60 }
 0x4b5   :  { %v1586_v34 = vrot.slane %v1367_v10, %v5960_v33  ;;  %v1508_v10 = vrot.slane %v5891_v63, %v5987_v12 }
 0x4b6   :  { %7052 = vst [vmem:[#allocation146_spill] sm:$0xff] %v6014_v46 }
 0x4b7   :  { %v1587_v31 = vsel %vm1495_vm3, %v1586_v34, %v1582_v58  ;;  %v1510_v39 = vsel %vm1509_vm5, %v1508_v10, %v1503_v43  ;;  %v6023_v43 = vsub.s32 %v1532_v5, %v7036_v60  ;;  %v1529_v58 = vrot.slane %v5949_v53, %v6014_v46 }
 0x4b8   :  { %v5973_v59 = vpop.permute.xlu0 %3314  ;;  %v1377_v7 = vpop.xlane.xlu1 %1376  ;;  %v1592_v63 = vsel %vm1502_vm4, %v1591_v32, %v1587_v31 }
 0x4b9   :  { %7047 = vst [vmem:[#allocation141_spill] sm:$0xff] %v5973_v59  ;;  %7053 = vst [vmem:[#allocation147_spill] sm:$0xff] %v6023_v43  ;;  %v1611_v32 = vrot.slane %v1377_v7, %v6014_v46  ;;  %v4484_v46 = vld [vmem:[%s6787_s0] sm:$0x3]  ;;  %s4575_s0 = smov [#allocation9]  }
 0x4ba   :  { %s3979_s8 = sshll.u32 %s4575_s0, 4  ;;  %s3980_s8 = int_to_ptr.vmem [resolvable:$true] %s3979_s8 }
 0x4bb   :  { %s4537_s5 = scalar_lea.vmem %s3980_s8, 32  ;;  %p4542_p2 = scmp.lt.s32.totalorder %s3980_s8, %s3980_s8 }
 0x4bc   :  { %v1341_v40 = vpop.xlane.xlu1 %1340  ;;  %p4538_p1 = scmp.ne.s32.totalorder %s3980_s8, %s4537_s5  ;;  %p4543_p3 = scmp.lt.s32.totalorder %s4537_s5, %s4537_s5 }
 0x4bd   :  { %v1515_v47 = vrot.slane %v1341_v40, %v5999_v51  ;;  %v1597_v40 = vsel %vm1509_vm5, %v1596_v56, %v1592_v63 }
 0x4be   :  { %p4544_p4 = por %p4543_p3, %p4542_p2 }
 0x4bf   :  { %v1517_v13 = vsel %vm1516_vm6, %v1515_v47, %v1510_v39 }
 0x4c0   :  { %v1373_v24 = vpop.xlane.xlu1 %1372  ;;  %p4545_p5 = pnand %p4544_p4, %p4538_p1 }
 0x4c1   :  { %v1601_v10 = vrot.slane %v1373_v24, %v5999_v51 }
 0x4c3   :  { %v1602_v60 = vsel %vm1516_vm6, %v1601_v10, %v1597_v40 }
 0x4e9   :  { %v1347_v18 = vpop.xlane.xlu0 %1346 }
 0x4ea   :  { %v1536_v5 = vrot.slane %v1347_v18, %v6023_v43 }
 0x4ed   :  { %v1379_v15 = vpop.xlane.xlu0 %1378 }
 0x4ee   :  { %v1616_v47 = vrot.slane %v1379_v15, %v6023_v43 }
 0x4f1   :  { %v1343_v34 = vpop.xlane.xlu0 %1342 }
 0x4f2   :  { %v1522_v30 = vrot.slane %v1343_v34, %v6007_v28 }
 0x4f4   :  { %v1524_v0 = vsel %vm6844_vm7, %v1522_v30, %v1517_v13 }
 0x4f5   :  { %v1375_v31 = vpop.xlane.xlu0 %1374  ;;  %v1531_v39 = vsel %vm6839_vm8, %v1529_v58, %v1524_v0 }
 0x4f6   :  { %v1606_v17 = vrot.slane %v1375_v31, %v6007_v28  ;;  %v1538_v34 = vsel %vm6836_vm9, %v1536_v5, %v1531_v39  ;;  %v6051_v31 = vpop.permute.xlu1 %3310 }
 0x4f7   :  { %7054 = vst [vmem:[#allocation148_spill] sm:$0xff] %v6051_v31 }
 0x4f8   :  { %v1607_v63 = vsel %vm6844_vm7, %v1606_v17, %v1602_v60 }
 0x4f9   :  { %v1612_v53 = vsel %vm6839_vm8, %v1611_v32, %v1607_v63  ;;  %v6059_v60 = vpop.permute.xlu0 %3322  ;;  %vm1966_vm8 = vcmp.eq.s32.totalorder %v5158_v29, %v5043_v27 }
 0x4fa   :  { %v1617_v24 = vsel %vm6836_vm9, %v1616_v47, %v1612_v53  ;;  %v6053_v17 = vpop.permute.xlu1 %3318  ;;  %7057 = vst [vmem:[#allocation151_spill] sm:$0xff] %v6059_v60  ;;  %vm1965_vm9 = vcmp.eq.s32.totalorder %v5158_v29, %v5029_v61 }
 0x4fb   :  { %v1619_v7 = vsel %vm6833_vm10, %v1617_v24, %v1538_v34  ;;  %7055 = vst [vmem:[#allocation149_spill] sm:$0xff] %v6053_v17  ;;  %vm1963_vm10 = vcmp.eq.s32.totalorder %v5158_v29, %v5011_v11  ;;  %v7084_v17 = vld [vmem:[#allocation18_spill] sm:$0xff] }
 0x4fc   :  { %4167 = vmatmul.mubr.f32.vlgmr.msra.gmra.mxu0 %v1619_v7  ;;  %4202 = vmatmul.mubr.f32.vlgmr.msra.gmra.mxu1 %v1619_v7 }
 0x4fd   :  { %v6063_v47 = vpop.permute.xlu0 %3263 }
 0x4fe   :  { %v6057_v39 = vpop.permute.xlu1 %3326 }
 0x4ff   :  { %7056 = vst [vmem:[#allocation150_spill] sm:$0xff] %v6057_v39 }
 0x501   :  { %v6067_v53 = vpop.permute.xlu0 %3267 }
 0x502   :  { %v6061_v5 = vpop.permute.xlu1 %3330 }
 0x503   :  { %7058 = vst [vmem:[#allocation152_spill] sm:$0xff] %v6061_v5  ;;  %v7087_v5 = vld [vmem:[#allocation20_spill] sm:$0xff] }
 0x505   :  { %v6071_v34 = vpop.permute.xlu0 %3271 }
 0x506   :  { %v6065_v63 = vpop.permute.xlu1 %3334 }
 0x507   :  { %7059 = vst [vmem:[#allocation153_spill] sm:$0xff] %v6065_v63  ;;  %v7074_v63 = vld [vmem:[#allocation25_spill] sm:$0xff] }
 0x5bc   :  { %v1687_v56 = vpop.f32.mrf.mxu0  ;;  %v1774_v30 = vpop.f32.mrf.mxu1 }
 0x5bd   :  { %v6041_v13 = vmul.f32 0.14285715, %v1687_v56  ;;  %v6047_v58 = vmul.f32 0.14285715, %v1774_v30 }
 0x5be   :  { %v4168_v18 = vpop.f32.mrf.mxu0  ;;  %v4203_v0 = vpop.f32.mrf.mxu1 }
 0x5bf   :  { %v2377_v15 = vrot.slane %v6041_v13, %v6909_v35  ;;  %v2444_v40 = vrot.slane %v6041_v13, %v6931_v26  ;;  %v2576_v10 = vrot.slane %v6047_v58, %v6909_v35  ;;  %v2643_v32 = vrot.slane %v6047_v58, %v6931_v26  ;;  %v6069_v26 = vpop.permute.xlu1 %3338 }
 0x5c0   :  { %7060 = vst [vmem:[#allocation154_spill] sm:$0xff] %v6069_v26  ;;  %v1781_v28 = vsub.f32 %v4484_v46, %v6041_v13 }
 0x5c1   :  { %2383 = vbcast.lane.b32.xlu0 %v2377_v15, 264  ;;  %2379 = vbcast.lane.b32.xlu1 %v2377_v15, 256 }
 0x5c2   :  { %v6102_v19 = vrot.slane %v1781_v28, %v6908_v42 }
 0x5c5   :  { %2395 = vbcast.lane.b32.xlu0 %v2377_v15, 288  ;;  %2387 = vbcast.lane.b32.xlu1 %v2377_v15, 272 }
 0x5c9   :  { %2403 = vbcast.lane.b32.xlu0 %v2377_v15, 304  ;;  %2391 = vbcast.lane.b32.xlu1 %v2377_v15, 280 }
 0x5cd   :  { %2411 = vbcast.lane.b32.xlu0 %v2377_v15, 320  ;;  %2399 = vbcast.lane.b32.xlu1 %v2377_v15, 296 }
 0x5d1   :  { %2419 = vbcast.lane.b32.xlu0 %v2377_v15, 336  ;;  %2407 = vbcast.lane.b32.xlu1 %v2377_v15, 312 }
 0x5d5   :  { %2427 = vbcast.lane.b32.xlu0 %v2377_v15, 352  ;;  %2415 = vbcast.lane.b32.xlu1 %v2377_v15, 328 }
 0x5d9   :  { %2435 = vbcast.lane.b32.xlu0 %v2377_v15, 368  ;;  %2423 = vbcast.lane.b32.xlu1 %v2377_v15, 344 }
 0x5dd   :  { %2446 = vbcast.lane.b32.xlu0 %v2444_v40, 256  ;;  %2431 = vbcast.lane.b32.xlu1 %v2377_v15, 360 }
 0x5e1   :  { %2454 = vbcast.lane.b32.xlu0 %v2444_v40, 272  ;;  %2439 = vbcast.lane.b32.xlu1 %v2377_v15, 376 }
 0x5e5   :  { %2462 = vbcast.lane.b32.xlu0 %v2444_v40, 288  ;;  %2450 = vbcast.lane.b32.xlu1 %v2444_v40, 264 }
 0x5e9   :  { %2470 = vbcast.lane.b32.xlu0 %v2444_v40, 304  ;;  %2458 = vbcast.lane.b32.xlu1 %v2444_v40, 280 }
 0x5ed   :  { %2478 = vbcast.lane.b32.xlu0 %v2444_v40, 320  ;;  %2466 = vbcast.lane.b32.xlu1 %v2444_v40, 296 }
 0x5f1   :  { %2486 = vbcast.lane.b32.xlu0 %v2444_v40, 336  ;;  %2474 = vbcast.lane.b32.xlu1 %v2444_v40, 312 }
 0x5f5   :  { %2494 = vbcast.lane.b32.xlu0 %v2444_v40, 352  ;;  %2482 = vbcast.lane.b32.xlu1 %v2444_v40, 328 }
 0x5f9   :  { %2502 = vbcast.lane.b32.xlu0 %v2444_v40, 368  ;;  %2490 = vbcast.lane.b32.xlu1 %v2444_v40, 344 }
 0x5fd   :  { %2578 = vbcast.lane.b32.xlu0 %v2576_v10, 256  ;;  %2498 = vbcast.lane.b32.xlu1 %v2444_v40, 360 }
 0x601   :  { %2586 = vbcast.lane.b32.xlu0 %v2576_v10, 272  ;;  %2506 = vbcast.lane.b32.xlu1 %v2444_v40, 376 }
 0x605   :  { %2594 = vbcast.lane.b32.xlu0 %v2576_v10, 288  ;;  %2582 = vbcast.lane.b32.xlu1 %v2576_v10, 264 }
 0x609   :  { %2602 = vbcast.lane.b32.xlu0 %v2576_v10, 304  ;;  %2590 = vbcast.lane.b32.xlu1 %v2576_v10, 280 }
 0x60d   :  { %2610 = vbcast.lane.b32.xlu0 %v2576_v10, 320  ;;  %2598 = vbcast.lane.b32.xlu1 %v2576_v10, 296 }
 0x611   :  { %2618 = vbcast.lane.b32.xlu0 %v2576_v10, 336  ;;  %2606 = vbcast.lane.b32.xlu1 %v2576_v10, 312 }
 0x615   :  { %2626 = vbcast.lane.b32.xlu0 %v2576_v10, 352  ;;  %2614 = vbcast.lane.b32.xlu1 %v2576_v10, 328 }
 0x619   :  { %2634 = vbcast.lane.b32.xlu0 %v2576_v10, 368  ;;  %2622 = vbcast.lane.b32.xlu1 %v2576_v10, 344 }
 0x61d   :  { %2645 = vbcast.lane.b32.xlu0 %v2643_v32, 256  ;;  %2630 = vbcast.lane.b32.xlu1 %v2576_v10, 360 }
 0x621   :  { %2653 = vbcast.lane.b32.xlu0 %v2643_v32, 272  ;;  %2638 = vbcast.lane.b32.xlu1 %v2576_v10, 376 }
 0x625   :  { %2661 = vbcast.lane.b32.xlu0 %v2643_v32, 288  ;;  %2649 = vbcast.lane.b32.xlu1 %v2643_v32, 264 }
 0x629   :  { %2669 = vbcast.lane.b32.xlu0 %v2643_v32, 304  ;;  %2657 = vbcast.lane.b32.xlu1 %v2643_v32, 280 }
 0x62d   :  { %2677 = vbcast.lane.b32.xlu0 %v2643_v32, 320  ;;  %2665 = vbcast.lane.b32.xlu1 %v2643_v32, 296 }
 0x631   :  { %2685 = vbcast.lane.b32.xlu0 %v2643_v32, 336  ;;  %2673 = vbcast.lane.b32.xlu1 %v2643_v32, 312 }
 0x633   :  { %v6073_v24 = vpop.permute.xlu1 %2379  ;;  %v6075_v7 = vpop.permute.xlu0 %2383 }
 0x635   :  { %2693 = vbcast.lane.b32.xlu0 %v2643_v32, 352  ;;  %2681 = vbcast.lane.b32.xlu1 %v2643_v32, 328 }
 0x637   :  { %v6077_v56 = vpop.permute.xlu0 %2395  ;;  %v6079_v30 = vpop.permute.xlu1 %2387 }
 0x639   :  { %2701 = vbcast.lane.b32.xlu0 %v2643_v32, 368  ;;  %2689 = vbcast.lane.b32.xlu1 %v2643_v32, 344 }
 0x63b   :  { %v6081_v18 = vpop.permute.xlu0 %2403  ;;  %v6083_v0 = vpop.permute.xlu1 %2391 }
 0x63d   :  { %2697 = vbcast.lane.b32.xlu1 %v2643_v32, 360 }
 0x63f   :  { %v6085_v15 = vpop.permute.xlu0 %2411  ;;  %v6087_v40 = vpop.permute.xlu1 %2399 }
 0x641   :  { %2705 = vbcast.lane.b32.xlu1 %v2643_v32, 376  ;;  %v1797_v32 = vrot.slane %v6102_v19, %v6908_v42 }
 0x643   :  { %v6089_v10 = vpop.permute.xlu0 %2419  ;;  %v6091_v43 = vpop.permute.xlu1 %2407  ;;  %v6111_v52 = vrot.slane %v1797_v32, %v6909_v35 }
 0x644   :  { %7061 = vst [vmem:[#allocation155_spill] sm:$0xff] %v6089_v10  ;;  %v7128_v10 = vld [vmem:[#allocation29_spill] sm:$0xff] }
 0x645   :  { %v2005_v28 = vsel %vm1963_vm10, %v6111_v52, 0.0  ;;  %v2007_v32 = vsel %vm1965_vm9, %v6111_v52, 0.0  ;;  %v2008_v11 = vsel %vm1966_vm8, %v6111_v52, 0.0  ;;  %vm1968_vm10 = vcmp.eq.s32.totalorder %v5158_v29, %v5063_v2 }
 0x646   :  { %v2010_v61 = vsel %vm1968_vm10, %v6111_v52, 0.0  ;;  %vm1970_vm9 = vcmp.eq.s32.totalorder %v5158_v29, %v7072_v37  ;;  %vm1967_vm8 = vcmp.eq.s32.totalorder %v5158_v29, %v7074_v63  ;;  %v7079_v63 = vld [vmem:[#allocation19_spill] sm:$0xff] }
 0x647   :  { %v6097_v51 = vpop.permute.xlu0 %2427  ;;  %v6099_v12 = vpop.permute.xlu1 %2415  ;;  %v2012_v8 = vsel %vm1970_vm9, %v6111_v52, 0.0  ;;  %v2009_v2 = vsel %vm1967_vm8, %v6111_v52, 0.0  ;;  %vm1974_vm9 = vcmp.eq.s32.totalorder %v5158_v29, %v7079_v63 }
 0x648   :  { %7062 = vst [vmem:[#allocation156_spill] sm:$0xff] %v6097_v51 }
 0x64b   :  { %v6104_v33 = vpop.permute.xlu0 %2435  ;;  %v6108_v21 = vpop.permute.xlu1 %2423 }
 0x64c   :  { %7063 = vst [vmem:[#allocation157_spill] sm:$0xff] %v6104_v33  ;;  %7064 = vst [vmem:[#allocation158_spill] sm:$0xff] %v6108_v21 }
 0x64f   :  { %v6113_v55 = vpop.permute.xlu0 %2446  ;;  %v6115_v13 = vpop.permute.xlu1 %2431 }
 0x650   :  { %7065 = vst [vmem:[#allocation159_spill] sm:$0xff] %v6113_v55 }
 0x653   :  { %v6120_v57 = vpop.permute.xlu0 %2454  ;;  %v6124_v25 = vpop.permute.xlu1 %2439 }
 0x654   :  { %7066 = vst [vmem:[#allocation160_spill] sm:$0xff] %v6120_v57  ;;  %7067 = vst [vmem:[#allocation161_spill] sm:$0xff] %v6124_v25 }
 0x657   :  { %v6129_v41 = vpop.permute.xlu0 %2462  ;;  %v6132_v20 = vpop.permute.xlu1 %2450 }
 0x658   :  { %2037 = vadd.xlane.f32.xlu0 %v2005_v28  ;;  %7068 = vst [vmem:[#allocation162_spill] sm:$0xff] %v6129_v41  ;;  %7069 = vst [vmem:[#allocation163_spill] sm:$0xff] %v6132_v20  ;;  %v7070_v28 = vld [vmem:[#allocation36_spill] sm:$0xff] }
 0x659   :  { %vm1964_vm7 = vcmp.eq.s32.totalorder %v5158_v29, %v7070_v28  ;;  %v7075_v28 = vld [vmem:[#allocation24_spill] sm:$0xff] }
 0x65a   :  { %v2006_v27 = vsel %vm1964_vm7, %v6111_v52, 0.0  ;;  %vm1972_vm10 = vcmp.eq.s32.totalorder %v5158_v29, %v7075_v28 }
 0x65b   :  { %v2014_v37 = vsel %vm1972_vm10, %v6111_v52, 0.0 }
 0x65c   :  { %2041 = vadd.xlane.f32.xlu0 %v2007_v32  ;;  %v6139_v32 = vpop.permute.xlu0 %2470 }
 0x65d   :  { %7071 = vst [vmem:[#allocation36_spill] sm:$0xff] %v6139_v32 }
 0x660   :  { %2043 = vadd.xlane.f32.xlu0 %v2008_v11  ;;  %v6144_v11 = vpop.permute.xlu1 %2458  ;;  %v6153_v26 = vpop.permute.xlu0 %2478 }
 0x661   :  { %7073 = vst [vmem:[#allocation17_spill] sm:$0xff] %v6144_v11  ;;  %7076 = vst [vmem:[#allocation25_spill] sm:$0xff] %v6153_v26 }
 0x664   :  { %2047 = vadd.xlane.f32.xlu0 %v2010_v61  ;;  %v1805_v61 = vadd.f32 %v4484_v46, %v6047_v58  ;;  %v6158_v39 = vpop.permute.xlu1 %2466  ;;  %v2016_v46 = vsel %vm1974_vm9, %v6111_v52, 0.0  ;;  %v7080_v58 = vld [vmem:[#allocation33_spill] sm:$0xff]  ;;  %v6169_v28 = vpop.permute.xlu0 %2486 }
 0x665   :  { %2039 = vadd.xlane.f32.xlu1 %v2006_v27  ;;  %v7077_v27 = vld [vmem:[#allocation39_spill] sm:$0xff]  ;;  %7078 = vst [vmem:[#allocation24_spill] sm:$0xff] %v6158_v39  ;;  %vm1971_vm8 = vcmp.eq.s32.totalorder %v5158_v29, %v7080_v58 }
 0x666   :  { %vm1969_vm7 = vcmp.eq.s32.totalorder %v5158_v29, %v7077_v27  ;;  %7081 = vst [vmem:[#allocation39_spill] sm:$0xff] %v6169_v28  ;;  %v7082_v27 = vld [vmem:[#allocation21_spill] sm:$0xff]  ;;  %v7085_v58 = vld [vmem:[#allocation35_spill] sm:$0xff] }
 0x667   :  { %vm1976_vm10 = vcmp.eq.s32.totalorder %v5158_v29, %v7082_v27  ;;  %vm1978_vm9 = vcmp.eq.s32.totalorder %v5158_v29, %v7085_v58 }
 0x668   :  { %2051 = vadd.xlane.f32.xlu0 %v2012_v8  ;;  %v2011_v8 = vsel %vm1969_vm7, %v6111_v52, 0.0  ;;  %v6176_v63 = vpop.permute.xlu1 %2474  ;;  %vm1973_vm7 = vcmp.eq.s32.totalorder %v5158_v29, %v7084_v17  ;;  %v2020_v28 = vsel %vm1978_vm9, %v6111_v52, 0.0 }
 0x669   :  { %2045 = vadd.xlane.f32.xlu1 %v2009_v2  ;;  %v6164_v2 = vrot.slane %v1805_v61, %v6908_v42  ;;  %7083 = vst [vmem:[#allocation19_spill] sm:$0xff] %v6176_v63  ;;  %v2018_v61 = vsel %vm1976_vm10, %v6111_v52, 0.0 }
 0x66c   :  { %2055 = vadd.xlane.f32.xlu0 %v2014_v37  ;;  %v2013_v37 = vsel %vm1971_vm8, %v6111_v52, 0.0  ;;  %vm1975_vm8 = vcmp.eq.s32.totalorder %v5158_v29, %v7087_v5  ;;  %v6192_v31 = vpop.permute.xlu1 %2482  ;;  %v7092_v5 = vld [vmem:[#allocation43_spill] sm:$0xff] }
 0x66d   :  { %2049 = vadd.xlane.f32.xlu1 %v2011_v8  ;;  %v1821_v8 = vrot.slane %v6164_v2, %v6908_v42  ;;  %7088 = vst [vmem:[#allocation21_spill] sm:$0xff] %v6192_v31  ;;  %v2017_v17 = vsel %vm1975_vm8, %v6111_v52, 0.0  ;;  %vm2237_vm9 = vcmp.eq.s32.totalorder %v5158_v29, %v7092_v5  ;;  %v7096_v5 = vld [vmem:[#allocation51_spill] sm:$0xff] }
 0x66f   :  { %v6185_v27 = vrot.slane %v1821_v8, %v6909_v35  ;;  %v7090_v8 = vld [vmem:[#allocation37_spill] sm:$0xff] }
 0x670   :  { %2059 = vadd.xlane.f32.xlu0 %v2016_v46  ;;  %v2015_v46 = vsel %vm1973_vm7, %v6111_v52, 0.0  ;;  %vm1977_vm7 = vcmp.eq.s32.totalorder %v5158_v29, %v7090_v8  ;;  %v7095_v8 = vld [vmem:[#allocation31_spill] sm:$0xff] }
 0x671   :  { %2053 = vadd.xlane.f32.xlu1 %v2013_v37  ;;  %v6187_v37 = vpop.permute.xlu0 %2494  ;;  %v2279_v60 = vsel %vm2237_vm9, %v6185_v27, 0.0 }
 0x672   :  { %7086 = vst [vmem:[#allocation33_spill] sm:$0xff] %v6187_v37  ;;  %v2019_v37 = vsel %vm1977_vm7, %v6111_v52, 0.0  ;;  %vm2239_vm7 = vcmp.eq.s32.totalorder %v5158_v29, %v7096_v5  ;;  %v7100_v5 = vld [vmem:[#allocation16_spill] sm:$0xff] }
 0x674   :  { %2063 = vadd.xlane.f32.xlu0 %v2018_v61  ;;  %v7089_v61 = vld [vmem:[#allocation28_spill] sm:$0xff] }
 0x675   :  { %2057 = vadd.xlane.f32.xlu1 %v2015_v46  ;;  %vm2235_vm10 = vcmp.eq.s32.totalorder %v5158_v29, %v7089_v61  ;;  %v6200_v58 = vpop.permute.xlu0 %2502  ;;  %v7094_v61 = vld [vmem:[#allocation50_spill] sm:$0xff] }
 0x676   :  { %v2277_v46 = vsel %vm2235_vm10, %v6185_v27, 0.0  ;;  %7091 = vst [vmem:[#allocation18_spill] sm:$0xff] %v6200_v58  ;;  %vm2236_vm8 = vcmp.eq.s32.totalorder %v5158_v29, %v7094_v61  ;;  %vm2238_vm10 = vcmp.eq.s32.totalorder %v5158_v29, %v7095_v8  ;;  %v2281_v58 = vsel %vm2239_vm7, %v6185_v27, 0.0  ;;  %v7098_v61 = vld [vmem:[#allocation15_spill] sm:$0xff]  ;;  %v7099_v8 = vld [vmem:[#allocation52_spill] sm:$0xff] }
 0x677   :  { %v2280_v52 = vsel %vm2238_vm10, %v6185_v27, 0.0  ;;  %vm2240_vm9 = vcmp.eq.s32.totalorder %v5158_v29, %v7098_v61  ;;  %vm2242_vm10 = vcmp.eq.s32.totalorder %v5158_v29, %v7100_v5  ;;  %v7102_v61 = vld [vmem:[#allocation53_spill] sm:$0xff]  ;;  %v7104_v5 = vld [vmem:[#allocation54_spill] sm:$0xff] }
 0x678   :  { %2067 = vadd.xlane.f32.xlu0 %v2020_v28  ;;  %v6205_v28 = vpop.permute.xlu1 %2490  ;;  %vm2243_vm7 = vcmp.eq.s32.totalorder %v5158_v29, %v7102_v61  ;;  %v7105_v61 = vld [vmem:[#allocation48_spill] sm:$0xff] }
 0x679   :  { %2061 = vadd.xlane.f32.xlu1 %v2017_v17  ;;  %7093 = vst [vmem:[#allocation35_spill] sm:$0xff] %v6205_v28  ;;  %v2278_v17 = vsel %vm2236_vm8, %v6185_v27, 0.0  ;;  %vm2241_vm8 = vcmp.eq.s32.totalorder %v5158_v29, %v7099_v8  ;;  %v7103_v8 = vld [vmem:[#allocation46_spill] sm:$0xff] }
 0x67a   :  { %v2283_v28 = vsel %vm2241_vm8, %v6185_v27, 0.0  ;;  %vm2245_vm8 = vcmp.eq.s32.totalorder %v5158_v29, %v7104_v5 }
 0x67c   :  { %2309 = vadd.xlane.f32.xlu0 %v2277_v46  ;;  %v6213_v46 = vpop.permute.xlu0 %2578 }
 0x67d   :  { %2065 = vadd.xlane.f32.xlu1 %v2019_v37  ;;  %v6218_v37 = vpop.permute.xlu1 %2498 }
 0x67e   :  { %7097 = vst [vmem:[#allocation20_spill] sm:$0xff] %v6218_v37  ;;  %v2284_v37 = vsel %vm2242_vm10, %v6185_v27, 0.0  ;;  %vm2246_vm10 = vcmp.eq.s32.totalorder %v5158_v29, %v7105_v61  ;;  %v7107_v61 = vld [vmem:[#allocation66_spill] sm:$0xff] }
 0x680   :  { %2313 = vadd.xlane.f32.xlu0 %v2279_v60  ;;  %v2282_v60 = vsel %vm2240_vm9, %v6185_v27, 0.0  ;;  %vm2244_vm9 = vcmp.eq.s32.totalorder %v5158_v29, %v7103_v8  ;;  %v7106_v8 = vld [vmem:[#allocation55_spill] sm:$0xff] }
 0x681   :  { %2311 = vadd.xlane.f32.xlu1 %v2278_v17  ;;  %v6226_v17 = vpop.permute.xlu0 %2586  ;;  %v2286_v26 = vsel %vm2244_vm9, %v6185_v27, 0.0  ;;  %vm2248_vm9 = vcmp.eq.s32.totalorder %v5158_v29, %v5363_v3 }
 0x684   :  { %2315 = vadd.xlane.f32.xlu0 %v2280_v52  ;;  %v6231_v52 = vpop.permute.xlu1 %2506 }
 0x685   :  { %2317 = vadd.xlane.f32.xlu1 %v2281_v58  ;;  %7101 = vst [vmem:[#allocation28_spill] sm:$0xff] %v6231_v52  ;;  %v2285_v58 = vsel %vm2243_vm7, %v6185_v27, 0.0  ;;  %vm2247_vm7 = vcmp.eq.s32.totalorder %v5158_v29, %v7106_v8  ;;  %v7108_v8 = vld [vmem:[#allocation56_spill] sm:$0xff] }
 0x688   :  { %2319 = vadd.xlane.f32.xlu0 %v2282_v60  ;;  %v6239_v60 = vpop.permute.xlu0 %2594  ;;  %v6246_v52 = vpop.permute.xlu1 %2582 }
 0x689   :  { %2321 = vadd.xlane.f32.xlu1 %v2283_v28  ;;  %v1790_v28 = vcombine.high %v6102_v19, %v6102_v19  ;;  %v2289_v19 = vsel %vm2247_vm7, %v6185_v27, 0.0 }
 0x68b   :  { %v1804_v5 = vrot.slane %v1790_v28, %v6908_v42 }
 0x68c   :  { %2323 = vadd.xlane.f32.xlu0 %v2284_v37  ;;  %v2287_v37 = vsel %vm2245_vm8, %v6185_v27, 0.0  ;;  %v6260_v31 = vpop.permute.xlu1 %2590  ;;  %vm2249_vm8 = vcmp.eq.s32.totalorder %v5158_v29, %v7107_v61 }
 0x68d   :  { %2325 = vadd.xlane.f32.xlu1 %v2285_v58  ;;  %v2288_v58 = vsel %vm2246_vm10, %v6185_v27, 0.0  ;;  %v2291_v28 = vsel %vm2249_vm8, %v6185_v27, 0.0  ;;  %vm2250_vm10 = vcmp.eq.s32.totalorder %v5158_v29, %v7108_v8  ;;  %v7111_v8 = vld [vmem:[#allocation34_spill] sm:$0xff] }
 0x68e   :  { %v2292_v3 = vsel %vm2250_vm10, %v6185_v27, 0.0  ;;  %vm1981_vm8 = vcmp.eq.s32.totalorder %v5158_v29, %v7111_v8  ;;  %v7115_v8 = vld [vmem:[#allocation32_spill] sm:$0xff] }
 0x690   :  { %2327 = vadd.xlane.f32.xlu0 %v2286_v26  ;;  %v6255_v26 = vpop.permute.xlu0 %2602  ;;  %v6276_v63 = vpop.permute.xlu1 %2598 }
 0x691   :  { %2329 = vadd.xlane.f32.xlu1 %v2287_v37  ;;  %v2290_v37 = vsel %vm2248_vm9, %v6185_v27, 0.0 }
 0x694   :  { %2331 = vadd.xlane.f32.xlu0 %v2288_v58  ;;  %v6266_v58 = vrot.slane %v1804_v5, %v6909_v35  ;;  %v6271_v59 = vpop.permute.xlu0 %2610  ;;  %v7110_v5 = vld [vmem:[#allocation42_spill] sm:$0xff] }
 0x695   :  { %2333 = vadd.xlane.f32.xlu1 %v2289_v19  ;;  %v7109_v19 = vld [vmem:[#allocation23_spill] sm:$0xff]  ;;  %vm1980_vm9 = vcmp.eq.s32.totalorder %v5158_v29, %v7110_v5  ;;  %v7114_v5 = vld [vmem:[#allocation22_spill] sm:$0xff] }
 0x696   :  { %vm1979_vm7 = vcmp.eq.s32.totalorder %v5158_v29, %v7109_v19  ;;  %v2022_v61 = vsel %vm1980_vm9, %v6266_v58, 0.0  ;;  %v2023_v27 = vsel %vm1981_vm8, %v6266_v58, 0.0  ;;  %v7113_v19 = vld [vmem:[#allocation44_spill] sm:$0xff]  ;;  %vm1984_vm9 = vcmp.eq.s32.totalorder %v5158_v29, %v7115_v8  ;;  %v7119_v8 = vld [vmem:[#allocation30_spill] sm:$0xff] }
 0x697   :  { %vm1982_vm10 = vcmp.eq.s32.totalorder %v5158_v29, %v7113_v19  ;;  %v2026_v41 = vsel %vm1984_vm9, %v6266_v58, 0.0  ;;  %v7117_v19 = vld [vmem:[#allocation41_spill] sm:$0xff] }
 0x698   :  { %2335 = vadd.xlane.f32.xlu0 %v2290_v37  ;;  %v2021_v37 = vsel %vm1979_vm7, %v6266_v58, 0.0  ;;  %v2024_v32 = vsel %vm1982_vm10, %v6266_v58, 0.0  ;;  %vm1983_vm7 = vcmp.eq.s32.totalorder %v5158_v29, %v7114_v5  ;;  %vm1985_vm8 = vcmp.eq.s32.totalorder %v5158_v29, %v7117_v19  ;;  %v7118_v5 = vld [vmem:[#allocation26_spill] sm:$0xff]  ;;  %v7121_v19 = vld [vmem:[#allocation40_spill] sm:$0xff] }
 0x699   :  { %2337 = vadd.xlane.f32.xlu1 %v2291_v28  ;;  %v6284_v28 = vpop.permute.xlu0 %2618  ;;  %v2027_v57 = vsel %vm1985_vm8, %v6266_v58, 0.0  ;;  %vm1986_vm10 = vcmp.eq.s32.totalorder %v5158_v29, %v7118_v5  ;;  %vm1988_vm9 = vcmp.eq.s32.totalorder %v5158_v29, %v7121_v19  ;;  %v7123_v5 = vld [vmem:[#allocation38_spill] sm:$0xff]  ;;  %v7126_v19 = vld [vmem:[#allocation47_spill] sm:$0xff] }
 0x69a   :  { %7112 = vst [vmem:[#allocation37_spill] sm:$0xff] %v6284_v28  ;;  %v2030_v51 = vsel %vm1988_vm9, %v6266_v58, 0.0  ;;  %vm1989_vm8 = vcmp.eq.s32.totalorder %v5158_v29, %v7123_v5  ;;  %vm1992_vm9 = vcmp.eq.s32.totalorder %v5158_v29, %v7128_v10 }
 0x69c   :  { %2339 = vadd.xlane.f32.xlu0 %v2292_v3  ;;  %v6289_v3 = vpop.permute.xlu1 %2606 }
 0x69d   :  { %2069 = vadd.xlane.f32.xlu1 %v2021_v37  ;;  %v2025_v37 = vsel %vm1983_vm7, %v6266_v58, 0.0  ;;  %vm1987_vm7 = vcmp.eq.s32.totalorder %v5158_v29, %v7119_v8  ;;  %v7124_v8 = vld [vmem:[#allocation27_spill] sm:$0xff] }
 0x69e   :  { %v2029_v39 = vsel %vm1987_vm7, %v6266_v58, 0.0  ;;  %vm1991_vm7 = vcmp.eq.s32.totalorder %v5158_v29, %v7126_v19 }
 0x6a0   :  { %2071 = vadd.xlane.f32.xlu0 %v2022_v61  ;;  %v6297_v61 = vpop.permute.xlu0 %2626 }
 0x6a1   :  { %2073 = vadd.xlane.f32.xlu1 %v2023_v27  ;;  %7116 = vst [vmem:[#allocation43_spill] sm:$0xff] %v6297_v61  ;;  %v6302_v27 = vpop.permute.xlu1 %2614 }
 0x6a4   :  { %2075 = vadd.xlane.f32.xlu0 %v2024_v32  ;;  %v2028_v32 = vsel %vm1986_vm10, %v6266_v58, 0.0  ;;  %vm1990_vm10 = vcmp.eq.s32.totalorder %v5158_v29, %v7124_v8  ;;  %v7129_v8 = vld [vmem:[#allocation49_spill] sm:$0xff] }
 0x6a5   :  { %2077 = vadd.xlane.f32.xlu1 %v2025_v37  ;;  %v6310_v37 = vpop.permute.xlu0 %2634 }
 0x6a6   :  { %7120 = vst [vmem:[#allocation50_spill] sm:$0xff] %v6310_v37 }
 0x6a8   :  { %2079 = vadd.xlane.f32.xlu0 %v2026_v41  ;;  %v6315_v41 = vpop.permute.xlu1 %2622 }
 0x6a9   :  { %2081 = vadd.xlane.f32.xlu1 %v2027_v57  ;;  %7122 = vst [vmem:[#allocation31_spill] sm:$0xff] %v6315_v41  ;;  %v1814_v57 = vcombine.high %v6164_v2, %v6164_v2  ;;  %v6325_v61 = vpop.permute.xlu0 %2645  ;;  %v2033_v2 = vsel %vm1991_vm7, %v6266_v58, 0.0 }
 0x6aa   :  { %7125 = vst [vmem:[#allocation51_spill] sm:$0xff] %v6325_v61 }
 0x6ab   :  { %v1828_v5 = vrot.slane %v1814_v57, %v6908_v42  ;;  %v7131_v57 = vld [vmem:[#allocation45_spill] sm:$0xff] }
 0x6ac   :  { %2083 = vadd.xlane.f32.xlu0 %v2028_v32  ;;  %v2031_v32 = vsel %vm1989_vm8, %v6266_v58, 0.0  ;;  %vm1993_vm8 = vcmp.eq.s32.totalorder %v5158_v29, %v7129_v8 }
 0x6ad   :  { %2085 = vadd.xlane.f32.xlu1 %v2029_v39  ;;  %v2032_v39 = vsel %vm1990_vm10, %v6266_v58, 0.0  ;;  %v6340_v21 = vrot.slane %v1828_v5, %v6909_v35  ;;  %v2035_v42 = vsel %vm1993_vm8, %v6266_v58, 0.0  ;;  %vm1994_vm10 = vcmp.eq.s32.totalorder %v5158_v29, %v7131_v57  ;;  %v7134_v35 = vld [vmem:[#allocation57_spill] sm:$0xff] }
 0x6ae   :  { %v2036_v10 = vsel %vm1994_vm10, %v6266_v58, 0.0  ;;  %v7136_v57 = vld [vmem:[#allocation73_spill] sm:$0xff] }
 0x6af   :  { %vm2253_vm8 = vcmp.eq.s32.totalorder %v5158_v29, %v7136_v57  ;;  %v7141_v57 = vld [vmem:[#allocation59_spill] sm:$0xff] }
 0x6b0   :  { %2087 = vadd.xlane.f32.xlu0 %v2030_v51  ;;  %v6331_v51 = vpop.permute.xlu1 %2630 }
 0x6b1   :  { %2089 = vadd.xlane.f32.xlu1 %v2031_v32  ;;  %7127 = vst [vmem:[#allocation15_spill] sm:$0xff] %v6331_v51  ;;  %v2034_v32 = vsel %vm1992_vm9, %v6266_v58, 0.0  ;;  %vm2252_vm9 = vcmp.eq.s32.totalorder %v5158_v29, %v7134_v35  ;;  %v2295_v58 = vsel %vm2253_vm8, %v6340_v21, 0.0  ;;  %v7139_v35 = vld [vmem:[#allocation75_spill] sm:$0xff] }
 0x6b2   :  { %v2294_v8 = vsel %vm2252_vm9, %v6340_v21, 0.0  ;;  %vm2256_vm9 = vcmp.eq.s32.totalorder %v5158_v29, %v7141_v57  ;;  %v7146_v57 = vld [vmem:[#allocation79_spill] sm:$0xff] }
 0x6b4   :  { %2091 = vadd.xlane.f32.xlu0 %v2032_v39  ;;  %v6342_v39 = vpop.permute.xlu0 %2653  ;;  %v6347_v19 = vpop.permute.xlu1 %2638 }
 0x6b5   :  { %2093 = vadd.xlane.f32.xlu1 %v2033_v2  ;;  %7130 = vst [vmem:[#allocation52_spill] sm:$0xff] %v6342_v39  ;;  %7132 = vst [vmem:[#allocation16_spill] sm:$0xff] %v6347_v19  ;;  %v7133_v2 = vld [vmem:[#allocation71_spill] sm:$0xff]  ;;  %v2298_v39 = vsel %vm2256_vm9, %v6340_v21, 0.0 }
 0x6b6   :  { %vm2251_vm7 = vcmp.eq.s32.totalorder %v5158_v29, %v7133_v2  ;;  %v7138_v2 = vld [vmem:[#allocation58_spill] sm:$0xff]  ;;  %v7167_v19 = vld [vmem:[#allocation87_spill] sm:$0xff] }
 0x6b7   :  { %vm2254_vm10 = vcmp.eq.s32.totalorder %v5158_v29, %v7138_v2  ;;  %v7143_v2 = vld [vmem:[#allocation77_spill] sm:$0xff] }
 0x6b8   :  { %2095 = vadd.xlane.f32.xlu0 %v2034_v32  ;;  %v2293_v32 = vsel %vm2251_vm7, %v6340_v21, 0.0  ;;  %v6355_v5 = vpop.permute.xlu0 %2661  ;;  %vm2255_vm7 = vcmp.eq.s32.totalorder %v5158_v29, %v7139_v35  ;;  %vm2257_vm8 = vcmp.eq.s32.totalorder %v5158_v29, %v7143_v2  ;;  %v7144_v35 = vld [vmem:[#allocation60_spill] sm:$0xff]  ;;  %v7148_v2 = vld [vmem:[#allocation61_spill] sm:$0xff] }
 0x6b9   :  { %2097 = vadd.xlane.f32.xlu1 %v2035_v42  ;;  %7135 = vst [vmem:[#allocation53_spill] sm:$0xff] %v6355_v5  ;;  %v6360_v42 = vpop.permute.xlu1 %2649  ;;  %v2297_v5 = vsel %vm2255_vm7, %v6340_v21, 0.0  ;;  %vm2259_vm7 = vcmp.eq.s32.totalorder %v5158_v29, %v7146_v57  ;;  %vm2260_vm9 = vcmp.eq.s32.totalorder %v5158_v29, %v7148_v2  ;;  %v7151_v57 = vld [vmem:[#allocation62_spill] sm:$0xff]  ;;  %v7153_v2 = vld [vmem:[#allocation83_spill] sm:$0xff] }
 0x6ba   :  { %7137 = vst [vmem:[#allocation46_spill] sm:$0xff] %v6360_v42  ;;  %v2301_v11 = vsel %vm2259_vm7, %v6340_v21, 0.0  ;;  %vm2263_vm7 = vcmp.eq.s32.totalorder %v5158_v29, %v7153_v2  ;;  %v7158_v2 = vld [vmem:[#allocation64_spill] sm:$0xff] }
 0x6bc   :  { %2099 = vadd.xlane.f32.xlu0 %v2036_v10  ;;  %v2296_v10 = vsel %vm2254_vm10, %v6340_v21, 0.0  ;;  %vm2258_vm10 = vcmp.eq.s32.totalorder %v5158_v29, %v7144_v35  ;;  %v7149_v35 = vld [vmem:[#allocation81_spill] sm:$0xff] }
 0x6bd   :  { %2341 = vadd.xlane.f32.xlu1 %v2293_v32  ;;  %v6368_v32 = vpop.permute.xlu0 %2669 }
 0x6be   :  { %7140 = vst [vmem:[#allocation54_spill] sm:$0xff] %v6368_v32  ;;  %v2300_v32 = vsel %vm2258_vm10, %v6340_v21, 0.0  ;;  %vm2262_vm10 = vcmp.eq.s32.totalorder %v5158_v29, %v7151_v57  ;;  %v7156_v57 = vld [vmem:[#allocation85_spill] sm:$0xff] }
 0x6c0   :  { %2343 = vadd.xlane.f32.xlu0 %v2294_v8  ;;  %v6373_v8 = vpop.permute.xlu1 %2657 }
 0x6c1   :  { %2345 = vadd.xlane.f32.xlu1 %v2295_v58  ;;  %7142 = vst [vmem:[#allocation48_spill] sm:$0xff] %v6373_v8  ;;  %v2299_v58 = vsel %vm2257_vm8, %v6340_v21, 0.0  ;;  %vm2261_vm8 = vcmp.eq.s32.totalorder %v5158_v29, %v7149_v35  ;;  %v7154_v35 = vld [vmem:[#allocation63_spill] sm:$0xff] }
 0x6c4   :  { %2347 = vadd.xlane.f32.xlu0 %v2296_v10  ;;  %v6381_v10 = vpop.permute.xlu0 %2677 }
 0x6c5   :  { %2349 = vadd.xlane.f32.xlu1 %v2297_v5  ;;  %7145 = vst [vmem:[#allocation55_spill] sm:$0xff] %v6381_v10  ;;  %v6386_v5 = vpop.permute.xlu1 %2665  ;;  %v2303_v10 = vsel %vm2261_vm8, %v6340_v21, 0.0  ;;  %vm2265_vm8 = vcmp.eq.s32.totalorder %v5158_v29, %v7156_v57 }
 0x6c6   :  { %7147 = vst [vmem:[#allocation66_spill] sm:$0xff] %v6386_v5  ;;  %v2304_v5 = vsel %vm2262_vm10, %v6340_v21, 0.0  ;;  %vm2266_vm10 = vcmp.eq.s32.totalorder %v5158_v29, %v7158_v2 }
 0x6c8   :  { %2351 = vadd.xlane.f32.xlu0 %v2298_v39  ;;  %v2302_v39 = vsel %vm2260_vm9, %v6340_v21, 0.0  ;;  %vm2264_vm9 = vcmp.eq.s32.totalorder %v5158_v29, %v7154_v35 }
 0x6c9   :  { %2353 = vadd.xlane.f32.xlu1 %v2299_v58  ;;  %v6394_v58 = vpop.permute.xlu0 %2685 }
 0x6ca   :  { %7150 = vst [vmem:[#allocation56_spill] sm:$0xff] %v6394_v58  ;;  %v2306_v58 = vsel %vm2264_vm9, %v6340_v21, 0.0 }
 0x6cc   :  { %2355 = vadd.xlane.f32.xlu0 %v2300_v32  ;;  %v6399_v32 = vpop.permute.xlu1 %2673 }
 0x6cd   :  { %2357 = vadd.xlane.f32.xlu1 %v2301_v11  ;;  %7152 = vst [vmem:[#allocation23_spill] sm:$0xff] %v6399_v32  ;;  %v2305_v11 = vsel %vm2263_vm7, %v6340_v21, 0.0  ;;  %v2307_v32 = vsel %vm2265_vm8, %v6340_v21, 0.0 }
 0x6d0   :  { %2359 = vadd.xlane.f32.xlu0 %v2302_v39  ;;  %v6407_v39 = vpop.permute.xlu0 %2693 }
 0x6d1   :  { %2361 = vadd.xlane.f32.xlu1 %v2303_v10  ;;  %7155 = vst [vmem:[#allocation42_spill] sm:$0xff] %v6407_v39  ;;  %v6412_v10 = vpop.permute.xlu1 %2681 }
 0x6d2   :  { %7157 = vst [vmem:[#allocation34_spill] sm:$0xff] %v6412_v10 }
 0x6d4   :  { %2363 = vadd.xlane.f32.xlu0 %v2304_v5  ;;  %v2308_v5 = vsel %vm2266_vm10, %v6340_v21, 0.0 }
 0x6d5   :  { %2365 = vadd.xlane.f32.xlu1 %v2305_v11  ;;  %v6418_v11 = vpop.permute.xlu0 %2701  ;;  %v6420_v35 = vpop.permute.xlu1 %2689 }
 0x6d6   :  { %7159 = vst [vmem:[#allocation44_spill] sm:$0xff] %v6418_v11  ;;  %7160 = vst [vmem:[#allocation22_spill] sm:$0xff] %v6420_v35 }
 0x6d8   :  { %2367 = vadd.xlane.f32.xlu0 %v2306_v58 }
 0x6d9   :  { %2369 = vadd.xlane.f32.xlu1 %v2307_v32  ;;  %v6422_v41 = vpop.permute.xlu1 %2697 }
 0x6da   :  { %7161 = vst [vmem:[#allocation32_spill] sm:$0xff] %v6422_v41 }
 0x6dc   :  { %2371 = vadd.xlane.f32.xlu0 %v2308_v5 }
 0x6dd   :  { %v6424_v28 = vpop.permute.xlu1 %2705 }
 0x6de   :  { %7162 = vst [vmem:[#allocation41_spill] sm:$0xff] %v6424_v28 }
 0x6e1   :  { %v2038_v39 = vpop.xlane.xlu0 %2037 }
 0x6e5   :  { %v2042_v57 = vpop.xlane.xlu0 %2041 }
 0x6e9   :  { %v2044_v58 = vpop.xlane.xlu0 %2043 }
 0x6ea   :  { %3342 = vbcast.lane.b32.xlu1 %v5600_v23, 336 }
 0x6ed   :  { %v2048_v10 = vpop.xlane.xlu0 %2047 }
 0x6ee   :  { %v2040_v8 = vpop.xlane.xlu1 %2039  ;;  %3346 = vbcast.lane.b32.xlu1 %v5600_v23, 344 }
 0x6ef   :  { %v2541_v25 = vadd.f32 %v6075_v7, %v2040_v8  ;;  %v7170_v8 = vld [vmem:[#allocation67_spill] sm:$0xff] }
 0x6f1   :  { %v2052_v29 = vpop.xlane.xlu0 %2051 }
 0x6f2   :  { %3275 = vbcast.lane.b32.xlu0 %v5581_v14, 336  ;;  %v2046_v21 = vpop.xlane.xlu1 %2045  ;;  %3350 = vbcast.lane.b32.xlu1 %v5600_v23, 352 }
 0x6f5   :  { %v6430_v32 = vpop.xlane.xlu0 %2055 }
 0x6f6   :  { %3279 = vbcast.lane.b32.xlu0 %v5581_v14, 344  ;;  %v2050_v2 = vpop.xlane.xlu1 %2049  ;;  %3354 = vbcast.lane.b32.xlu1 %v5600_v23, 360 }
 0x6f9   :  { %v6434_v5 = vpop.xlane.xlu0 %2059 }
 0x6fa   :  { %7163 = vst [vmem:[#allocation26_spill] sm:$0xff] %v6434_v5  ;;  %3283 = vbcast.lane.b32.xlu0 %v5581_v14, 352  ;;  %v2054_v28 = vpop.xlane.xlu1 %2053  ;;  %3358 = vbcast.lane.b32.xlu1 %v5600_v23, 368  ;;  %v2540_v5 = vadd.f32 %v6073_v24, %v2038_v39  ;;  %v2543_v24 = vadd.f32 %v6083_v0, %v2044_v58 }
 0x6fc   :  { %v2964_v37 = vmul.f32 %v7167_v19, %v2540_v5  ;;  %v2967_v0 = vmul.f32 %v7170_v8, %v2543_v24  ;;  %v7173_v24 = vld [vmem:[#allocation69_spill] sm:$0xff] }
 0x6fd   :  { %v6438_v11 = vpop.xlane.xlu0 %2063 }
 0x6fe   :  { %3287 = vbcast.lane.b32.xlu0 %v5581_v14, 360  ;;  %v6441_v41 = vpop.xlane.xlu1 %2057  ;;  %3362 = vbcast.lane.b32.xlu1 %v5600_v23, 376 }
 0x6ff   :  { %7164 = vst [vmem:[#allocation30_spill] sm:$0xff] %v6441_v41  ;;  %v2542_v41 = vadd.f32 %v6079_v30, %v2042_v57  ;;  %v7169_v30 = vld [vmem:[#allocation65_spill] sm:$0xff] }
 0x700   :  { %v2965_v57 = vmul.f32 %v7169_v30, %v2541_v25 }
 0x701   :  { %v6444_v35 = vpop.xlane.xlu0 %2067 }
 0x702   :  { %7165 = vst [vmem:[#allocation40_spill] sm:$0xff] %v6444_v35  ;;  %3291 = vbcast.lane.b32.xlu0 %v5581_v14, 368  ;;  %v6447_v55 = vpop.xlane.xlu1 %2061 }
 0x703   :  { %7166 = vst [vmem:[#allocation38_spill] sm:$0xff] %v6447_v55 }
 0x705   :  { %v2310_v61 = vpop.xlane.xlu0 %2309 }
 0x706   :  { %v2739_v20 = vsub.f32 %v2310_v61, %v6213_v46  ;;  %3295 = vbcast.lane.b32.xlu0 %v5581_v14, 376  ;;  %v6452_v42 = vpop.xlane.xlu1 %2065  ;;  %v7168_v46 = vld [vmem:[#allocation88_spill] sm:$0xff] }
 0x707   :  { %v2966_v61 = vmul.f32 %v7168_v46, %v2542_v41  ;;  %v2544_v41 = vadd.f32 %v6077_v56, %v2046_v21  ;;  %v7172_v21 = vld [vmem:[#allocation89_spill] sm:$0xff] }
 0x708   :  { %v3163_v23 = vmul.f32 %v5740_v54, %v2739_v20 }
 0x709   :  { %v2314_v35 = vpop.xlane.xlu0 %2313  ;;  %v2968_v5 = vmul.f32 %v7172_v21, %v2544_v41  ;;  %v7178_v41 = vld [vmem:[#allocation106_spill] sm:$0xff] }
 0x70a   :  { %v3195_v51 = vadd.f32 %v3163_v23, %v2964_v37  ;;  %v2741_v55 = vsub.f32 %v2314_v35, %v6226_v17  ;;  %v2312_v39 = vpop.xlane.xlu1 %2311  ;;  %v2545_v35 = vadd.f32 %v6087_v40, %v2048_v10  ;;  %v7171_v10 = vld [vmem:[#allocation68_spill] sm:$0xff] }
 0x70b   :  { %v2740_v19 = vsub.f32 %v2312_v39, %v6246_v52  ;;  %v2547_v52 = vadd.f32 %v6091_v43, %v2052_v29  ;;  %v2548_v39 = vadd.f32 %v6085_v15, %v2054_v28 }
 0x70c   :  { %v3396_v14 = vmul.f32 %v5856_v50, %v3195_v51  ;;  %v3165_v33 = vmul.f32 %v5748_v9, %v2741_v55  ;;  %v2969_v56 = vmul.f32 %v7171_v10, %v2545_v35 }
 0x70d   :  { %v2316_v54 = vpop.xlane.xlu0 %2315  ;;  %v3164_v37 = vmul.f32 %v5738_v38, %v2740_v19  ;;  %v7174_v19 = vld [vmem:[#allocation90_spill] sm:$0xff] }
 0x70e   :  { %v4008_v20 = vmul.f32 -1.442695, %v3396_v14  ;;  %v3197_v7 = vadd.f32 %v3165_v33, %v2966_v61  ;;  %v2742_v17 = vsub.f32 %v2316_v54, %v6260_v31  ;;  %v2318_v50 = vpop.xlane.xlu1 %2317  ;;  %v7175_v54 = vld [vmem:[#allocation91_spill] sm:$0xff] }
 0x70f   :  { %v3196_v55 = vadd.f32 %v3164_v37, %v2965_v57  ;;  %v2743_v33 = vsub.f32 %v2318_v50, %v6239_v60 }
 0x710   :  { %4354 = vpow2.f32 %v4008_v20  ;;  %v3398_v9 = vmul.f32 %v5862_v1, %v3197_v7  ;;  %v3166_v25 = vmul.f32 %v5746_v22, %v2742_v17  ;;  %v2546_v1 = vadd.f32 %v6081_v18, %v2050_v2 }
 0x711   :  { %v2320_v38 = vpop.xlane.xlu0 %2319  ;;  %v3397_v31 = vmul.f32 %v5854_v45, %v3196_v55  ;;  %v3167_v23 = vmul.f32 %v5753_v6, %v2743_v33  ;;  %v2971_v45 = vmul.f32 %v7173_v24, %v2547_v52  ;;  %v2549_v2 = vadd.f32 %v6099_v12, %v6430_v32  ;;  %v7183_v24 = vld [vmem:[#allocation50_spill] sm:$0xff] }
 0x712   :  { %v4010_v51 = vmul.f32 -1.442695, %v3398_v9  ;;  %v3198_v58 = vadd.f32 %v3166_v25, %v2967_v0  ;;  %v2744_v40 = vsub.f32 %v2320_v38, %v6276_v63  ;;  %v2322_v22 = vpop.xlane.xlu1 %2321  ;;  %v2972_v20 = vmul.f32 %v7175_v54, %v2548_v39  ;;  %v7177_v0 = vld [vmem:[#allocation130_spill] sm:$0xff] }
 0x713   :  { %v4009_v43 = vmul.f32 -1.442695, %v3397_v31  ;;  %v3199_v63 = vadd.f32 %v3167_v23, %v2968_v5  ;;  %v2745_v46 = vsub.f32 %v2322_v22, %v6255_v26 }
 0x714   :  { %4356 = vpow2.f32 %v4010_v51  ;;  %v3399_v60 = vmul.f32 %v5859_v44, %v3198_v58  ;;  %v3168_v29 = vmul.f32 %v5751_v16, %v2744_v40  ;;  %v2970_v44 = vmul.f32 %v7174_v19, %v2546_v1  ;;  %v7179_v40 = vld [vmem:[#allocation157_spill] sm:$0xff]  ;;  %v7180_v1 = vld [vmem:[#allocation15_spill] sm:$0xff]  ;;  %v7188_v19 = vld [vmem:[#allocation16_spill] sm:$0xff] }
 0x715   :  { %v2324_v61 = vpop.xlane.xlu0 %2323  ;;  %4358 = vpow2.f32 %v4009_v43  ;;  %v3400_v16 = vmul.f32 %v5867_v62, %v3199_v63  ;;  %v3169_v30 = vmul.f32 %v5757_v36, %v2745_v46  ;;  %v7176_v36 = vld [vmem:[#allocation70_spill] sm:$0xff]  ;;  %v2553_v58 = vadd.f32 %v6115_v13, %v6438_v11  ;;  %v7181_v43 = vld [vmem:[#allocation40_spill] sm:$0xff]  ;;  %v7186_v46 = vld [vmem:[#allocation109_spill] sm:$0xff] }
 0x716   :  { %v4011_v14 = vmul.f32 -1.442695, %v3399_v60  ;;  %v3200_v18 = vadd.f32 %v3168_v29, %v2969_v56  ;;  %v2746_v6 = vsub.f32 %v2324_v61, %v6289_v3  ;;  %v2326_v57 = vpop.xlane.xlu1 %2325  ;;  %v2973_v8 = vmul.f32 %v7176_v36, %v2549_v2  ;;  %v7182_v60 = vld [vmem:[#allocation161_spill] sm:$0xff]  ;;  %v7184_v11 = vld [vmem:[#allocation74_spill] sm:$0xff] }
 0x717   :  { %v2747_v28 = vsub.f32 %v2326_v57, %v6271_v59  ;;  %v4012_v3 = vmul.f32 -1.442695, %v3400_v16  ;;  %v3201_v7 = vadd.f32 %v3169_v30, %v2970_v44  ;;  %v2554_v10 = vadd.f32 %v7179_v40, %v6452_v42  ;;  %v7185_v42 = vld [vmem:[#allocation94_spill] sm:$0xff] }
 0x718   :  { %4360 = vpow2.f32 %v4011_v14  ;;  %v3401_v15 = vmul.f32 %v5865_v49, %v3200_v18  ;;  %v3170_v26 = vmul.f32 %v5755_v4, %v2746_v6  ;;  %v2555_v29 = vadd.f32 %v7182_v60, %v7181_v43  ;;  %v7187_v6 = vld [vmem:[#allocation112_spill] sm:$0xff] }
 0x719   :  { %v2328_v37 = vpop.xlane.xlu0 %2327  ;;  %v3171_v17 = vmul.f32 %v5761_v48, %v2747_v28  ;;  %4362 = vpow2.f32 %v4012_v3  ;;  %v3402_v49 = vmul.f32 %v7177_v0, %v3201_v7  ;;  %v2977_v39 = vmul.f32 %v7184_v11, %v2553_v58  ;;  %v7190_v28 = vld [vmem:[#allocation111_spill] sm:$0xff] }
 0x71a   :  { %v4013_v12 = vmul.f32 -1.442695, %v3401_v15  ;;  %v3202_v32 = vadd.f32 %v3170_v26, %v2971_v45  ;;  %v2748_v62 = vsub.f32 %v2328_v37, %v6302_v27  ;;  %v6499_v35 = vpop.xlane.xlu1 %2329  ;;  %v2978_v63 = vmul.f32 %v7185_v42, %v2554_v10  ;;  %v7189_v15 = vld [vmem:[#allocation76_spill] sm:$0xff] }
 0x71b   :  { %v3203_v59 = vadd.f32 %v3171_v17, %v2972_v20  ;;  %v4014_v55 = vmul.f32 -1.442695, %v3402_v49  ;;  %v2979_v26 = vmul.f32 %v7189_v15, %v2555_v29 }
 0x71c   :  { %4364 = vpow2.f32 %v4013_v12  ;;  %v3403_v4 = vmul.f32 %v6063_v47, %v3202_v32  ;;  %v3172_v50 = vmul.f32 %v7178_v41, %v2748_v62 }
 0x71d   :  { %v4355_v9 = vpop.eup %4354  ;;  %v6503_v25 = vpop.xlane.xlu0 %2331  ;;  %v3404_v27 = vmul.f32 %v6067_v53, %v3203_v59  ;;  %4366 = vpow2.f32 %v4014_v55 }
 0x71e   :  { %v3524_v48 = vadd.f32 1.0, %v4355_v9  ;;  %v4015_v52 = vmul.f32 -1.442695, %v3403_v4  ;;  %v3204_v33 = vadd.f32 %v3172_v50, %v2973_v8  ;;  %v6506_v38 = vpop.xlane.xlu1 %2333 }
 0x71f   :  { %v4016_v51 = vmul.f32 -1.442695, %v3404_v27 }
 0x720   :  { %4368 = vpow2.f32 %v4015_v52  ;;  %v3405_v31 = vmul.f32 %v6071_v34, %v3204_v33 }
 0x721   :  { %v4357_v47 = vpop.eup %4356  ;;  %v2336_v56 = vpop.xlane.xlu0 %2335  ;;  %4370 = vrcp.f32 %v3524_v48 }
 0x722   :  { %v3526_v21 = vadd.f32 1.0, %v4357_v47  ;;  %4372 = vpow2.f32 %v4016_v51  ;;  %v4017_v53 = vmul.f32 -1.442695, %v3405_v31  ;;  %v4359_v5 = vpop.eup %4358  ;;  %v2752_v23 = vsub.f32 %v2336_v56, %v7180_v1  ;;  %v2338_v22 = vpop.xlane.xlu1 %2337 }
 0x723   :  { %v3525_v34 = vadd.f32 1.0, %v4359_v5  ;;  %v2753_v45 = vsub.f32 %v2338_v22, %v7183_v24 }
 0x724   :  { %4374 = vpow2.f32 %v4017_v53  ;;  %v3176_v61 = vmul.f32 %v7186_v46, %v2752_v23 }
 0x725   :  { %v4361_v13 = vpop.eup %4360  ;;  %v2340_v14 = vpop.xlane.xlu0 %2339  ;;  %4376 = vrcp.f32 %v3526_v21  ;;  %v3177_v2 = vmul.f32 %v7187_v6, %v2753_v45 }
 0x726   :  { %v3527_v18 = vadd.f32 1.0, %v4361_v13  ;;  %v2754_v44 = vsub.f32 %v2340_v14, %v7188_v19  ;;  %4378 = vrcp.f32 %v3525_v34  ;;  %v6522_v16 = vpop.xlane.xlu1 %2069  ;;  %v6524_v30 = vadd.f32 %v3176_v61, %v2977_v39  ;;  %v4363_v57 = vpop.eup %4362 }
 0x727   :  { %v6528_v20 = vadd.f32 %v3177_v2, %v2978_v63  ;;  %v3528_v7 = vadd.f32 1.0, %v4363_v57 }
 0x728   :  { %v3178_v54 = vmul.f32 %v7190_v28, %v2754_v44  ;;  %4380 = vrcp.f32 %v3527_v18 }
 0x729   :  { %v4365_v3 = vpop.eup %4364  ;;  %v6530_v37 = vpop.xlane.xlu0 %2071  ;;  %4382 = vrcp.f32 %v3528_v7 }
 0x72a   :  { %v3529_v12 = vadd.f32 1.0, %v4365_v3  ;;  %v6532_v32 = vadd.f32 %v3178_v54, %v2979_v26  ;;  %v6534_v17 = vpop.xlane.xlu1 %2073  ;;  %v4367_v62 = vpop.eup %4366 }
 0x72b   :  { %v3530_v8 = vadd.f32 1.0, %v4367_v62 }
 0x72c   :  { %4384 = vrcp.f32 %v3529_v12 }
 0x72d   :  { %v4369_v36 = vpop.eup %4368  ;;  %v6536_v0 = vpop.xlane.xlu0 %2075  ;;  %4386 = vrcp.f32 %v3530_v8 }
 0x72e   :  { %v4371_v49 = vpop.eup %4370  ;;  %v3531_v4 = vadd.f32 1.0, %v4369_v36  ;;  %v6538_v41 = vpop.xlane.xlu1 %2077 }
 0x72f   :  { %v4373_v59 = vpop.eup %4372  ;;  %v3620_v50 = vmul.f32 3.0, %v4371_v49 }
 0x730   :  { %v3532_v9 = vadd.f32 1.0, %v4373_v59  ;;  %4388 = vrcp.f32 %v3531_v4  ;;  %v7191_v4 = vld [vmem:[#allocation46_spill] sm:$0xff] }
 0x731   :  { %v4375_v55 = vpop.eup %4374  ;;  %v6540_v48 = vpop.xlane.xlu0 %2079  ;;  %v3652_v52 = vadd.f32 -1.0, %v3620_v50 }
 0x732   :  { %v4377_v27 = vpop.eup %4376  ;;  %v3533_v33 = vadd.f32 1.0, %v4375_v55  ;;  %4390 = vrcp.f32 %v3532_v9  ;;  %v6542_v31 = vpop.xlane.xlu1 %2081  ;;  %v7192_v9 = vld [vmem:[#allocation163_spill] sm:$0xff] }
 0x733   :  { %v4379_v51 = vpop.eup %4378  ;;  %3717 = vperm.xlu0 %4218, %v3652_v52   ;;  %v3622_v21 = vmul.f32 3.0, %v4377_v27  ;;  %v2557_v55 = vadd.f32 %v7192_v9, %v6530_v37  ;;  %v7193_v52 = vld [vmem:[#allocation51_spill] sm:$0xff]  ;;  %v7199_v37 = vld [vmem:[#allocation78_spill] sm:$0xff] }
 0x734   :  { %v3621_v47 = vmul.f32 3.0, %v4379_v51  ;;  %4392 = vrcp.f32 %v3533_v33  ;;  %v7194_v51 = vld [vmem:[#allocation159_spill] sm:$0xff] }
 0x735   :  { %v4381_v58 = vpop.eup %4380  ;;  %v6544_v40 = vpop.xlane.xlu0 %2083  ;;  %v3654_v43 = vadd.f32 -1.0, %v3622_v21 }
 0x736   :  { %v3653_v10 = vadd.f32 -1.0, %v3621_v47  ;;  %v3623_v56 = vmul.f32 3.0, %v4381_v58  ;;  %v6546_v53 = vpop.xlane.xlu1 %2085  ;;  %v4383_v5 = vpop.eup %4382  ;;  %v2556_v47 = vadd.f32 %v7194_v51, %v6522_v16  ;;  %v7195_v58 = vld [vmem:[#allocation113_spill] sm:$0xff] }
 0x737   :  { %v3624_v29 = vmul.f32 3.0, %v4383_v5 }
 0x738   :  { %3720 = vperm.xlu1 %4219, %v3653_v10   ;;  %v3655_v1 = vadd.f32 -1.0, %v3623_v56  ;;  %v7196_v56 = vld [vmem:[#allocation48_spill] sm:$0xff] }
 0x739   :  { %v4385_v23 = vpop.eup %4384  ;;  %v6548_v22 = vpop.xlane.xlu0 %2087  ;;  %v3656_v39 = vadd.f32 -1.0, %v3624_v29  ;;  %v2981_v29 = vmul.f32 %v7199_v37, %v2557_v55  ;;  %v7212_v55 = vld [vmem:[#allocation66_spill] sm:$0xff] }
 0x73a   :  { %3726 = vperm.xlu0 %4218, %v3655_v1   ;;  %v3625_v60 = vmul.f32 3.0, %v4385_v23  ;;  %v6550_v34 = vpop.xlane.xlu1 %2089  ;;  %v4387_v24 = vpop.eup %4386  ;;  %v7197_v1 = vld [vmem:[#allocation37_spill] sm:$0xff] }
 0x73b   :  { %v3626_v63 = vmul.f32 3.0, %v4387_v24  ;;  %v2749_v23 = vsub.f32 %v6499_v35, %v7197_v1  ;;  %v7200_v24 = vld [vmem:[#allocation17_spill] sm:$0xff] }
 0x73c   :  { %3723 = vperm.xlu1 %4219, %v3654_v43   ;;  %v3657_v45 = vadd.f32 -1.0, %v3625_v60  ;;  %v7198_v43 = vld [vmem:[#allocation31_spill] sm:$0xff] }
 0x73d   :  { %v4389_v13 = vpop.eup %4388  ;;  %v6552_v11 = vpop.xlane.xlu0 %2091  ;;  %v3658_v2 = vadd.f32 -1.0, %v3626_v63  ;;  %v2750_v60 = vsub.f32 %v6503_v25, %v7198_v43  ;;  %v7203_v63 = vld [vmem:[#allocation158_spill] sm:$0xff]  ;;  %v7208_v25 = vld [vmem:[#allocation156_spill] sm:$0xff] }
 0x73e   :  { %3732 = vperm.xlu0 %4218, %v3657_v45   ;;  %v3627_v42 = vmul.f32 3.0, %v4389_v13  ;;  %v6554_v61 = vpop.xlane.xlu1 %2093  ;;  %v2559_v45 = vadd.f32 %v7200_v24, %v6536_v0  ;;  %v7201_v13 = vld [vmem:[#allocation114_spill] sm:$0xff]  ;;  %v7210_v0 = vld [vmem:[#allocation115_spill] sm:$0xff]  ;;  %v7216_v24 = vld [vmem:[#allocation72_spill] sm:$0xff] }
 0x73f   :  { %v4391_v46 = vpop.eup %4390 }
 0x740   :  { %3729 = vperm.xlu1 %4219, %v3656_v39   ;;  %v3659_v14 = vadd.f32 -1.0, %v3627_v42  ;;  %v3628_v44 = vmul.f32 3.0, %v4391_v46  ;;  %v7202_v42 = vld [vmem:[#allocation26_spill] sm:$0xff] }
 0x741   :  { %v4393_v18 = vpop.eup %4392  ;;  %v6556_v6 = vpop.xlane.xlu0 %2095  ;;  %v2551_v46 = vadd.f32 %v7203_v63, %v7202_v42  ;;  %v7219_v42 = vld [vmem:[#allocation24_spill] sm:$0xff]  ;;  %v7220_v63 = vld [vmem:[#allocation93_spill] sm:$0xff] }
 0x742   :  { %3738 = vperm.xlu0 %4218, %v3659_v14   ;;  %v3629_v19 = vmul.f32 3.0, %v4393_v18  ;;  %v6558_v57 = vpop.xlane.xlu1 %2097  ;;  %v3660_v28 = vadd.f32 -1.0, %v3628_v44  ;;  %v7204_v14 = vld [vmem:[#allocation30_spill] sm:$0xff]  ;;  %v7205_v18 = vld [vmem:[#allocation155_spill] sm:$0xff] }
 0x743   :  { %v7207_v44 = vld [vmem:[#allocation38_spill] sm:$0xff] }
 0x744   :  { %3735 = vperm.xlu1 %4219, %v3658_v2   ;;  %v3661_v15 = vadd.f32 -1.0, %v3629_v19  ;;  %v2550_v2 = vadd.f32 %v7205_v18, %v7204_v14  ;;  %v7206_v19 = vld [vmem:[#allocation43_spill] sm:$0xff] }
 0x745   :  { %v6560_v26 = vpop.xlane.xlu0 %2099  ;;  %v2751_v35 = vsub.f32 %v6506_v38, %v7206_v19  ;;  %v7215_v38 = vld [vmem:[#allocation52_spill] sm:$0xff]  ;;  %v7223_v19 = vld [vmem:[#allocation162_spill] sm:$0xff] }
 0x746   :  { %3744 = vperm.xlu0 %4218, %v3661_v15   ;;  %v2342_v54 = vpop.xlane.xlu1 %2341  ;;  %v2552_v15 = vadd.f32 %v7208_v25, %v7207_v44  ;;  %v7224_v44 = vld [vmem:[#allocation117_spill] sm:$0xff]  ;;  %v7225_v25 = vld [vmem:[#allocation23_spill] sm:$0xff] }
 0x747   :  { %v2755_v27 = vsub.f32 %v2342_v54, %v7193_v52 }
 0x748   :  { %3741 = vperm.xlu1 %4219, %v3660_v28   ;;  %v7209_v28 = vld [vmem:[#allocation95_spill] sm:$0xff] }
 0x749   :  { %v2344_v3 = vpop.xlane.xlu0 %2343  ;;  %v3179_v39 = vmul.f32 %v7201_v13, %v2755_v27  ;;  %v2980_v54 = vmul.f32 %v7209_v28, %v2556_v47  ;;  %v7213_v27 = vld [vmem:[#allocation107_spill] sm:$0xff]  ;;  %v2975_v47 = vmul.f32 %v7216_v24, %v2551_v46  ;;  %v2560_v46 = vadd.f32 %v7223_v19, %v6538_v41  ;;  %v7233_v24 = vld [vmem:[#allocation141_spill] sm:$0xff]  ;;  %v7241_v19 = vld [vmem:[#allocation84_spill] sm:$0xff] }
 0x74a   :  { %v2346_v7 = vpop.xlane.xlu1 %2345  ;;  %v2756_v59 = vsub.f32 %v2344_v3, %v7191_v4  ;;  %v3174_v51 = vmul.f32 %v7213_v27, %v2750_v60  ;;  %v7221_v60 = vld [vmem:[#allocation160_spill] sm:$0xff] }
 0x74b   :  { %v3211_v1 = vadd.f32 %v3179_v39, %v2980_v54  ;;  %v2757_v43 = vsub.f32 %v2346_v7, %v7215_v38  ;;  %v2558_v14 = vadd.f32 %v7221_v60, %v6534_v17  ;;  %v7226_v54 = vld [vmem:[#allocation129_spill] sm:$0xff] }
 0x74c   :  { %v3180_v10 = vmul.f32 %v7195_v58, %v2756_v59  ;;  %v7211_v59 = vld [vmem:[#allocation108_spill] sm:$0xff] }
 0x74d   :  { %v2348_v12 = vpop.xlane.xlu0 %2347  ;;  %v3173_v9 = vmul.f32 %v7211_v59, %v2749_v23  ;;  %v7214_v58 = vld [vmem:[#allocation80_spill] sm:$0xff]  ;;  %v2561_v23 = vadd.f32 %v7219_v42, %v6540_v48  ;;  %v3412_v48 = vmul.f32 %v7226_v54, %v3211_v1  ;;  %v7228_v59 = vld [vmem:[#allocation53_spill] sm:$0xff] }
 0x74e   :  { %v6562_v62 = vpop.xlane.xlu1 %2349  ;;  %v2758_v21 = vsub.f32 %v2348_v12, %v7196_v56  ;;  %v3212_v3 = vadd.f32 %v3180_v10, %v2981_v29  ;;  %v2983_v56 = vmul.f32 %v7214_v58, %v2559_v45  ;;  %v7217_v10 = vld [vmem:[#allocation92_spill] sm:$0xff]  ;;  %v7222_v45 = vld [vmem:[#allocation131_spill] sm:$0xff] }
 0x74f   :  { %v2974_v29 = vmul.f32 %v7217_v10, %v2550_v2  ;;  %v2759_v17 = vsub.f32 %v6562_v62, %v7228_v59  ;;  %v7230_v58 = vld [vmem:[#allocation36_spill] sm:$0xff]  ;;  %v7234_v10 = vld [vmem:[#allocation54_spill] sm:$0xff] }
 0x750   :  { %v3182_v12 = vmul.f32 %v7210_v0, %v2758_v21  ;;  %v7218_v21 = vld [vmem:[#allocation110_spill] sm:$0xff]  ;;  %v3413_v39 = vmul.f32 %v7222_v45, %v3212_v3  ;;  %v7227_v0 = vld [vmem:[#allocation116_spill] sm:$0xff]  ;;  %v3206_v3 = vadd.f32 %v3174_v51, %v2975_v47  ;;  %v2562_v41 = vadd.f32 %v7230_v58, %v6542_v31  ;;  %v7236_v47 = vld [vmem:[#allocation119_spill] sm:$0xff] }
 0x751   :  { %v2352_v36 = vpop.xlane.xlu0 %2351  ;;  %v3175_v13 = vmul.f32 %v7218_v21, %v2751_v35  ;;  %v3205_v28 = vadd.f32 %v3173_v9, %v2974_v29  ;;  %v7232_v9 = vld [vmem:[#allocation96_spill] sm:$0xff]  ;;  %v7235_v29 = vld [vmem:[#allocation97_spill] sm:$0xff] }
 0x752   :  { %v6564_v8 = vpop.xlane.xlu1 %2353  ;;  %v2760_v52 = vsub.f32 %v2352_v36, %v7212_v55  ;;  %v2976_v36 = vmul.f32 %v7220_v63, %v2552_v15  ;;  %v3214_v18 = vadd.f32 %v3182_v12, %v2983_v56  ;;  %v3181_v15 = vmul.f32 %v7227_v0, %v2757_v43  ;;  %v7229_v12 = vld [vmem:[#allocation82_spill] sm:$0xff]  ;;  %v7247_v58 = vld [vmem:[#allocation148_spill] sm:$0xff] }
 0x753   :  { %v2985_v27 = vmul.f32 %v7229_v12, %v2561_v23  ;;  %v2982_v38 = vmul.f32 %v7232_v9, %v2558_v14  ;;  %v4025_v1 = vmul.f32 -1.442695, %v3413_v39  ;;  %v2761_v62 = vsub.f32 %v6564_v8, %v7234_v10  ;;  %v7237_v23 = vld [vmem:[#allocation34_spill] sm:$0xff]  ;;  %v7239_v14 = vld [vmem:[#allocation55_spill] sm:$0xff] }
 0x754   :  { %v3184_v2 = vmul.f32 %v7224_v44, %v2760_v52  ;;  %v7231_v52 = vld [vmem:[#allocation19_spill] sm:$0xff]  ;;  %v3415_v43 = vmul.f32 %v7233_v24, %v3214_v18  ;;  %v2984_v21 = vmul.f32 %v7235_v29, %v2560_v46  ;;  %v7240_v18 = vld [vmem:[#allocation98_spill] sm:$0xff]  ;;  %v7242_v44 = vld [vmem:[#allocation21_spill] sm:$0xff] }
 0x755   :  { %v2356_v49 = vpop.xlane.xlu0 %2355  ;;  %v2563_v56 = vadd.f32 %v7231_v52, %v6544_v40  ;;  %v4024_v40 = vmul.f32 -1.442695, %v3412_v48  ;;  %v2986_v8 = vmul.f32 %v7240_v18, %v2562_v41  ;;  %4394 = vpow2.f32 %v4025_v1  ;;  %v7244_v48 = vld [vmem:[#allocation120_spill] sm:$0xff]  ;;  %v7249_v9 = vld [vmem:[#allocation86_spill] sm:$0xff]  ;;  %v7251_v10 = vld [vmem:[#allocation99_spill] sm:$0xff] }
 0x756   :  { %v6567_v50 = vpop.xlane.xlu1 %2357  ;;  %v2762_v35 = vsub.f32 %v2356_v49, %v7225_v25  ;;  %v3207_v49 = vadd.f32 %v3175_v13, %v2976_v36  ;;  %v3216_v51 = vadd.f32 %v3184_v2, %v2985_v27  ;;  %v3213_v13 = vadd.f32 %v3181_v15, %v2982_v38  ;;  %v7238_v36 = vld [vmem:[#allocation118_spill] sm:$0xff]  ;;  %v7245_v15 = vld [vmem:[#allocation151_spill] sm:$0xff]  ;;  %v7256_v18 = vld [vmem:[#allocation33_spill] sm:$0xff] }
 0x757   :  { %v3183_v60 = vmul.f32 %v7238_v36, %v2759_v17  ;;  %v2763_v45 = vsub.f32 %v6567_v50, %v7239_v14  ;;  %v2987_v46 = vmul.f32 %v7241_v19, %v2563_v56  ;;  %v2565_v2 = vadd.f32 %v7242_v44, %v6548_v22  ;;  %v7246_v50 = vld [vmem:[#allocation121_spill] sm:$0xff]  ;;  %v7248_v56 = vld [vmem:[#allocation122_spill] sm:$0xff] }
 0x758   :  { %v3186_v42 = vmul.f32 %v7236_v47, %v2762_v35  ;;  %v4027_v54 = vmul.f32 -1.442695, %v3415_v43  ;;  %v3185_v0 = vmul.f32 %v7244_v48, %v2761_v62  ;;  %v3417_v59 = vmul.f32 %v7245_v15, %v3216_v51  ;;  %v7252_v51 = vld [vmem:[#allocation22_spill] sm:$0xff]  ;;  %v7254_v36 = vld [vmem:[#allocation149_spill] sm:$0xff] }
 0x759   :  { %v6572_v33 = vpop.xlane.xlu0 %2359  ;;  %4396 = vpow2.f32 %v4024_v40  ;;  %v3414_v41 = vmul.f32 %v7247_v58, %v3213_v13  ;;  %v3215_v52 = vadd.f32 %v3183_v60, %v2984_v21  ;;  %v3187_v22 = vmul.f32 %v7248_v56, %v2763_v45  ;;  %v7253_v21 = vld [vmem:[#allocation152_spill] sm:$0xff]  ;;  %v7255_v45 = vld [vmem:[#allocation102_spill] sm:$0xff] }
 0x75a   :  { %v6578_v5 = vpop.xlane.xlu1 %2361  ;;  %v2764_v31 = vsub.f32 %v6572_v33, %v7237_v23  ;;  %v7243_v33 = vld [vmem:[#allocation25_spill] sm:$0xff]  ;;  %v3218_v17 = vadd.f32 %v3186_v42, %v2987_v46  ;;  %v2989_v38 = vmul.f32 %v7249_v9, %v2565_v2  ;;  %v3217_v29 = vadd.f32 %v3185_v0, %v2986_v8  ;;  %v7257_v19 = vld [vmem:[#allocation150_spill] sm:$0xff]  ;;  %v7264_v58 = vld [vmem:[#allocation20_spill] sm:$0xff] }
 0x75b   :  { %v2564_v35 = vadd.f32 %v7243_v33, %v6546_v53  ;;  %v7250_v53 = vld [vmem:[#allocation35_spill] sm:$0xff]  ;;  %v4029_v42 = vmul.f32 -1.442695, %v3417_v59  ;;  %v4026_v13 = vmul.f32 -1.442695, %v3414_v41  ;;  %v3416_v60 = vmul.f32 %v7254_v36, %v3215_v52  ;;  %v7259_v2 = vld [vmem:[#allocation42_spill] sm:$0xff] }
 0x75c   :  { %v3188_v12 = vmul.f32 %v7246_v50, %v2764_v31  ;;  %v2567_v1 = vadd.f32 %v7250_v53, %v6552_v11  ;;  %v3419_v23 = vmul.f32 %v7253_v21, %v3218_v17  ;;  %v2568_v8 = vadd.f32 %v7256_v18, %v6554_v61  ;;  %v7261_v59 = vld [vmem:[#allocation153_spill] sm:$0xff]  ;;  %v7262_v17 = vld [vmem:[#allocation56_spill] sm:$0xff]  ;;  %v7265_v56 = vld [vmem:[#allocation126_spill] sm:$0xff] }
 0x75d   :  { %v6588_v16 = vpop.xlane.xlu0 %2363  ;;  %v2988_v62 = vmul.f32 %v7251_v10, %v2564_v35  ;;  %v3418_v46 = vmul.f32 %v7257_v19, %v3217_v29  ;;  %v7260_v35 = vld [vmem:[#allocation154_spill] sm:$0xff]  ;;  %v4028_v15 = vmul.f32 -1.442695, %v3416_v60  ;;  %v2765_v61 = vsub.f32 %v6578_v5, %v7262_v17 }
 0x75e   :  { %v6600_v4 = vpop.xlane.xlu1 %2365  ;;  %v2766_v47 = vsub.f32 %v6588_v16, %v7252_v51  ;;  %v3220_v31 = vadd.f32 %v3188_v12, %v2989_v38  ;;  %v7258_v16 = vld [vmem:[#allocation123_spill] sm:$0xff]  ;;  %v4031_v33 = vmul.f32 -1.442695, %v3419_v23 }
 0x75f   :  { %v3219_v14 = vadd.f32 %v3187_v22, %v2988_v62  ;;  %v7263_v12 = vld [vmem:[#allocation39_spill] sm:$0xff]  ;;  %v4030_v52 = vmul.f32 -1.442695, %v3418_v46  ;;  %v7268_v62 = vld [vmem:[#allocation124_spill] sm:$0xff] }
 0x760   :  { %v3190_v44 = vmul.f32 %v7258_v16, %v2766_v47  ;;  %v7274_v16 = vld [vmem:[#allocation128_spill] sm:$0xff] }
 0x761   :  { %v6607_v37 = vpop.xlane.xlu0 %2367 }
 0x762   :  { %v6618_v7 = vpop.xlane.xlu1 %2369  ;;  %v4395_v53 = vpop.eup %4394 }
 0x765   :  { %v6628_v55 = vpop.xlane.xlu0 %2371 }
 0x766   :  { %v6643_v63 = vpop.permute.xlu1 %3342  ;;  %v4397_v51 = vpop.eup %4396 }
 0x767   :  { %v3540_v19 = vadd.f32 1.0, %v4397_v51 }
 0x769   :  { %v3276_v39 = vpop.permute.xlu0 %3275 }
 0x76a   :  { %v3406_v25 = vmul.f32 %v3276_v39, %v3205_v28  ;;  %v3347_v24 = vpop.permute.xlu1 %3346  ;;  %v2991_v39 = vmul.f32 %v7255_v45, %v2567_v1  ;;  %v7267_v1 = vld [vmem:[#allocation101_spill] sm:$0xff] }
 0x76b   :  { %v2992_v5 = vmul.f32 %v7267_v1, %v2568_v8 }
 0x76c   :  { %v4018_v27 = vmul.f32 -1.442695, %v3406_v25  ;;  %v2767_v25 = vsub.f32 %v6600_v4, %v7259_v2  ;;  %v2569_v4 = vadd.f32 %v7264_v58, %v6556_v6  ;;  %v3222_v38 = vadd.f32 %v3190_v44, %v2991_v39  ;;  %v7275_v2 = vld [vmem:[#allocation41_spill] sm:$0xff] }
 0x76d   :  { %v3280_v28 = vpop.permute.xlu0 %3279  ;;  %v3189_v6 = vmul.f32 %v7268_v62, %v2765_v61 }
 0x76e   :  { %4398 = vpow2.f32 %v4018_v27  ;;  %v3407_v43 = vmul.f32 %v3280_v28, %v3206_v3  ;;  %v3351_v48 = vpop.permute.xlu1 %3350  ;;  %v2566_v27 = vadd.f32 %v7263_v12, %v6550_v34  ;;  %v3191_v22 = vmul.f32 %v7265_v56, %v2767_v25  ;;  %v7266_v28 = vld [vmem:[#allocation32_spill] sm:$0xff] }
 0x76f   :  { %4400 = vpow2.f32 %v4027_v54  ;;  %v3421_v54 = vmul.f32 %v7260_v35, %v3220_v31  ;;  %v2768_v9 = vsub.f32 %v6607_v37, %v7266_v28  ;;  %v3423_v29 = vmul.f32 %v3347_v24, %v3222_v38  ;;  %v7271_v31 = vld [vmem:[#allocation125_spill] sm:$0xff] }
 0x770   :  { %v4019_v40 = vmul.f32 -1.442695, %v3407_v43  ;;  %v3223_v60 = vadd.f32 %v3191_v22, %v2992_v5  ;;  %v3541_v24 = vadd.f32 1.0, %v4395_v53  ;;  %v7276_v35 = vld [vmem:[#allocation105_spill] sm:$0xff]  ;;  %v7279_v22 = vld [vmem:[#allocation104_spill] sm:$0xff] }
 0x771   :  { %v3284_v11 = vpop.permute.xlu0 %3283  ;;  %v4033_v43 = vmul.f32 -1.442695, %v3421_v54  ;;  %v4035_v18 = vmul.f32 -1.442695, %v3423_v29 }
 0x772   :  { %4402 = vpow2.f32 %v4019_v40  ;;  %v3408_v3 = vmul.f32 %v3284_v11, %v3207_v49  ;;  %v3420_v49 = vmul.f32 %v7261_v59, %v3219_v14  ;;  %v3355_v23 = vpop.permute.xlu1 %3354  ;;  %v3192_v40 = vmul.f32 %v7271_v31, %v2768_v9  ;;  %v7273_v11 = vld [vmem:[#allocation18_spill] sm:$0xff] }
 0x773   :  { %4404 = vpow2.f32 %v4029_v42  ;;  %v7270_v42 = vld [vmem:[#allocation103_spill] sm:$0xff]  ;;  %v2570_v45 = vadd.f32 %v7273_v11, %v6558_v57  ;;  %v3424_v8 = vmul.f32 %v3351_v48, %v3223_v60  ;;  %v7277_v48 = vld [vmem:[#allocation28_spill] sm:$0xff] }
 0x774   :  { %v4020_v0 = vmul.f32 -1.442695, %v3408_v3  ;;  %4406 = vpow2.f32 %v4026_v13  ;;  %v4032_v34 = vmul.f32 -1.442695, %v3420_v49  ;;  %v2993_v21 = vmul.f32 %v7270_v42, %v2569_v4  ;;  %v7272_v13 = vld [vmem:[#allocation44_spill] sm:$0xff] }
 0x775   :  { %v3288_v50 = vpop.permute.xlu0 %3287  ;;  %v2769_v36 = vsub.f32 %v6618_v7, %v7272_v13  ;;  %v2770_v7 = vsub.f32 %v6628_v55, %v7275_v2  ;;  %v2994_v57 = vmul.f32 %v7276_v35, %v2570_v45  ;;  %v2571_v49 = vadd.f32 %v7277_v48, %v6560_v26 }
 0x776   :  { %4408 = vpow2.f32 %v4020_v0  ;;  %v3409_v41 = vmul.f32 %v3288_v50, %v6524_v30  ;;  %v7269_v30 = vld [vmem:[#allocation100_spill] sm:$0xff]  ;;  %v4036_v17 = vmul.f32 -1.442695, %v3424_v8 }
 0x777   :  { %4410 = vpow2.f32 %v4031_v33  ;;  %v2990_v47 = vmul.f32 %v7269_v30, %v2566_v27  ;;  %v3193_v44 = vmul.f32 %v7274_v16, %v2769_v36  ;;  %v3224_v33 = vadd.f32 %v3192_v40, %v2993_v21  ;;  %v7278_v27 = vld [vmem:[#allocation127_spill] sm:$0xff] }
 0x778   :  { %v4021_v10 = vmul.f32 -1.442695, %v3409_v41  ;;  %4412 = vpow2.f32 %v4028_v15  ;;  %v3359_v15 = vpop.permute.xlu1 %3358  ;;  %v2995_v28 = vmul.f32 %v7279_v22, %v2571_v49 }
 0x779   :  { %v3221_v3 = vadd.f32 %v3189_v6, %v2990_v47  ;;  %v3425_v61 = vmul.f32 %v3355_v23, %v3224_v33  ;;  %v3292_v50 = vpop.permute.xlu0 %3291  ;;  %v3225_v4 = vadd.f32 %v3193_v44, %v2994_v57 }
 0x77a   :  { %4414 = vpow2.f32 %v4021_v10  ;;  %v3410_v53 = vmul.f32 %v3292_v50, %v6528_v20 }
 0x77b   :  { %v4399_v37 = vpop.eup %4398  ;;  %4416 = vpow2.f32 %v4030_v52  ;;  %v3422_v25 = vmul.f32 %v6643_v63, %v3221_v3  ;;  %v3194_v63 = vmul.f32 %v7278_v27, %v2770_v7  ;;  %v4037_v26 = vmul.f32 -1.442695, %v3425_v61 }
 0x77c   :  { %v4401_v14 = vpop.eup %4400  ;;  %4418 = vpow2.f32 %v4033_v43  ;;  %v3534_v39 = vadd.f32 1.0, %v4399_v37  ;;  %v3426_v9 = vmul.f32 %v3359_v15, %v3225_v4  ;;  %v3363_v1 = vpop.permute.xlu1 %3362  ;;  %v4022_v21 = vmul.f32 -1.442695, %v3410_v53 }
 0x77d   :  { %4420 = vpow2.f32 %v4032_v34  ;;  %v3543_v54 = vadd.f32 1.0, %v4401_v14  ;;  %v4034_v58 = vmul.f32 -1.442695, %v3422_v25  ;;  %v3226_v10 = vadd.f32 %v3194_v63, %v2995_v28  ;;  %v3296_v34 = vpop.permute.xlu0 %3295 }
 0x77e   :  { %4422 = vrcp.f32 %v3534_v39  ;;  %v4038_v30 = vmul.f32 -1.442695, %v3426_v9  ;;  %v3411_v23 = vmul.f32 %v3296_v34, %v6532_v32 }
 0x77f   :  { %v4403_v46 = vpop.eup %4402  ;;  %4424 = vrcp.f32 %v3541_v24  ;;  %v3427_v47 = vmul.f32 %v3363_v1, %v3226_v10 }
 0x780   :  { %v3535_v0 = vadd.f32 1.0, %v4403_v46  ;;  %v4405_v59 = vpop.eup %4404  ;;  %4426 = vpow2.f32 %v4035_v18  ;;  %v4023_v14 = vmul.f32 -1.442695, %v3411_v23 }
 0x781   :  { %v4407_v12 = vpop.eup %4406  ;;  %v3545_v41 = vadd.f32 1.0, %v4405_v59  ;;  %v4039_v36 = vmul.f32 -1.442695, %v3427_v47 }
 0x782   :  { %4428 = vrcp.f32 %v3535_v0  ;;  %v3542_v43 = vadd.f32 1.0, %v4407_v12 }
 0x783   :  { %v4409_v55 = vpop.eup %4408  ;;  %4430 = vrcp.f32 %v3540_v19 }
 0x784   :  { %v3536_v52 = vadd.f32 1.0, %v4409_v55  ;;  %4432 = vrcp.f32 %v3543_v54  ;;  %v4411_v56 = vpop.eup %4410 }
 0x785   :  { %4434 = vpow2.f32 %v4036_v17  ;;  %v4413_v38 = vpop.eup %4412  ;;  %v3547_v6 = vadd.f32 1.0, %v4411_v56 }
 0x786   :  { %4436 = vrcp.f32 %v3536_v52  ;;  %v3544_v37 = vadd.f32 1.0, %v4413_v38 }
 0x787   :  { %v4415_v5 = vpop.eup %4414  ;;  %4438 = vpow2.f32 %v4034_v58 }
 0x788   :  { %v4417_v62 = vpop.eup %4416  ;;  %v3537_v29 = vadd.f32 1.0, %v4415_v5  ;;  %4440 = vrcp.f32 %v3545_v41 }
 0x789   :  { %v4419_v51 = vpop.eup %4418  ;;  %4442 = vpow2.f32 %v4037_v26  ;;  %v3546_v3 = vadd.f32 1.0, %v4417_v62 }
 0x78a   :  { %v4421_v42 = vpop.eup %4420  ;;  %4444 = vrcp.f32 %v3537_v29  ;;  %v3549_v31 = vadd.f32 1.0, %v4419_v51 }
 0x78b   :  { %v4423_v20 = vpop.eup %4422  ;;  %4446 = vrcp.f32 %v3542_v43  ;;  %v3548_v25 = vadd.f32 1.0, %v4421_v42 }
 0x78c   :  { %v3630_v40 = vmul.f32 3.0, %v4423_v20  ;;  %4448 = vrcp.f32 %v3547_v6  ;;  %v4425_v13 = vpop.eup %4424 }
 0x78d   :  { %4450 = vpow2.f32 %v4038_v30  ;;  %v4427_v60 = vpop.eup %4426  ;;  %v3637_v46 = vmul.f32 3.0, %v4425_v13 }
 0x78e   :  { %4452 = vpow2.f32 %v4022_v21  ;;  %v3662_v11 = vadd.f32 -1.0, %v3630_v40  ;;  %v3551_v8 = vadd.f32 1.0, %v4427_v60 }
 0x78f   :  { %v4429_v45 = vpop.eup %4428  ;;  %4454 = vrcp.f32 %v3544_v37  ;;  %v3669_v54 = vadd.f32 -1.0, %v3637_v46 }
 0x790   :  { %v4431_v24 = vpop.eup %4430  ;;  %3747 = vperm.xlu1 %4219, %v3662_v11   ;;  %v3631_v39 = vmul.f32 3.0, %v4429_v45  ;;  %4456 = vrcp.f32 %v3549_v31 }
 0x791   :  { %v4433_v32 = vpop.eup %4432  ;;  %4458 = vpow2.f32 %v4039_v36  ;;  %v3636_v50 = vmul.f32 3.0, %v4431_v24 }
 0x792   :  { %v4435_v18 = vpop.eup %4434  ;;  %4460 = vpow2.f32 %v4023_v14  ;;  %v3663_v19 = vadd.f32 -1.0, %v3631_v39  ;;  %v3639_v33 = vmul.f32 3.0, %v4433_v32 }
 0x793   :  { %v4437_v16 = vpop.eup %4436  ;;  %4462 = vrcp.f32 %v3546_v3  ;;  %v3552_v57 = vadd.f32 1.0, %v4435_v18  ;;  %v3668_v56 = vadd.f32 -1.0, %v3636_v50 }
 0x794   :  { %v4439_v44 = vpop.eup %4438  ;;  %3750 = vperm.xlu0 %4218, %v3663_v19   ;;  %v3632_v2 = vmul.f32 3.0, %v4437_v16  ;;  %4464 = vrcp.f32 %v3551_v8  ;;  %v3671_v61 = vadd.f32 -1.0, %v3639_v33 }
 0x795   :  { %v4441_v7 = vpop.eup %4440  ;;  %v3550_v17 = vadd.f32 1.0, %v4439_v44  ;;  %4466 = vrcp.f32 %v3548_v25 }
 0x796   :  { %v4443_v35 = vpop.eup %4442  ;;  %v3664_v0 = vadd.f32 -1.0, %v3632_v2  ;;  %4468 = vrcp.f32 %v3552_v57  ;;  %v3641_v63 = vmul.f32 3.0, %v4441_v7 }
 0x797   :  { %v4445_v15 = vpop.eup %4444  ;;  %v3553_v55 = vadd.f32 1.0, %v4443_v35  ;;  %4470 = vrcp.f32 %v3550_v17 }
 0x798   :  { %v4447_v59 = vpop.eup %4446  ;;  %3768 = vperm.xlu0 %4218, %v3669_v54   ;;  %3753 = vperm.xlu1 %4219, %v3664_v0   ;;  %v3633_v48 = vmul.f32 3.0, %v4445_v15  ;;  %v3673_v9 = vadd.f32 -1.0, %v3641_v63 }
 0x799   :  { %v4449_v49 = vpop.eup %4448  ;;  %v3638_v22 = vmul.f32 3.0, %v4447_v59  ;;  %4472 = vrcp.f32 %v3553_v55 }
 0x79a   :  { %v4451_v12 = vpop.eup %4450  ;;  %v3665_v27 = vadd.f32 -1.0, %v3633_v48  ;;  %v3643_v38 = vmul.f32 3.0, %v4449_v49 }
 0x79b   :  { %v4453_v58 = vpop.eup %4452  ;;  %v3554_v52 = vadd.f32 1.0, %v4451_v12  ;;  %v3670_v5 = vadd.f32 -1.0, %v3638_v22  ;;  %v7281_v22 = vld [vmem:[#allocation14_spill] sm:$0xff] }
 0x79c   :  { %v4455_v4 = vpop.eup %4454  ;;  %3774 = vperm.xlu0 %4218, %v3671_v61   ;;  %3756 = vperm.xlu1 %4219, %v3665_v27   ;;  %v3538_v26 = vadd.f32 1.0, %v4453_v58  ;;  %v3675_v62 = vadd.f32 -1.0, %v3643_v38 }
 0x79d   :  { %v4457_v41 = vpop.eup %4456  ;;  %4474 = vrcp.f32 %v3554_v52  ;;  %v3640_v43 = vmul.f32 3.0, %v4455_v4  ;;  %v7280_v52 = vld [vmem:[#allocation132_spill] sm:$0xff] }
 0x79e   :  { %v4459_v28 = vpop.eup %4458  ;;  %4476 = vrcp.f32 %v3538_v26  ;;  %v3645_v6 = vmul.f32 3.0, %v4457_v41 }
 0x79f   :  { %v4461_v53 = vpop.eup %4460  ;;  %v3555_v1 = vadd.f32 1.0, %v4459_v28  ;;  %v3672_v51 = vadd.f32 -1.0, %v3640_v43 }
 0x7a0   :  { %3780 = vperm.xlu0 %4218, %v3673_v9   ;;  %3765 = vperm.xlu1 %4219, %v3668_v56   ;;  %v4463_v10 = vpop.eup %4462  ;;  %v3539_v34 = vadd.f32 1.0, %v4461_v53  ;;  %v3677_v47 = vadd.f32 -1.0, %v3645_v6  ;;  %v7282_v53 = vld [vmem:[#allocation133_spill] sm:$0xff] }
 0x7a1   :  { %v4465_v29 = vpop.eup %4464  ;;  %4478 = vrcp.f32 %v3555_v1  ;;  %v3642_v21 = vmul.f32 3.0, %v4463_v10 }
 0x7a2   :  { %v4467_v30 = vpop.eup %4466  ;;  %4480 = vrcp.f32 %v3539_v34  ;;  %v3647_v42 = vmul.f32 3.0, %v4465_v29 }
 0x7a3   :  { %v4469_v23 = vpop.eup %4468  ;;  %v3674_v31 = vadd.f32 -1.0, %v3642_v21  ;;  %v3644_v13 = vmul.f32 3.0, %v4467_v30 }
 0x7a4   :  { %3786 = vperm.xlu0 %4218, %v3675_v62   ;;  %3771 = vperm.xlu1 %4219, %v3670_v5   ;;  %v4471_v20 = vpop.eup %4470  ;;  %v3679_v37 = vadd.f32 -1.0, %v3647_v42  ;;  %v3648_v40 = vmul.f32 3.0, %v4469_v23  ;;  %v7283_v62 = vld [vmem:[#allocation134_spill] sm:$0xff] }
 0x7a5   :  { %v3676_v11 = vadd.f32 -1.0, %v3644_v13  ;;  %v3646_v24 = vmul.f32 3.0, %v4471_v20 }
 0x7a6   :  { %v4473_v36 = vpop.eup %4472  ;;  %v3680_v14 = vadd.f32 -1.0, %v3648_v40  ;;  %v7285_v40 = vld [vmem:[#allocation135_spill] sm:$0xff] }
 0x7a7   :  { %v3649_v45 = vmul.f32 3.0, %v4473_v36  ;;  %v3678_v18 = vadd.f32 -1.0, %v3646_v24 }
 0x7a8   :  { %3792 = vperm.xlu0 %4218, %v3677_v47   ;;  %3777 = vperm.xlu1 %4219, %v3672_v51   ;;  %v7284_v47 = vld [vmem:[#allocation136_spill] sm:$0xff] }
 0x7a9   :  { %v3681_v3 = vadd.f32 -1.0, %v3649_v45 }
 0x7aa   :  { %v4475_v60 = vpop.eup %4474 }
 0x7ab   :  { %v4477_v39 = vpop.eup %4476  ;;  %v3650_v8 = vmul.f32 3.0, %v4475_v60 }
 0x7ac   :  { %3798 = vperm.xlu0 %4218, %v3679_v37   ;;  %3783 = vperm.xlu1 %4219, %v3674_v31   ;;  %v3634_v19 = vmul.f32 3.0, %v4477_v39 }
 0x7ad   :  { %v3682_v16 = vadd.f32 -1.0, %v3650_v8  ;;  %v7287_v8 = vld [vmem:[#allocation138_spill] sm:$0xff] }
 0x7ae   :  { %v4479_v32 = vpop.eup %4478  ;;  %v3666_v44 = vadd.f32 -1.0, %v3634_v19  ;;  %v3718_v57 = vpop.permute.xlu0 %3717 }
 0x7af   :  { %v4481_v46 = vpop.eup %4480  ;;  %v3651_v2 = vmul.f32 3.0, %v4479_v32  ;;  %v3815_v10 = vrot.slane %v3718_v57, %v7280_v52 }
 0x7b0   :  { %3801 = vperm.xlu0 %4218, %v3680_v14   ;;  %3789 = vperm.xlu1 %4219, %v3676_v11   ;;  %v3635_v7 = vmul.f32 3.0, %v4481_v46  ;;  %v7286_v11 = vld [vmem:[#allocation137_spill] sm:$0xff] }
 0x7b1   :  { %v3683_v25 = vadd.f32 -1.0, %v3651_v2  ;;  %v7288_v2 = vld [vmem:[#allocation140_spill] sm:$0xff] }
 0x7b2   :  { %v3667_v33 = vadd.f32 -1.0, %v3635_v7 }
 0x7b3   :  { %v3721_v35 = vpop.permute.xlu1 %3720 }
 0x7b4   :  { %3804 = vperm.xlu0 %4218, %v3681_v3   ;;  %3795 = vperm.xlu1 %4219, %v3678_v18   ;;  %v3819_v38 = vrot.slane %v3721_v35, %v7281_v22 }
 0x7b5   :  { %v3727_v54 = vpop.permute.xlu0 %3726 }
 0x7b6   :  { %v3820_v30 = vsel %vm1439_vm11, %v3819_v38, %v3815_v10  ;;  %v3829_v37 = vrot.slane %v3727_v54, %v7283_v62  ;;  %v7293_v10 = vld [vmem:[#allocation145_spill] sm:$0xff] }
 0x7b7   :  { %v3724_v0 = vpop.permute.xlu1 %3723 }
 0x7b8   :  { %3807 = vperm.xlu0 %4218, %v3682_v16   ;;  %3759 = vperm.xlu1 %4219, %v3666_v44   ;;  %v3824_v5 = vrot.slane %v3724_v0, %v7282_v53  ;;  %v7289_v0 = vld [vmem:[#allocation139_spill] sm:$0xff] }
 0x7b9   :  { %v3733_v15 = vpop.permute.xlu0 %3732 }
 0x7ba   :  { %v3825_v21 = vsel %vm1446_vm12, %v3824_v5, %v3820_v30  ;;  %v3839_v3 = vrot.slane %v3733_v15, %v7285_v40 }
 0x7bb   :  { %v3730_v59 = vpop.permute.xlu1 %3729  ;;  %v3830_v14 = vsel %vm1453_vm13, %v3829_v37, %v3825_v21 }
 0x7bc   :  { %3810 = vperm.xlu0 %4218, %v3683_v25   ;;  %3762 = vperm.xlu1 %4219, %v3667_v33   ;;  %v3834_v23 = vrot.slane %v3730_v59, %v7284_v47 }
 0x7bd   :  { %v3739_v48 = vpop.permute.xlu0 %3738 }
 0x7be   :  { %v3835_v24 = vsel %vm1460_vm14, %v3834_v23, %v3830_v14  ;;  %v3849_v57 = vrot.slane %v3739_v48, %v7287_v8  ;;  %v7297_v23 = vld [vmem:[#allocation147_spill] sm:$0xff] }
 0x7bf   :  { %v3736_v49 = vpop.permute.xlu1 %3735  ;;  %v3840_v44 = vsel %vm1467_vm15, %v3839_v3, %v3835_v24 }
 0x7c0   :  { %v3844_v39 = vrot.slane %v3736_v49, %v7286_v11 }
 0x7c1   :  { %v6706_v17 = vpop.permute.xlu0 %3744 }
 0x7c2   :  { %v3845_v25 = vsel %vm1474_vm0, %v3844_v39, %v3840_v44  ;;  %v3859_v48 = vrot.slane %v6706_v17, %v7289_v0 }
 0x7c3   :  { %v3742_v61 = vpop.permute.xlu1 %3741 }
 0x7c4   :  { %v3854_v33 = vrot.slane %v3742_v61, %v7288_v2  ;;  %v7291_v61 = vld [vmem:[#allocation143_spill] sm:$0xff] }
 0x80b   :  { %v6708_v50 = vpop.permute.xlu1 %3747 }
 0x80f   :  { %v6710_v12 = vpop.permute.xlu0 %3750 }
 0x813   :  { %v6712_v55 = vpop.permute.xlu1 %3753  ;;  %v3769_v27 = vpop.permute.xlu0 %3768 }
 0x814   :  { %v3898_v28 = vrot.slane %v3769_v27, %v7281_v22  ;;  %v3850_v27 = vsel %vm1481_vm1, %v3849_v57, %v3845_v25 }
 0x817   :  { %v6714_v63 = vpop.permute.xlu1 %3756  ;;  %v3775_v58 = vpop.permute.xlu0 %3774 }
 0x818   :  { %v3908_v6 = vrot.slane %v3775_v58, %v7283_v62  ;;  %v7290_v58 = vld [vmem:[#allocation142_spill] sm:$0xff] }
 0x81b   :  { %v3766_v4 = vpop.permute.xlu1 %3765  ;;  %v3781_v41 = vpop.permute.xlu0 %3780 }
 0x81c   :  { %v3894_v56 = vrot.slane %v3766_v4, %v7280_v52  ;;  %v3918_v13 = vrot.slane %v3781_v41, %v7285_v40  ;;  %v3855_v41 = vsel %vm1488_vm2, %v3854_v33, %v3850_v27  ;;  %v3864_v52 = vrot.slane %v6708_v50, %v7290_v58 }
 0x81e   :  { %v3899_v43 = vsel %vm1439_vm11, %v3898_v28, %v3894_v56  ;;  %v3869_v28 = vrot.slane %v6710_v12, %v7291_v61  ;;  %vm7295_vm11 = vcmask 917312  }
 0x81f   :  { %v3772_v26 = vpop.permute.xlu1 %3771  ;;  %v3787_v9 = vpop.permute.xlu0 %3786 }
 0x820   :  { %v3903_v1 = vrot.slane %v3772_v26, %v7282_v53  ;;  %v3928_v19 = vrot.slane %v3787_v9, %v7287_v8  ;;  %v7292_v26 = vld [vmem:[#allocation144_spill] sm:$0xff] }
 0x821   :  { %v3874_v53 = vrot.slane %v6712_v55, %v7292_v26 }
 0x822   :  { %v3904_v34 = vsel %vm1446_vm12, %v3903_v1, %v3899_v43  ;;  %v3860_v43 = vsel %vm1495_vm3, %v3859_v48, %v3855_v41  ;;  %vm7296_vm12 = vmmov %vm7295_vm11 }
 0x823   :  { %v3778_v29 = vpop.permute.xlu1 %3777  ;;  %v3793_v51 = vpop.permute.xlu0 %3792  ;;  %v3909_v20 = vsel %vm1453_vm13, %v3908_v6, %v3904_v34  ;;  %v3879_v34 = vrot.slane %v6714_v63, %v7293_v10  ;;  %v3865_v62 = vsel %vm1502_vm4, %v3864_v52, %v3860_v43  ;;  %v7294_v6 = vld [vmem:[#allocation146_spill] sm:$0xff]  ;;  %vm7298_vm13 = vcmask 982912  }
 0x824   :  { %v3913_v42 = vrot.slane %v3778_v29, %v7284_v47  ;;  %v3938_v15 = vrot.slane %v3793_v51, %v7289_v0  ;;  %v3870_v55 = vsel %vm1509_vm5, %v3869_v28, %v3865_v62 }
 0x825   :  { %v3875_v47 = vsel %vm1516_vm6, %v3874_v53, %v3870_v55 }
 0x826   :  { %v3914_v31 = vsel %vm1460_vm14, %v3913_v42, %v3909_v20  ;;  %v3880_v63 = vsel %vm7296_vm12, %v3879_v34, %v3875_v47  ;;  %vm7299_vm14 = vmmov %vm7298_vm13 }
 0x827   :  { %v3784_v36 = vpop.permute.xlu1 %3783  ;;  %v3799_v60 = vpop.permute.xlu0 %3798  ;;  %v3919_v32 = vsel %vm1467_vm15, %v3918_v13, %v3914_v31  ;;  %vm7300_vm15 = vcmask 1048512  }
 0x828   :  { %v3923_v45 = vrot.slane %v3784_v36, %v7286_v11  ;;  %v3948_v56 = vrot.slane %v3799_v60, %v7291_v61 }
 0x82a   :  { %v3924_v18 = vsel %vm1474_vm0, %v3923_v45, %v3919_v32  ;;  %vm7301_vm0 = vmmov %vm7300_vm15 }
 0x82b   :  { %v3790_v46 = vpop.permute.xlu1 %3789  ;;  %v3802_v16 = vpop.permute.xlu0 %3801  ;;  %v3929_v35 = vsel %vm1481_vm1, %v3928_v19, %v3924_v18  ;;  %vm7302_vm1 = vcmask 1041409  }
 0x82c   :  { %v3933_v7 = vrot.slane %v3790_v46, %v7288_v2  ;;  %v3953_v9 = vrot.slane %v3802_v16, %v7292_v26 }
 0x82e   :  { %v3934_v54 = vsel %vm1488_vm2, %v3933_v7, %v3929_v35 }
 0x82f   :  { %v3796_v59 = vpop.permute.xlu1 %3795  ;;  %v3805_v49 = vpop.permute.xlu0 %3804  ;;  %v3939_v22 = vsel %vm1495_vm3, %v3938_v15, %v3934_v54 }
 0x830   :  { %v3943_v4 = vrot.slane %v3796_v59, %v7290_v58  ;;  %v3958_v12 = vrot.slane %v3805_v49, %v7293_v10 }
 0x832   :  { %v3944_v38 = vsel %vm1502_vm4, %v3943_v4, %v3939_v22 }
 0x833   :  { %v3949_v1 = vsel %vm1509_vm5, %v3948_v56, %v3944_v38  ;;  %v3760_v50 = vpop.permute.xlu1 %3759  ;;  %v3808_v5 = vpop.permute.xlu0 %3807 }
 0x834   :  { %v3954_v17 = vsel %vm1516_vm6, %v3953_v9, %v3949_v1  ;;  %v3884_v29 = vrot.slane %v3760_v50, %v7294_v6  ;;  %v3963_v51 = vrot.slane %v3808_v5, %v7294_v6 }
 0x835   :  { %v3959_v30 = vsel %vm7295_vm11, %v3958_v12, %v3954_v17 }
 0x836   :  { %v3885_v31 = vsel %vm7298_vm13, %v3884_v29, %v3880_v63  ;;  %v3964_v40 = vsel %vm7299_vm14, %v3963_v51, %v3959_v30 }
 0x837   :  { %v3763_v42 = vpop.permute.xlu1 %3762  ;;  %v3811_v21 = vpop.permute.xlu0 %3810 }
 0x838   :  { %v3889_v20 = vrot.slane %v3763_v42, %v7297_v23  ;;  %v3968_v37 = vrot.slane %v3811_v21, %v7297_v23 }
 0x83a   :  { %v3890_v13 = vsel %vm7300_vm15, %v3889_v20, %v3885_v31  ;;  %v3969_v36 = vsel %vm7301_vm0, %v3968_v37, %v3964_v40 }
 0x83b   :  { %v3970_v60 = vsel %vm7302_vm1, %v3969_v36, %v3890_v13 }
 0x83c   :  { %3972 = vst [vmem:[#allocation9] sm:$0x3] %v3970_v60 }
 0x83d   :  { %4548 = shalt.err (!%p4545_p5)
}
 0x83e   :  { %3982 = dma.vmem_to_hbm [thread:$0]  %s3980_s8, 32, %s6796_s9, [#allocation4]  }
 0x83f   :  { %4563 = dma.done.wait [#allocation4], 32  }
 0x840   :  { %4564 = vsyncadd [#allocation4], 4294967264 }
 0x841   :  { %3986 = vsyncpa [#allocation3], 1 }
 0x842   :  { %3987 = vsyncpa [#allocation7], 1 }
 0x843   :  { %3988 = vsyncpa [#allocation4], 1 }
 0x844   :  { %3989 = vsyncpa [#allocation5], 1 }

</bundles_post_ra>
